<compile_context>
chip_gen: v6e
topology: v6e:2x2x1
jax: 0.10.0
libtpu: 0.0.40
codegen_flags: <defaults>
</compile_context>

<pallas_src>
import functools

import jax
import jax.numpy as jnp
from jax import lax
from jax.experimental import pallas as pl
from jax.experimental.pallas import tpu as pltpu


# ----------------------------------------------------------------------------
# Generation-aware VMEM budgets
# ----------------------------------------------------------------------------
def _vmem_capacity_bytes():
    try:
        return int(pltpu.get_tpu_info().vmem_capacity_bytes)
    except Exception:
        return 64 * 1024 * 1024  # conservative fallback (v7x-sized)


_VMEM_CAP = _vmem_capacity_bytes()
_VMEM_LIMIT = min(96 * 1024 * 1024, (_VMEM_CAP * 3) // 4)   # 96 MiB v5e/v6e, 48 MiB v7x
_TILE_BUDGET = min(12 * 1024 * 1024, _VMEM_CAP // 8)        # per-block working-set budget


def _round_up(x, m):
    return ((x + m - 1) // m) * m


def _bspec(shape, index_map, buffers=None):
    """BlockSpec; optionally single-buffer grid-invariant operands (review: v7x)."""
    if buffers is not None:
        try:
            return pl.BlockSpec(shape, index_map, pipeline_mode=pl.Buffered(buffers))
        except Exception:
            pass
    return pl.BlockSpec(shape, index_map)


def _choose_spatial_tile(hw_pad, per_pixel_bytes, budget=_TILE_BUDGET):
    """Largest 128-multiple divisor of the (128-padded) flat axis that fits budget."""
    best = 128
    for t in range(128, hw_pad + 1, 128):
        if hw_pad % t == 0 and t * per_pixel_bytes <= budget:
            best = max(best, t)
    return min(best, hw_pad)


def _choose_cin_tile(cin, n_obj, c, lp_pad, hwp_pad, budget=_TILE_BUDGET):
    """Cin tile for kernel A: must divide cin and be a multiple of 128 (lane dim of
    the weight block) unless it is the full extent.  Accounts for the
    double-buffered vec/weight blocks plus the resident accumulators (review: v7x)."""
    fixed = (2 * n_obj * hwp_pad * 4          # bbn block, double buffered
             + 2 * 2 * c * hwp_pad * 4        # two resident f32 accumulator outputs
             + 4 * c * 4)                     # biases

    def tile_bytes(ct):
        vec_blk = n_obj * ct * lp_pad * 2     # bf16
        w_blk = 2 * 9 * c * ct * 2            # both weight tensors, bf16
        return 2 * (vec_blk + w_blk)          # double buffered

    cands = [d for d in range(128, cin, 128) if cin % d == 0] + [cin]
    fitting = [d for d in cands if fixed + tile_bytes(d) <= budget]
    return max(fitting) if fitting else min(cands)


# ----------------------------------------------------------------------------
# Plain-JAX glue: bilinear interpolation (PyTorch semantics) + spectral norm
# ----------------------------------------------------------------------------
def _interp_coords(out_size, in_size, align_corners):
    if align_corners:
        if out_size == 1 or in_size == 1:
            return jnp.zeros((out_size,), jnp.float32)
        return jnp.arange(out_size, dtype=jnp.float32) * ((in_size - 1) / (out_size - 1))
    c = (jnp.arange(out_size, dtype=jnp.float32) + 0.5) * (in_size / out_size) - 0.5
    return jnp.clip(c, 0.0, in_size - 1)


def bilinear_resize_nchw(x, out_h, out_w, align_corners):
    n, c, ih, iw = x.shape
    ys = _interp_coords(out_h, ih, align_corners)
    xs = _interp_coords(out_w, iw, align_corners)
    y0 = jnp.floor(ys).astype(jnp.int32)
    x0 = jnp.floor(xs).astype(jnp.int32)
    y1 = jnp.minimum(y0 + 1, ih - 1)
    x1 = jnp.minimum(x0 + 1, iw - 1)
    wy = (ys - y0.astype(jnp.float32))[None, None, :, None]
    wx = (xs - x0.astype(jnp.float32))[None, None, None, :]

    def gather(yi, xi):
        return x[:, :, yi, :][:, :, :, xi]

    top = gather(y0, x0) * (1.0 - wx) + gather(y0, x1) * wx
    bot = gather(y1, x0) * (1.0 - wx) + gather(y1, x1) * wx
    return top * (1.0 - wy) + bot * wy


def spectral_normalize(w_oihw, u, v, eps=1e-4, n_power_iterations=1):
    # w_oihw: (Cout, Cin, kh, kw) -> matrix view (Cout, Cin*kh*kw), like torch.
    wm = w_oihw.reshape(w_oihw.shape[0], -1)
    for _ in range(n_power_iterations):
        v = wm.T @ u
        v = v / (jnp.linalg.norm(v) + eps)
        u = wm @ v
        u = u / (jnp.linalg.norm(u) + eps)
    sigma = u @ (wm @ v)
    # TODO(synk): torch's spectral_norm updates per-module u/v in-place on every
    # forward; one deterministic power iteration at parameter-setup time here.
    return w_oihw / sigma


# ----------------------------------------------------------------------------
# Pallas kernel A: fused bbox-weighted aggregation + BOTH 3x3 projections.
#   vec_ref : (1, O, Ct, Lp_pad)  bf16   padded-flat latent maps
#   bbn_ref : (1, O, HWp_pad)     f32    normalized bbox maps (zero in pads)
#   w1/w2   : (9, C, Ct)          bf16   per-tap projection weights
#   b1/b2   : (C, 1)              f32    projection biases
#   aggw/aggb out: (1, C, HWp_pad) f32   accumulated across the Cin-tile axis
# Grid = (B, nKc); kc is the reduction axis, output blocks stay resident.
# ----------------------------------------------------------------------------
def agg_conv_kernel(vec_ref, bbn_ref, w1_ref, w2_ref, b1_ref, b2_ref,
                    aggw_ref, aggb_ref, *, n_obj, tap_offsets, hwp):
    kc = pl.program_id(1)

    @pl.when(kc == 0)
    def _():
        aggw_ref[...] = jnp.zeros_like(aggw_ref)
        aggb_ref[...] = jnp.zeros_like(aggb_ref)

    bb = bbn_ref[0]                                           # (O, HWp_pad) f32

    for t, off in enumerate(tap_offsets):                     # 9 static taps
        # bbox-weighted, object-aggregated input tap (linearity: aggregate over
        # O *before* the projection matmul) -> (Ct, HWp_pad) f32.
        pt = bb[0:1, :] * vec_ref[0, 0, :, pl.ds(off, hwp)].astype(jnp.float32)
        for o in range(1, n_obj):
            pt += bb[o:o + 1, :] * vec_ref[0, o, :, pl.ds(off, hwp)].astype(jnp.float32)
        pt_bf = pt.astype(jnp.bfloat16)
        aggw_ref[0] += jnp.dot(w1_ref[t], pt_bf, preferred_element_type=jnp.float32)
        aggb_ref[0] += jnp.dot(w2_ref[t], pt_bf, preferred_element_type=jnp.float32)

    @pl.when(kc == pl.num_programs(1) - 1)
    def _():
        # bias term: bias[c] * sum_o bbn[o, p]   (outer product via broadcast)
        s = jnp.sum(bb, axis=0, keepdims=True)                # (1, HWp_pad)
        aggw_ref[0] += b1_ref[...] * s
        aggb_ref[0] += b2_ref[...] * s


def agg_conv_call(vec_p, bbn, w1t, w2t, b1c, b2c, *, tap_offsets, hwp_pad):
    b, o, cin, lp_pad = vec_p.shape
    c = w1t.shape[1]
    ct = _choose_cin_tile(cin, o, c, lp_pad, hwp_pad)
    nkc = cin // ct
    kern = functools.partial(agg_conv_kernel, n_obj=o,
                             tap_offsets=tap_offsets, hwp=hwp_pad)
    # TODO(synk): for very large H*W a spatial grid axis with a 1-row halo would
    # bound the per-block vec bytes further and give v7x's megacore a long
    # parallel axis; full-extent spatial blocks are used here.
    return pl.pallas_call(
        kern,
        out_shape=[jax.ShapeDtypeStruct((b, c, hwp_pad), jnp.float32)] * 2,
        grid_spec=pltpu.PrefetchScalarGridSpec(
            num_scalar_prefetch=0,
            grid=(b, nkc),
            in_specs=[
                pl.BlockSpec((1, o, ct, lp_pad), lambda bi, kc: (bi, 0, kc, 0)),
                pl.BlockSpec((1, o, hwp_pad), lambda bi, kc: (bi, 0, 0)),
                pl.BlockSpec((9, c, ct), lambda bi, kc: (0, 0, kc)),
                pl.BlockSpec((9, c, ct), lambda bi, kc: (0, 0, kc)),
                _bspec((c, 1), lambda bi, kc: (0, 0), buffers=1),
                _bspec((c, 1), lambda bi, kc: (0, 0), buffers=1),
            ],
            out_specs=[
                pl.BlockSpec((1, c, hwp_pad), lambda bi, kc: (bi, 0, 0)),
                pl.BlockSpec((1, c, hwp_pad), lambda bi, kc: (bi, 0, 0)),
            ],
        ),
        compiler_params=pltpu.CompilerParams(
            dimension_semantics=("parallel", "arbitrary"),
            vmem_limit_bytes=_VMEM_LIMIT,
        ),
    )(vec_p, bbn, w1t, w2t, b1c, b2c)


# ----------------------------------------------------------------------------
# Pallas kernel B: batch-norm statistics (per-channel sum / sum of squares).
#   x_p: (B, C, HWp_pad) f32; zero pad columns do not affect the sums.
#   Grid = (spatial tiles [parallel, first for megacore], batch [arbitrary]).
#   NOTE: the (nT, C, 1) partial outputs have lane width 1 (masked stores) —
#   knowingly accepted: the partials are O(nT*C) bytes, negligible vs the read.
# ----------------------------------------------------------------------------
def bn_stats_kernel(x_ref, sum_ref, sq_ref):
    b = pl.program_id(1)

    @pl.when(b == 0)
    def _():
        sum_ref[...] = jnp.zeros_like(sum_ref)
        sq_ref[...] = jnp.zeros_like(sq_ref)

    xt = x_ref[0]                                             # (C, T) f32
    sum_ref[0] += jnp.sum(xt, axis=1, keepdims=True)
    sq_ref[0] += jnp.sum(xt * xt, axis=1, keepdims=True)


def bn_stats_call(x_p):
    b, c, hwp_pad = x_p.shape
    t = _choose_spatial_tile(hwp_pad, per_pixel_bytes=2 * 4 * c)
    nt = hwp_pad // t
    return pl.pallas_call(
        bn_stats_kernel,
        out_shape=[jax.ShapeDtypeStruct((nt, c, 1), jnp.float32)] * 2,
        grid_spec=pltpu.PrefetchScalarGridSpec(
            num_scalar_prefetch=0,
            grid=(nt, b),
            in_specs=[pl.BlockSpec((1, c, t), lambda ti, bi: (bi, 0, ti))],
            out_specs=[
                pl.BlockSpec((1, c, 1), lambda ti, bi: (ti, 0, 0)),
                pl.BlockSpec((1, c, 1), lambda ti, bi: (ti, 0, 0)),
            ],
        ),
        compiler_params=pltpu.CompilerParams(
            dimension_semantics=("parallel", "arbitrary"),
            vmem_limit_bytes=_VMEM_LIMIT,
        ),
    )(x_p)


# ----------------------------------------------------------------------------
# Pallas kernel C: batch-norm + fma fuse (purely elementwise, HBM-bound).
#   out = (aggw + 1) * (x - mean) * invstd + aggb
# ----------------------------------------------------------------------------
def se_fuse_kernel(x_ref, aw_ref, ab_ref, mean_ref, inv_ref, out_ref):
    xn = (x_ref[0] - mean_ref[...]) * inv_ref[...]            # affine=False BN
    out_ref[0] = (aw_ref[0] + 1.0) * xn + ab_ref[0]


def se_fuse_call(x_p, aggw, aggb, mean, invstd):
    b, c, hwp_pad = x_p.shape
    t = _choose_spatial_tile(hwp_pad, per_pixel_bytes=2 * 4 * 4 * c)  # x, aggw, aggb, out
    nt = hwp_pad // t
    return pl.pallas_call(
        se_fuse_kernel,
        out_shape=jax.ShapeDtypeStruct((b, c, hwp_pad), jnp.float32),
        grid_spec=pltpu.PrefetchScalarGridSpec(
            num_scalar_prefetch=0,
            grid=(nt, b),
            in_specs=[
                pl.BlockSpec((1, c, t), lambda ti, bi: (bi, 0, ti)),
                pl.BlockSpec((1, c, t), lambda ti, bi: (bi, 0, ti)),
                pl.BlockSpec((1, c, t), lambda ti, bi: (bi, 0, ti)),
                _bspec((c, 1), lambda ti, bi: (0, 0), buffers=1),
                _bspec((c, 1), lambda ti, bi: (0, 0), buffers=1),
            ],
            out_specs=pl.BlockSpec((1, c, t), lambda ti, bi: (bi, 0, ti)),
        ),
        compiler_params=pltpu.CompilerParams(
            dimension_semantics=("parallel", "parallel"),
            vmem_limit_bytes=_VMEM_LIMIT,
        ),
    )(x_p, aggw, aggb, mean, invstd)


# ----------------------------------------------------------------------------
# Full SENorm2d forward (NCHW in / NCHW out, like the torch module)
# ----------------------------------------------------------------------------
def senorm2d_forward(x, vector, bbox, w1, b1, w2, b2, eps=1e-5):
    b, c, h, w = x.shape
    bo, num_w = vector.shape[0], vector.shape[1]
    o = bo // b

    # "padded-flat" spatial space: row stride w+2 (the conv zero padding),
    # flat length rounded up to a multiple of 128 so every lane-tile is dense.
    wp = w + 2
    hwp = h * wp
    hwp_pad = _round_up(hwp, 128)
    lp_pad = hwp_pad + 2 * wp + 2          # covers the largest tap offset exactly

    if bbox.shape[2:] != (h, w):
        bbox = bilinear_resize_nchw(bbox, h, w, align_corners=False)
    vec = bilinear_resize_nchw(vector, h, w, align_corners=True)

    # Latent maps in padded-flat space, bf16 (halves HBM + doubles MXU rate).
    vec5 = vec.reshape(b, o, num_w, h, w)
    vec_p = jnp.pad(vec5, ((0, 0), (0, 0), (0, 0), (1, 1), (1, 1)))
    vec_p = vec_p.reshape(b, o, num_w, (h + 2) * wp)
    vec_p = jnp.pad(vec_p, ((0, 0), (0, 0), (0, 0), (0, lp_pad - (h + 2) * wp)))
    vec_p = vec_p.astype(jnp.bfloat16)

    # Normalized bbox maps (pre-folded denominator), zero in all pad columns.
    bbox_f = bbox.astype(jnp.float32)
    denom = jnp.sum(bbox_f, axis=1, keepdims=True) + 1e-6
    bbn = bbox_f / denom
    bbn = jnp.pad(bbn, ((0, 0), (0, 0), (0, 0), (0, 2))).reshape(b, o, hwp)
    bbn = jnp.pad(bbn, ((0, 0), (0, 0), (0, hwp_pad - hwp)))

    # Feature map in the same padded-flat space (zeros in pads -> BN sums exact).
    x_p = jnp.pad(x.astype(jnp.float32), ((0, 0), (0, 0), (0, 0), (0, 2)))
    x_p = x_p.reshape(b, c, hwp)
    x_p = jnp.pad(x_p, ((0, 0), (0, 0), (0, hwp_pad - hwp)))

    # Per-tap projection weights (9, C, Cin); tap index t = ky*3 + kx.
    w1t = jnp.transpose(w1, (2, 3, 0, 1)).reshape(9, c, num_w).astype(jnp.bfloat16)
    w2t = jnp.transpose(w2, (2, 3, 0, 1)).reshape(9, c, num_w).astype(jnp.bfloat16)
    b1c = b1.reshape(c, 1).astype(jnp.float32)
    b2c = b2.reshape(c, 1).astype(jnp.float32)
    tap_offsets = tuple(ky * wp + kx for ky in range(3) for kx in range(3))

    # Kernel A: aggregated weight/bias maps (B, C, HWp_pad), no intermediates.
    aggw, aggb = agg_conv_call(vec_p, bbn, w1t, w2t, b1c, b2c,
                               tap_offsets=tap_offsets, hwp_pad=hwp_pad)

    # Kernel B: training-mode batch statistics (affine=False).
    # TODO(synk): eval-mode running stats / momentum update are not handled.
    s, sq = bn_stats_call(x_p)
    s = jnp.sum(s, axis=0)                 # (C, 1)
    sq = jnp.sum(sq, axis=0)
    n = b * h * w                          # true pixel count (pads are zero)
    mean = s / n
    # NOTE: E[x^2]-E[x]^2 in f32 can cancel for large-mean inputs; fine for
    # roughly zero-mean feature maps.
    var = sq / n - mean * mean
    invstd = lax.rsqrt(var + eps)

    # Kernel C: out = (aggw + 1) * BN(x) + aggb   (no O axis, no big temps).
    out_p = se_fuse_call(x_p, aggw, aggb, mean, invstd)

    # Crop the padded-flat output back to NCHW.
    out = out_p[:, :, :hwp].reshape(b, c, h, wp)[:, :, :, :w]
    return out


# ----------------------------------------------------------------------------
# Pure-JAX (f32) reference for a correctness check
# ----------------------------------------------------------------------------
def senorm2d_reference(x, vector, bbox, w1, b1, w2, b2, eps=1e-5):
    b, c, h, w = x.shape
    bo = vector.shape[0]
    o = bo // b
    if bbox.shape[2:] != (h, w):
        bbox = bilinear_resize_nchw(bbox, h, w, align_corners=False)
    vec = bilinear_resize_nchw(vector, h, w, align_corners=True)

    def conv(v, W, bia):
        y = lax.conv_general_dilated(v, W, (1, 1), ((1, 1), (1, 1)),
                                     dimension_numbers=("NCHW", "OIHW", "NCHW"))
        return y + bia[None, :, None, None]

    wmap = conv(vec, w1, b1).reshape(b, o, c, h, w)
    bmap = conv(vec, w2, b2).reshape(b, o, c, h, w)
    bb = bbox[:, :, None]
    denom = jnp.sum(bb, axis=1) + 1e-6
    wagg = jnp.sum(bb * wmap, axis=1) / denom + 1.0
    bagg = jnp.sum(bb * bmap, axis=1) / denom
    mean = x.mean(axis=(0, 2, 3))
    var = x.var(axis=(0, 2, 3))
    xn = (x - mean[None, :, None, None]) / jnp.sqrt(var[None, :, None, None] + eps)
    return wagg * xn + bagg


# ----------------------------------------------------------------------------
if __name__ == "__main__":
    key = jax.random.PRNGKey(0)
    ks = jax.random.split(key, 10)

    B, O = 2, 3
    C = 4            # num_features
    H = W = 16
    NUM_W = 32       # num_w (512 in the original module; small synthetic value)

    x = jax.random.normal(ks[0], (B, C, H, W), jnp.float32)
    vector = jax.random.normal(ks[1], (B * O, NUM_W, 4, 4), jnp.float32)   # (b*o, dim_w, vh, vw)
    bbox = jax.random.uniform(ks[2], (B, O, 8, 8), jnp.float32)            # (b, o, bh, bw)

    # Deterministic conv parameters (Conv2d(num_w, num_features, 3, 1, 1) x2) + spectral norm.
    scale = 1.0 / jnp.sqrt(NUM_W * 9.0)
    w_weight = jax.random.uniform(ks[3], (C, NUM_W, 3, 3), jnp.float32, -scale, scale)
    w_bias = jax.random.uniform(ks[4], (C,), jnp.float32, -scale, scale)
    b_weight = jax.random.uniform(ks[5], (C, NUM_W, 3, 3), jnp.float32, -scale, scale)
    b_bias = jax.random.uniform(ks[6], (C,), jnp.float32, -scale, scale)

    u1 = jax.random.normal(ks[7], (C,), jnp.float32)
    v1 = jax.random.normal(ks[8], (NUM_W * 9,), jnp.float32)
    w_weight_sn = spectral_normalize(w_weight, u1, v1)
    b_weight_sn = spectral_normalize(b_weight, u1, v1)

    fwd = jax.jit(functools.partial(senorm2d_forward, eps=1e-5))
    out = fwd(x, vector, bbox, w_weight_sn, w_bias, b_weight_sn, b_bias)
    out = jax.block_until_ready(out)

    ref = senorm2d_reference(x, vector, bbox, w_weight_sn, w_bias, b_weight_sn, b_bias)
    err = float(jnp.max(jnp.abs(out - ref)))
    assert out.shape == (B, C, H, W), out.shape
    # bf16 latent maps / projection weights / pre-aggregated MXU operands vs.
    # the pure-f32 reference set the tolerance.
    assert err < 5e-2, f"max abs error too large: {err}"

    print("KERNEL_OK")
</pallas_src>

<mosaic_0001>
module attributes {stable_mosaic.version = 11 : i64} {
  func.func @agg_conv_kernel(%arg0: i32, %arg1: i32, %arg2: memref<1x3x32x422xbf16, #tpu.memory_space<vmem>>, %arg3: memref<1x3x384xf32, #tpu.memory_space<vmem>>, %arg4: memref<9x4x32xbf16, #tpu.memory_space<vmem>>, %arg5: memref<9x4x32xbf16, #tpu.memory_space<vmem>>, %arg6: memref<4x1xf32, #tpu.memory_space<vmem>>, %arg7: memref<4x1xf32, #tpu.memory_space<vmem>>, %arg8: memref<1x4x384xf32, #tpu.memory_space<vmem>>, %arg9: memref<1x4x384xf32, #tpu.memory_space<vmem>>) attributes {dimension_semantics = [#tpu.dimension_semantics<parallel>, #tpu.dimension_semantics<arbitrary>], iteration_bounds = array<i64: 2, 1>, scalar_prefetch = 0 : i64, scratch_operands = 0 : i64, tpu.core_type = #tpu.core_type<tc>, window_params = [{transform_indices = @transform_0, window_bounds = array<i64: 1, 3, 32, 422>}, {transform_indices = @transform_1, window_bounds = array<i64: 1, 3, 384>}, {transform_indices = @transform_2, window_bounds = array<i64: 9, 4, 32>}, {transform_indices = @transform_3, window_bounds = array<i64: 9, 4, 32>}, {pipeline_mode = #tpu.pipeline_mode<synchronous>, transform_indices = @transform_4, window_bounds = array<i64: 4, 1>}, {pipeline_mode = #tpu.pipeline_mode<synchronous>, transform_indices = @transform_5, window_bounds = array<i64: 4, 1>}, {transform_indices = @transform_6, window_bounds = array<i64: 1, 4, 384>}, {transform_indices = @transform_7, window_bounds = array<i64: 1, 4, 384>}]} {
    %c0_i32 = arith.constant 0 : i32
    %0 = arith.cmpi eq, %arg1, %c0_i32 : i32
    %1 = arith.extui %0 : i1 to i32
    %c0_i32_0 = arith.constant 0 : i32
    %2 = arith.cmpi ne, %1, %c0_i32_0 : i32
    scf.if %2 {
      %cst_278 = arith.constant 0.000000e+00 : f32
      %359 = vector.broadcast %cst_278 : f32 to vector<1x4x384xf32>
      %c0_279 = arith.constant 0 : index
      %c0_280 = arith.constant 0 : index
      %c0_281 = arith.constant 0 : index
      %360 = vector.load %arg8[%c0_279, %c0_280, %c0_281] : memref<1x4x384xf32, #tpu.memory_space<vmem>>, vector<1x4x384xf32>
      tpu.vector_store %arg8[%c0_279, %c0_280, %c0_281], %359 {strides = array<i32>} : memref<1x4x384xf32, #tpu.memory_space<vmem>>, vector<1x4x384xf32>,
      %cst_282 = arith.constant 0.000000e+00 : f32
      %361 = vector.broadcast %cst_282 : f32 to vector<1x4x384xf32>
      %c0_283 = arith.constant 0 : index
      %c0_284 = arith.constant 0 : index
      %c0_285 = arith.constant 0 : index
      %362 = vector.load %arg9[%c0_283, %c0_284, %c0_285] : memref<1x4x384xf32, #tpu.memory_space<vmem>>, vector<1x4x384xf32>
      tpu.vector_store %arg9[%c0_283, %c0_284, %c0_285], %361 {strides = array<i32>} : memref<1x4x384xf32, #tpu.memory_space<vmem>>, vector<1x4x384xf32>,
    } else {
    }
    %c0 = arith.constant 0 : index
    %c0_1 = arith.constant 0 : index
    %c0_2 = arith.constant 0 : index
    %3 = vector.load %arg3[%c0, %c0_1, %c0_2] : memref<1x3x384xf32, #tpu.memory_space<vmem>>, vector<1x3x384xf32>
    %4 = vector.shape_cast %3 : vector<1x3x384xf32> to vector<3x384xf32>
    %5 = vector.extract_strided_slice %4 {offsets = [0, 0], sizes = [1, 384], strides = [1, 1]} : vector<3x384xf32> to vector<1x384xf32>
    %c0_3 = arith.constant 0 : index
    %c0_4 = arith.constant 0 : index
    %c0_5 = arith.constant 0 : index
    %c0_6 = arith.constant 0 : index
    %6 = vector.load %arg2[%c0_3, %c0_4, %c0_5, %c0_6] : memref<1x3x32x422xbf16, #tpu.memory_space<vmem>>, vector<1x1x32x384xbf16>
    %7 = vector.shape_cast %6 : vector<1x1x32x384xbf16> to vector<32x384xbf16>
    %8 = arith.extf %7 : vector<32x384xbf16> to vector<32x384xf32>
    %9 = vector.broadcast %5 : vector<1x384xf32> to vector<32x384xf32>
    %10 = arith.mulf %9, %8 : vector<32x384xf32>
    %11 = vector.extract_strided_slice %4 {offsets = [1, 0], sizes = [1, 384], strides = [1, 1]} : vector<3x384xf32> to vector<1x384xf32>
    %c0_7 = arith.constant 0 : index
    %c1 = arith.constant 1 : index
    %c0_8 = arith.constant 0 : index
    %c0_9 = arith.constant 0 : index
    %12 = vector.load %arg2[%c0_7, %c1, %c0_8, %c0_9] : memref<1x3x32x422xbf16, #tpu.memory_space<vmem>>, vector<1x1x32x384xbf16>
    %13 = vector.shape_cast %12 : vector<1x1x32x384xbf16> to vector<32x384xbf16>
    %14 = arith.extf %13 : vector<32x384xbf16> to vector<32x384xf32>
    %15 = vector.broadcast %11 : vector<1x384xf32> to vector<32x384xf32>
    %16 = arith.mulf %15, %14 : vector<32x384xf32>
    %17 = arith.addf %10, %16 : vector<32x384xf32>
    %18 = vector.extract_strided_slice %4 {offsets = [2, 0], sizes = [1, 384], strides = [1, 1]} : vector<3x384xf32> to vector<1x384xf32>
    %c0_10 = arith.constant 0 : index
    %c2 = arith.constant 2 : index
    %c0_11 = arith.constant 0 : index
    %c0_12 = arith.constant 0 : index
    %19 = vector.load %arg2[%c0_10, %c2, %c0_11, %c0_12] : memref<1x3x32x422xbf16, #tpu.memory_space<vmem>>, vector<1x1x32x384xbf16>
    %20 = vector.shape_cast %19 : vector<1x1x32x384xbf16> to vector<32x384xbf16>
    %21 = arith.extf %20 : vector<32x384xbf16> to vector<32x384xf32>
    %22 = vector.broadcast %18 : vector<1x384xf32> to vector<32x384xf32>
    %23 = arith.mulf %22, %21 : vector<32x384xf32>
    %24 = arith.addf %17, %23 : vector<32x384xf32>
    %25 = arith.truncf %24 : vector<32x384xf32> to vector<32x384xbf16>
    %c0_13 = arith.constant 0 : index
    %c0_14 = arith.constant 0 : index
    %c0_15 = arith.constant 0 : index
    %26 = vector.load %arg8[%c0_13, %c0_14, %c0_15] : memref<1x4x384xf32, #tpu.memory_space<vmem>>, vector<1x4x384xf32>
    %27 = vector.shape_cast %26 : vector<1x4x384xf32> to vector<4x384xf32>
    %c0_16 = arith.constant 0 : index
    %c0_17 = arith.constant 0 : index
    %c0_18 = arith.constant 0 : index
    %28 = vector.load %arg4[%c0_16, %c0_17, %c0_18] : memref<9x4x32xbf16, #tpu.memory_space<vmem>>, vector<1x4x32xbf16>
    %29 = vector.shape_cast %28 : vector<1x4x32xbf16> to vector<4x32xbf16>
    %cst = arith.constant dense<0.000000e+00> : vector<4x384xf32>
    %30 = tpu.matmul %29, %25, %cst {dimension_numbers = #tpu.dot_dimension_numbers<[1], [0], [0], [1], [0, 0, 1, 1], [], []>} : vector<4x32xbf16>, vector<32x384xbf16>, vector<4x384xf32> -> vector<4x384xf32>
    %31 = arith.addf %27, %30 : vector<4x384xf32>
    %c0_19 = arith.constant 0 : index
    %c0_20 = arith.constant 0 : index
    %c0_21 = arith.constant 0 : index
    %32 = vector.load %arg8[%c0_19, %c0_20, %c0_21] : memref<1x4x384xf32, #tpu.memory_space<vmem>>, vector<1x4x384xf32>
    %33 = vector.shape_cast %32 : vector<1x4x384xf32> to vector<4x384xf32>
    %34 = vector.shape_cast %31 : vector<4x384xf32> to vector<1x4x384xf32>
    tpu.vector_store %arg8[%c0_19, %c0_20, %c0_21], %34 {strides = array<i32>} : memref<1x4x384xf32, #tpu.memory_space<vmem>>, vector<1x4x384xf32>,
    %c0_22 = arith.constant 0 : index
    %c0_23 = arith.constant 0 : index
    %c0_24 = arith.constant 0 : index
    %35 = vector.load %arg9[%c0_22, %c0_23, %c0_24] : memref<1x4x384xf32, #tpu.memory_space<vmem>>, vector<1x4x384xf32>
    %36 = vector.shape_cast %35 : vector<1x4x384xf32> to vector<4x384xf32>
    %c0_25 = arith.constant 0 : index
    %c0_26 = arith.constant 0 : index
    %c0_27 = arith.constant 0 : index
    %37 = vector.load %arg5[%c0_25, %c0_26, %c0_27] : memref<9x4x32xbf16, #tpu.memory_space<vmem>>, vector<1x4x32xbf16>
    %38 = vector.shape_cast %37 : vector<1x4x32xbf16> to vector<4x32xbf16>
    %cst_28 = arith.constant dense<0.000000e+00> : vector<4x384xf32>
    %39 = tpu.matmul %38, %25, %cst_28 {dimension_numbers = #tpu.dot_dimension_numbers<[1], [0], [0], [1], [0, 0, 1, 1], [], []>} : vector<4x32xbf16>, vector<32x384xbf16>, vector<4x384xf32> -> vector<4x384xf32>
    %40 = arith.addf %36, %39 : vector<4x384xf32>
    %c0_29 = arith.constant 0 : index
    %c0_30 = arith.constant 0 : index
    %c0_31 = arith.constant 0 : index
    %41 = vector.load %arg9[%c0_29, %c0_30, %c0_31] : memref<1x4x384xf32, #tpu.memory_space<vmem>>, vector<1x4x384xf32>
    %42 = vector.shape_cast %41 : vector<1x4x384xf32> to vector<4x384xf32>
    %43 = vector.shape_cast %40 : vector<4x384xf32> to vector<1x4x384xf32>
    tpu.vector_store %arg9[%c0_29, %c0_30, %c0_31], %43 {strides = array<i32>} : memref<1x4x384xf32, #tpu.memory_space<vmem>>, vector<1x4x384xf32>,
    %44 = vector.extract_strided_slice %4 {offsets = [0, 0], sizes = [1, 384], strides = [1, 1]} : vector<3x384xf32> to vector<1x384xf32>
    %c0_32 = arith.constant 0 : index
    %c0_33 = arith.constant 0 : index
    %c0_34 = arith.constant 0 : index
    %c1_35 = arith.constant 1 : index
    %45 = vector.load %arg2[%c0_32, %c0_33, %c0_34, %c1_35] : memref<1x3x32x422xbf16, #tpu.memory_space<vmem>>, vector<1x1x32x384xbf16>
    %46 = vector.shape_cast %45 : vector<1x1x32x384xbf16> to vector<32x384xbf16>
    %47 = arith.extf %46 : vector<32x384xbf16> to vector<32x384xf32>
    %48 = vector.broadcast %44 : vector<1x384xf32> to vector<32x384xf32>
    %49 = arith.mulf %48, %47 : vector<32x384xf32>
    %50 = vector.extract_strided_slice %4 {offsets = [1, 0], sizes = [1, 384], strides = [1, 1]} : vector<3x384xf32> to vector<1x384xf32>
    %c0_36 = arith.constant 0 : index
    %c1_37 = arith.constant 1 : index
    %c0_38 = arith.constant 0 : index
    %c1_39 = arith.constant 1 : index
    %51 = vector.load %arg2[%c0_36, %c1_37, %c0_38, %c1_39] : memref<1x3x32x422xbf16, #tpu.memory_space<vmem>>, vector<1x1x32x384xbf16>
    %52 = vector.shape_cast %51 : vector<1x1x32x384xbf16> to vector<32x384xbf16>
    %53 = arith.extf %52 : vector<32x384xbf16> to vector<32x384xf32>
    %54 = vector.broadcast %50 : vector<1x384xf32> to vector<32x384xf32>
    %55 = arith.mulf %54, %53 : vector<32x384xf32>
    %56 = arith.addf %49, %55 : vector<32x384xf32>
    %57 = vector.extract_strided_slice %4 {offsets = [2, 0], sizes = [1, 384], strides = [1, 1]} : vector<3x384xf32> to vector<1x384xf32>
    %c0_40 = arith.constant 0 : index
    %c2_41 = arith.constant 2 : index
    %c0_42 = arith.constant 0 : index
    %c1_43 = arith.constant 1 : index
    %58 = vector.load %arg2[%c0_40, %c2_41, %c0_42, %c1_43] : memref<1x3x32x422xbf16, #tpu.memory_space<vmem>>, vector<1x1x32x384xbf16>
    %59 = vector.shape_cast %58 : vector<1x1x32x384xbf16> to vector<32x384xbf16>
    %60 = arith.extf %59 : vector<32x384xbf16> to vector<32x384xf32>
    %61 = vector.broadcast %57 : vector<1x384xf32> to vector<32x384xf32>
    %62 = arith.mulf %61, %60 : vector<32x384xf32>
    %63 = arith.addf %56, %62 : vector<32x384xf32>
    %64 = arith.truncf %63 : vector<32x384xf32> to vector<32x384xbf16>
    %c0_44 = arith.constant 0 : index
    %c0_45 = arith.constant 0 : index
    %c0_46 = arith.constant 0 : index
    %65 = vector.load %arg8[%c0_44, %c0_45, %c0_46] : memref<1x4x384xf32, #tpu.memory_space<vmem>>, vector<1x4x384xf32>
    %66 = vector.shape_cast %65 : vector<1x4x384xf32> to vector<4x384xf32>
    %c1_47 = arith.constant 1 : index
    %c0_48 = arith.constant 0 : index
    %c0_49 = arith.constant 0 : index
    %67 = vector.load %arg4[%c1_47, %c0_48, %c0_49] : memref<9x4x32xbf16, #tpu.memory_space<vmem>>, vector<1x4x32xbf16>
    %68 = vector.shape_cast %67 : vector<1x4x32xbf16> to vector<4x32xbf16>
    %cst_50 = arith.constant dense<0.000000e+00> : vector<4x384xf32>
    %69 = tpu.matmul %68, %64, %cst_50 {dimension_numbers = #tpu.dot_dimension_numbers<[1], [0], [0], [1], [0, 0, 1, 1], [], []>} : vector<4x32xbf16>, vector<32x384xbf16>, vector<4x384xf32> -> vector<4x384xf32>
    %70 = arith.addf %66, %69 : vector<4x384xf32>
    %c0_51 = arith.constant 0 : index
    %c0_52 = arith.constant 0 : index
    %c0_53 = arith.constant 0 : index
    %71 = vector.load %arg8[%c0_51, %c0_52, %c0_53] : memref<1x4x384xf32, #tpu.memory_space<vmem>>, vector<1x4x384xf32>
    %72 = vector.shape_cast %71 : vector<1x4x384xf32> to vector<4x384xf32>
    %73 = vector.shape_cast %70 : vector<4x384xf32> to vector<1x4x384xf32>
    tpu.vector_store %arg8[%c0_51, %c0_52, %c0_53], %73 {strides = array<i32>} : memref<1x4x384xf32, #tpu.memory_space<vmem>>, vector<1x4x384xf32>,
    %c0_54 = arith.constant 0 : index
    %c0_55 = arith.constant 0 : index
    %c0_56 = arith.constant 0 : index
    %74 = vector.load %arg9[%c0_54, %c0_55, %c0_56] : memref<1x4x384xf32, #tpu.memory_space<vmem>>, vector<1x4x384xf32>
    %75 = vector.shape_cast %74 : vector<1x4x384xf32> to vector<4x384xf32>
    %c1_57 = arith.constant 1 : index
    %c0_58 = arith.constant 0 : index
    %c0_59 = arith.constant 0 : index
    %76 = vector.load %arg5[%c1_57, %c0_58, %c0_59] : memref<9x4x32xbf16, #tpu.memory_space<vmem>>, vector<1x4x32xbf16>
    %77 = vector.shape_cast %76 : vector<1x4x32xbf16> to vector<4x32xbf16>
    %cst_60 = arith.constant dense<0.000000e+00> : vector<4x384xf32>
    %78 = tpu.matmul %77, %64, %cst_60 {dimension_numbers = #tpu.dot_dimension_numbers<[1], [0], [0], [1], [0, 0, 1, 1], [], []>} : vector<4x32xbf16>, vector<32x384xbf16>, vector<4x384xf32> -> vector<4x384xf32>
    %79 = arith.addf %75, %78 : vector<4x384xf32>
    %c0_61 = arith.constant 0 : index
    %c0_62 = arith.constant 0 : index
    %c0_63 = arith.constant 0 : index
    %80 = vector.load %arg9[%c0_61, %c0_62, %c0_63] : memref<1x4x384xf32, #tpu.memory_space<vmem>>, vector<1x4x384xf32>
    %81 = vector.shape_cast %80 : vector<1x4x384xf32> to vector<4x384xf32>
    %82 = vector.shape_cast %79 : vector<4x384xf32> to vector<1x4x384xf32>
    tpu.vector_store %arg9[%c0_61, %c0_62, %c0_63], %82 {strides = array<i32>} : memref<1x4x384xf32, #tpu.memory_space<vmem>>, vector<1x4x384xf32>,
    %83 = vector.extract_strided_slice %4 {offsets = [0, 0], sizes = [1, 384], strides = [1, 1]} : vector<3x384xf32> to vector<1x384xf32>
    %c0_64 = arith.constant 0 : index
    %c0_65 = arith.constant 0 : index
    %c0_66 = arith.constant 0 : index
    %c2_67 = arith.constant 2 : index
    %84 = vector.load %arg2[%c0_64, %c0_65, %c0_66, %c2_67] : memref<1x3x32x422xbf16, #tpu.memory_space<vmem>>, vector<1x1x32x384xbf16>
    %85 = vector.shape_cast %84 : vector<1x1x32x384xbf16> to vector<32x384xbf16>
    %86 = arith.extf %85 : vector<32x384xbf16> to vector<32x384xf32>
    %87 = vector.broadcast %83 : vector<1x384xf32> to vector<32x384xf32>
    %88 = arith.mulf %87, %86 : vector<32x384xf32>
    %89 = vector.extract_strided_slice %4 {offsets = [1, 0], sizes = [1, 384], strides = [1, 1]} : vector<3x384xf32> to vector<1x384xf32>
    %c0_68 = arith.constant 0 : index
    %c1_69 = arith.constant 1 : index
    %c0_70 = arith.constant 0 : index
    %c2_71 = arith.constant 2 : index
    %90 = vector.load %arg2[%c0_68, %c1_69, %c0_70, %c2_71] : memref<1x3x32x422xbf16, #tpu.memory_space<vmem>>, vector<1x1x32x384xbf16>
    %91 = vector.shape_cast %90 : vector<1x1x32x384xbf16> to vector<32x384xbf16>
    %92 = arith.extf %91 : vector<32x384xbf16> to vector<32x384xf32>
    %93 = vector.broadcast %89 : vector<1x384xf32> to vector<32x384xf32>
    %94 = arith.mulf %93, %92 : vector<32x384xf32>
    %95 = arith.addf %88, %94 : vector<32x384xf32>
    %96 = vector.extract_strided_slice %4 {offsets = [2, 0], sizes = [1, 384], strides = [1, 1]} : vector<3x384xf32> to vector<1x384xf32>
    %c0_72 = arith.constant 0 : index
    %c2_73 = arith.constant 2 : index
    %c0_74 = arith.constant 0 : index
    %c2_75 = arith.constant 2 : index
    %97 = vector.load %arg2[%c0_72, %c2_73, %c0_74, %c2_75] : memref<1x3x32x422xbf16, #tpu.memory_space<vmem>>, vector<1x1x32x384xbf16>
    %98 = vector.shape_cast %97 : vector<1x1x32x384xbf16> to vector<32x384xbf16>
    %99 = arith.extf %98 : vector<32x384xbf16> to vector<32x384xf32>
    %100 = vector.broadcast %96 : vector<1x384xf32> to vector<32x384xf32>
    %101 = arith.mulf %100, %99 : vector<32x384xf32>
    %102 = arith.addf %95, %101 : vector<32x384xf32>
    %103 = arith.truncf %102 : vector<32x384xf32> to vector<32x384xbf16>
    %c0_76 = arith.constant 0 : index
    %c0_77 = arith.constant 0 : index
    %c0_78 = arith.constant 0 : index
    %104 = vector.load %arg8[%c0_76, %c0_77, %c0_78] : memref<1x4x384xf32, #tpu.memory_space<vmem>>, vector<1x4x384xf32>
    %105 = vector.shape_cast %104 : vector<1x4x384xf32> to vector<4x384xf32>
    %c2_79 = arith.constant 2 : index
    %c0_80 = arith.constant 0 : index
    %c0_81 = arith.constant 0 : index
    %106 = vector.load %arg4[%c2_79, %c0_80, %c0_81] : memref<9x4x32xbf16, #tpu.memory_space<vmem>>, vector<1x4x32xbf16>
    %107 = vector.shape_cast %106 : vector<1x4x32xbf16> to vector<4x32xbf16>
    %cst_82 = arith.constant dense<0.000000e+00> : vector<4x384xf32>
    %108 = tpu.matmul %107, %103, %cst_82 {dimension_numbers = #tpu.dot_dimension_numbers<[1], [0], [0], [1], [0, 0, 1, 1], [], []>} : vector<4x32xbf16>, vector<32x384xbf16>, vector<4x384xf32> -> vector<4x384xf32>
    %109 = arith.addf %105, %108 : vector<4x384xf32>
    %c0_83 = arith.constant 0 : index
    %c0_84 = arith.constant 0 : index
    %c0_85 = arith.constant 0 : index
    %110 = vector.load %arg8[%c0_83, %c0_84, %c0_85] : memref<1x4x384xf32, #tpu.memory_space<vmem>>, vector<1x4x384xf32>
    %111 = vector.shape_cast %110 : vector<1x4x384xf32> to vector<4x384xf32>
    %112 = vector.shape_cast %109 : vector<4x384xf32> to vector<1x4x384xf32>
    tpu.vector_store %arg8[%c0_83, %c0_84, %c0_85], %112 {strides = array<i32>} : memref<1x4x384xf32, #tpu.memory_space<vmem>>, vector<1x4x384xf32>,
    %c0_86 = arith.constant 0 : index
    %c0_87 = arith.constant 0 : index
    %c0_88 = arith.constant 0 : index
    %113 = vector.load %arg9[%c0_86, %c0_87, %c0_88] : memref<1x4x384xf32, #tpu.memory_space<vmem>>, vector<1x4x384xf32>
    %114 = vector.shape_cast %113 : vector<1x4x384xf32> to vector<4x384xf32>
    %c2_89 = arith.constant 2 : index
    %c0_90 = arith.constant 0 : index
    %c0_91 = arith.constant 0 : index
    %115 = vector.load %arg5[%c2_89, %c0_90, %c0_91] : memref<9x4x32xbf16, #tpu.memory_space<vmem>>, vector<1x4x32xbf16>
    %116 = vector.shape_cast %115 : vector<1x4x32xbf16> to vector<4x32xbf16>
    %cst_92 = arith.constant dense<0.000000e+00> : vector<4x384xf32>
    %117 = tpu.matmul %116, %103, %cst_92 {dimension_numbers = #tpu.dot_dimension_numbers<[1], [0], [0], [1], [0, 0, 1, 1], [], []>} : vector<4x32xbf16>, vector<32x384xbf16>, vector<4x384xf32> -> vector<4x384xf32>
    %118 = arith.addf %114, %117 : vector<4x384xf32>
    %c0_93 = arith.constant 0 : index
    %c0_94 = arith.constant 0 : index
    %c0_95 = arith.constant 0 : index
    %119 = vector.load %arg9[%c0_93, %c0_94, %c0_95] : memref<1x4x384xf32, #tpu.memory_space<vmem>>, vector<1x4x384xf32>
    %120 = vector.shape_cast %119 : vector<1x4x384xf32> to vector<4x384xf32>
    %121 = vector.shape_cast %118 : vector<4x384xf32> to vector<1x4x384xf32>
    tpu.vector_store %arg9[%c0_93, %c0_94, %c0_95], %121 {strides = array<i32>} : memref<1x4x384xf32, #tpu.memory_space<vmem>>, vector<1x4x384xf32>,
    %122 = vector.extract_strided_slice %4 {offsets = [0, 0], sizes = [1, 384], strides = [1, 1]} : vector<3x384xf32> to vector<1x384xf32>
    %c0_96 = arith.constant 0 : index
    %c0_97 = arith.constant 0 : index
    %c0_98 = arith.constant 0 : index
    %c18 = arith.constant 18 : index
    %123 = vector.load %arg2[%c0_96, %c0_97, %c0_98, %c18] : memref<1x3x32x422xbf16, #tpu.memory_space<vmem>>, vector<1x1x32x384xbf16>
    %124 = vector.shape_cast %123 : vector<1x1x32x384xbf16> to vector<32x384xbf16>
    %125 = arith.extf %124 : vector<32x384xbf16> to vector<32x384xf32>
    %126 = vector.broadcast %122 : vector<1x384xf32> to vector<32x384xf32>
    %127 = arith.mulf %126, %125 : vector<32x384xf32>
    %128 = vector.extract_strided_slice %4 {offsets = [1, 0], sizes = [1, 384], strides = [1, 1]} : vector<3x384xf32> to vector<1x384xf32>
    %c0_99 = arith.constant 0 : index
    %c1_100 = arith.constant 1 : index
    %c0_101 = arith.constant 0 : index
    %c18_102 = arith.constant 18 : index
    %129 = vector.load %arg2[%c0_99, %c1_100, %c0_101, %c18_102] : memref<1x3x32x422xbf16, #tpu.memory_space<vmem>>, vector<1x1x32x384xbf16>
    %130 = vector.shape_cast %129 : vector<1x1x32x384xbf16> to vector<32x384xbf16>
    %131 = arith.extf %130 : vector<32x384xbf16> to vector<32x384xf32>
    %132 = vector.broadcast %128 : vector<1x384xf32> to vector<32x384xf32>
    %133 = arith.mulf %132, %131 : vector<32x384xf32>
    %134 = arith.addf %127, %133 : vector<32x384xf32>
    %135 = vector.extract_strided_slice %4 {offsets = [2, 0], sizes = [1, 384], strides = [1, 1]} : vector<3x384xf32> to vector<1x384xf32>
    %c0_103 = arith.constant 0 : index
    %c2_104 = arith.constant 2 : index
    %c0_105 = arith.constant 0 : index
    %c18_106 = arith.constant 18 : index
    %136 = vector.load %arg2[%c0_103, %c2_104, %c0_105, %c18_106] : memref<1x3x32x422xbf16, #tpu.memory_space<vmem>>, vector<1x1x32x384xbf16>
    %137 = vector.shape_cast %136 : vector<1x1x32x384xbf16> to vector<32x384xbf16>
    %138 = arith.extf %137 : vector<32x384xbf16> to vector<32x384xf32>
    %139 = vector.broadcast %135 : vector<1x384xf32> to vector<32x384xf32>
    %140 = arith.mulf %139, %138 : vector<32x384xf32>
    %141 = arith.addf %134, %140 : vector<32x384xf32>
    %142 = arith.truncf %141 : vector<32x384xf32> to vector<32x384xbf16>
    %c0_107 = arith.constant 0 : index
    %c0_108 = arith.constant 0 : index
    %c0_109 = arith.constant 0 : index
    %143 = vector.load %arg8[%c0_107, %c0_108, %c0_109] : memref<1x4x384xf32, #tpu.memory_space<vmem>>, vector<1x4x384xf32>
    %144 = vector.shape_cast %143 : vector<1x4x384xf32> to vector<4x384xf32>
    %c3 = arith.constant 3 : index
    %c0_110 = arith.constant 0 : index
    %c0_111 = arith.constant 0 : index
    %145 = vector.load %arg4[%c3, %c0_110, %c0_111] : memref<9x4x32xbf16, #tpu.memory_space<vmem>>, vector<1x4x32xbf16>
    %146 = vector.shape_cast %145 : vector<1x4x32xbf16> to vector<4x32xbf16>
    %cst_112 = arith.constant dense<0.000000e+00> : vector<4x384xf32>
    %147 = tpu.matmul %146, %142, %cst_112 {dimension_numbers = #tpu.dot_dimension_numbers<[1], [0], [0], [1], [0, 0, 1, 1], [], []>} : vector<4x32xbf16>, vector<32x384xbf16>, vector<4x384xf32> -> vector<4x384xf32>
    %148 = arith.addf %144, %147 : vector<4x384xf32>
    %c0_113 = arith.constant 0 : index
    %c0_114 = arith.constant 0 : index
    %c0_115 = arith.constant 0 : index
    %149 = vector.load %arg8[%c0_113, %c0_114, %c0_115] : memref<1x4x384xf32, #tpu.memory_space<vmem>>, vector<1x4x384xf32>
    %150 = vector.shape_cast %149 : vector<1x4x384xf32> to vector<4x384xf32>
    %151 = vector.shape_cast %148 : vector<4x384xf32> to vector<1x4x384xf32>
    tpu.vector_store %arg8[%c0_113, %c0_114, %c0_115], %151 {strides = array<i32>} : memref<1x4x384xf32, #tpu.memory_space<vmem>>, vector<1x4x384xf32>,
    %c0_116 = arith.constant 0 : index
    %c0_117 = arith.constant 0 : index
    %c0_118 = arith.constant 0 : index
    %152 = vector.load %arg9[%c0_116, %c0_117, %c0_118] : memref<1x4x384xf32, #tpu.memory_space<vmem>>, vector<1x4x384xf32>
    %153 = vector.shape_cast %152 : vector<1x4x384xf32> to vector<4x384xf32>
    %c3_119 = arith.constant 3 : index
    %c0_120 = arith.constant 0 : index
    %c0_121 = arith.constant 0 : index
    %154 = vector.load %arg5[%c3_119, %c0_120, %c0_121] : memref<9x4x32xbf16, #tpu.memory_space<vmem>>, vector<1x4x32xbf16>
    %155 = vector.shape_cast %154 : vector<1x4x32xbf16> to vector<4x32xbf16>
    %cst_122 = arith.constant dense<0.000000e+00> : vector<4x384xf32>
    %156 = tpu.matmul %155, %142, %cst_122 {dimension_numbers = #tpu.dot_dimension_numbers<[1], [0], [0], [1], [0, 0, 1, 1], [], []>} : vector<4x32xbf16>, vector<32x384xbf16>, vector<4x384xf32> -> vector<4x384xf32>
    %157 = arith.addf %153, %156 : vector<4x384xf32>
    %c0_123 = arith.constant 0 : index
    %c0_124 = arith.constant 0 : index
    %c0_125 = arith.constant 0 : index
    %158 = vector.load %arg9[%c0_123, %c0_124, %c0_125] : memref<1x4x384xf32, #tpu.memory_space<vmem>>, vector<1x4x384xf32>
    %159 = vector.shape_cast %158 : vector<1x4x384xf32> to vector<4x384xf32>
    %160 = vector.shape_cast %157 : vector<4x384xf32> to vector<1x4x384xf32>
    tpu.vector_store %arg9[%c0_123, %c0_124, %c0_125], %160 {strides = array<i32>} : memref<1x4x384xf32, #tpu.memory_space<vmem>>, vector<1x4x384xf32>,
    %161 = vector.extract_strided_slice %4 {offsets = [0, 0], sizes = [1, 384], strides = [1, 1]} : vector<3x384xf32> to vector<1x384xf32>
    %c0_126 = arith.constant 0 : index
    %c0_127 = arith.constant 0 : index
    %c0_128 = arith.constant 0 : index
    %c19 = arith.constant 19 : index
    %162 = vector.load %arg2[%c0_126, %c0_127, %c0_128, %c19] : memref<1x3x32x422xbf16, #tpu.memory_space<vmem>>, vector<1x1x32x384xbf16>
    %163 = vector.shape_cast %162 : vector<1x1x32x384xbf16> to vector<32x384xbf16>
    %164 = arith.extf %163 : vector<32x384xbf16> to vector<32x384xf32>
    %165 = vector.broadcast %161 : vector<1x384xf32> to vector<32x384xf32>
    %166 = arith.mulf %165, %164 : vector<32x384xf32>
    %167 = vector.extract_strided_slice %4 {offsets = [1, 0], sizes = [1, 384], strides = [1, 1]} : vector<3x384xf32> to vector<1x384xf32>
    %c0_129 = arith.constant 0 : index
    %c1_130 = arith.constant 1 : index
    %c0_131 = arith.constant 0 : index
    %c19_132 = arith.constant 19 : index
    %168 = vector.load %arg2[%c0_129, %c1_130, %c0_131, %c19_132] : memref<1x3x32x422xbf16, #tpu.memory_space<vmem>>, vector<1x1x32x384xbf16>
    %169 = vector.shape_cast %168 : vector<1x1x32x384xbf16> to vector<32x384xbf16>
    %170 = arith.extf %169 : vector<32x384xbf16> to vector<32x384xf32>
    %171 = vector.broadcast %167 : vector<1x384xf32> to vector<32x384xf32>
    %172 = arith.mulf %171, %170 : vector<32x384xf32>
    %173 = arith.addf %166, %172 : vector<32x384xf32>
    %174 = vector.extract_strided_slice %4 {offsets = [2, 0], sizes = [1, 384], strides = [1, 1]} : vector<3x384xf32> to vector<1x384xf32>
    %c0_133 = arith.constant 0 : index
    %c2_134 = arith.constant 2 : index
    %c0_135 = arith.constant 0 : index
    %c19_136 = arith.constant 19 : index
    %175 = vector.load %arg2[%c0_133, %c2_134, %c0_135, %c19_136] : memref<1x3x32x422xbf16, #tpu.memory_space<vmem>>, vector<1x1x32x384xbf16>
    %176 = vector.shape_cast %175 : vector<1x1x32x384xbf16> to vector<32x384xbf16>
    %177 = arith.extf %176 : vector<32x384xbf16> to vector<32x384xf32>
    %178 = vector.broadcast %174 : vector<1x384xf32> to vector<32x384xf32>
    %179 = arith.mulf %178, %177 : vector<32x384xf32>
    %180 = arith.addf %173, %179 : vector<32x384xf32>
    %181 = arith.truncf %180 : vector<32x384xf32> to vector<32x384xbf16>
    %c0_137 = arith.constant 0 : index
    %c0_138 = arith.constant 0 : index
    %c0_139 = arith.constant 0 : index
    %182 = vector.load %arg8[%c0_137, %c0_138, %c0_139] : memref<1x4x384xf32, #tpu.memory_space<vmem>>, vector<1x4x384xf32>
    %183 = vector.shape_cast %182 : vector<1x4x384xf32> to vector<4x384xf32>
    %c4 = arith.constant 4 : index
    %c0_140 = arith.constant 0 : index
    %c0_141 = arith.constant 0 : index
    %184 = vector.load %arg4[%c4, %c0_140, %c0_141] : memref<9x4x32xbf16, #tpu.memory_space<vmem>>, vector<1x4x32xbf16>
    %185 = vector.shape_cast %184 : vector<1x4x32xbf16> to vector<4x32xbf16>
    %cst_142 = arith.constant dense<0.000000e+00> : vector<4x384xf32>
    %186 = tpu.matmul %185, %181, %cst_142 {dimension_numbers = #tpu.dot_dimension_numbers<[1], [0], [0], [1], [0, 0, 1, 1], [], []>} : vector<4x32xbf16>, vector<32x384xbf16>, vector<4x384xf32> -> vector<4x384xf32>
    %187 = arith.addf %183, %186 : vector<4x384xf32>
    %c0_143 = arith.constant 0 : index
    %c0_144 = arith.constant 0 : index
    %c0_145 = arith.constant 0 : index
    %188 = vector.load %arg8[%c0_143, %c0_144, %c0_145] : memref<1x4x384xf32, #tpu.memory_space<vmem>>, vector<1x4x384xf32>
    %189 = vector.shape_cast %188 : vector<1x4x384xf32> to vector<4x384xf32>
    %190 = vector.shape_cast %187 : vector<4x384xf32> to vector<1x4x384xf32>
    tpu.vector_store %arg8[%c0_143, %c0_144, %c0_145], %190 {strides = array<i32>} : memref<1x4x384xf32, #tpu.memory_space<vmem>>, vector<1x4x384xf32>,
    %c0_146 = arith.constant 0 : index
    %c0_147 = arith.constant 0 : index
    %c0_148 = arith.constant 0 : index
    %191 = vector.load %arg9[%c0_146, %c0_147, %c0_148] : memref<1x4x384xf32, #tpu.memory_space<vmem>>, vector<1x4x384xf32>
    %192 = vector.shape_cast %191 : vector<1x4x384xf32> to vector<4x384xf32>
    %c4_149 = arith.constant 4 : index
    %c0_150 = arith.constant 0 : index
    %c0_151 = arith.constant 0 : index
    %193 = vector.load %arg5[%c4_149, %c0_150, %c0_151] : memref<9x4x32xbf16, #tpu.memory_space<vmem>>, vector<1x4x32xbf16>
    %194 = vector.shape_cast %193 : vector<1x4x32xbf16> to vector<4x32xbf16>
    %cst_152 = arith.constant dense<0.000000e+00> : vector<4x384xf32>
    %195 = tpu.matmul %194, %181, %cst_152 {dimension_numbers = #tpu.dot_dimension_numbers<[1], [0], [0], [1], [0, 0, 1, 1], [], []>} : vector<4x32xbf16>, vector<32x384xbf16>, vector<4x384xf32> -> vector<4x384xf32>
    %196 = arith.addf %192, %195 : vector<4x384xf32>
    %c0_153 = arith.constant 0 : index
    %c0_154 = arith.constant 0 : index
    %c0_155 = arith.constant 0 : index
    %197 = vector.load %arg9[%c0_153, %c0_154, %c0_155] : memref<1x4x384xf32, #tpu.memory_space<vmem>>, vector<1x4x384xf32>
    %198 = vector.shape_cast %197 : vector<1x4x384xf32> to vector<4x384xf32>
    %199 = vector.shape_cast %196 : vector<4x384xf32> to vector<1x4x384xf32>
    tpu.vector_store %arg9[%c0_153, %c0_154, %c0_155], %199 {strides = array<i32>} : memref<1x4x384xf32, #tpu.memory_space<vmem>>, vector<1x4x384xf32>,
    %200 = vector.extract_strided_slice %4 {offsets = [0, 0], sizes = [1, 384], strides = [1, 1]} : vector<3x384xf32> to vector<1x384xf32>
    %c0_156 = arith.constant 0 : index
    %c0_157 = arith.constant 0 : index
    %c0_158 = arith.constant 0 : index
    %c20 = arith.constant 20 : index
    %201 = vector.load %arg2[%c0_156, %c0_157, %c0_158, %c20] : memref<1x3x32x422xbf16, #tpu.memory_space<vmem>>, vector<1x1x32x384xbf16>
    %202 = vector.shape_cast %201 : vector<1x1x32x384xbf16> to vector<32x384xbf16>
    %203 = arith.extf %202 : vector<32x384xbf16> to vector<32x384xf32>
    %204 = vector.broadcast %200 : vector<1x384xf32> to vector<32x384xf32>
    %205 = arith.mulf %204, %203 : vector<32x384xf32>
    %206 = vector.extract_strided_slice %4 {offsets = [1, 0], sizes = [1, 384], strides = [1, 1]} : vector<3x384xf32> to vector<1x384xf32>
    %c0_159 = arith.constant 0 : index
    %c1_160 = arith.constant 1 : index
    %c0_161 = arith.constant 0 : index
    %c20_162 = arith.constant 20 : index
    %207 = vector.load %arg2[%c0_159, %c1_160, %c0_161, %c20_162] : memref<1x3x32x422xbf16, #tpu.memory_space<vmem>>, vector<1x1x32x384xbf16>
    %208 = vector.shape_cast %207 : vector<1x1x32x384xbf16> to vector<32x384xbf16>
    %209 = arith.extf %208 : vector<32x384xbf16> to vector<32x384xf32>
    %210 = vector.broadcast %206 : vector<1x384xf32> to vector<32x384xf32>
    %211 = arith.mulf %210, %209 : vector<32x384xf32>
    %212 = arith.addf %205, %211 : vector<32x384xf32>
    %213 = vector.extract_strided_slice %4 {offsets = [2, 0], sizes = [1, 384], strides = [1, 1]} : vector<3x384xf32> to vector<1x384xf32>
    %c0_163 = arith.constant 0 : index
    %c2_164 = arith.constant 2 : index
    %c0_165 = arith.constant 0 : index
    %c20_166 = arith.constant 20 : index
    %214 = vector.load %arg2[%c0_163, %c2_164, %c0_165, %c20_166] : memref<1x3x32x422xbf16, #tpu.memory_space<vmem>>, vector<1x1x32x384xbf16>
    %215 = vector.shape_cast %214 : vector<1x1x32x384xbf16> to vector<32x384xbf16>
    %216 = arith.extf %215 : vector<32x384xbf16> to vector<32x384xf32>
    %217 = vector.broadcast %213 : vector<1x384xf32> to vector<32x384xf32>
    %218 = arith.mulf %217, %216 : vector<32x384xf32>
    %219 = arith.addf %212, %218 : vector<32x384xf32>
    %220 = arith.truncf %219 : vector<32x384xf32> to vector<32x384xbf16>
    %c0_167 = arith.constant 0 : index
    %c0_168 = arith.constant 0 : index
    %c0_169 = arith.constant 0 : index
    %221 = vector.load %arg8[%c0_167, %c0_168, %c0_169] : memref<1x4x384xf32, #tpu.memory_space<vmem>>, vector<1x4x384xf32>
    %222 = vector.shape_cast %221 : vector<1x4x384xf32> to vector<4x384xf32>
    %c5 = arith.constant 5 : index
    %c0_170 = arith.constant 0 : index
    %c0_171 = arith.constant 0 : index
    %223 = vector.load %arg4[%c5, %c0_170, %c0_171] : memref<9x4x32xbf16, #tpu.memory_space<vmem>>, vector<1x4x32xbf16>
    %224 = vector.shape_cast %223 : vector<1x4x32xbf16> to vector<4x32xbf16>
    %cst_172 = arith.constant dense<0.000000e+00> : vector<4x384xf32>
    %225 = tpu.matmul %224, %220, %cst_172 {dimension_numbers = #tpu.dot_dimension_numbers<[1], [0], [0], [1], [0, 0, 1, 1], [], []>} : vector<4x32xbf16>, vector<32x384xbf16>, vector<4x384xf32> -> vector<4x384xf32>
    %226 = arith.addf %222, %225 : vector<4x384xf32>
    %c0_173 = arith.constant 0 : index
    %c0_174 = arith.constant 0 : index
    %c0_175 = arith.constant 0 : index
    %227 = vector.load %arg8[%c0_173, %c0_174, %c0_175] : memref<1x4x384xf32, #tpu.memory_space<vmem>>, vector<1x4x384xf32>
    %228 = vector.shape_cast %227 : vector<1x4x384xf32> to vector<4x384xf32>
    %229 = vector.shape_cast %226 : vector<4x384xf32> to vector<1x4x384xf32>
    tpu.vector_store %arg8[%c0_173, %c0_174, %c0_175], %229 {strides = array<i32>} : memref<1x4x384xf32, #tpu.memory_space<vmem>>, vector<1x4x384xf32>,
    %c0_176 = arith.constant 0 : index
    %c0_177 = arith.constant 0 : index
    %c0_178 = arith.constant 0 : index
    %230 = vector.load %arg9[%c0_176, %c0_177, %c0_178] : memref<1x4x384xf32, #tpu.memory_space<vmem>>, vector<1x4x384xf32>
    %231 = vector.shape_cast %230 : vector<1x4x384xf32> to vector<4x384xf32>
    %c5_179 = arith.constant 5 : index
    %c0_180 = arith.constant 0 : index
    %c0_181 = arith.constant 0 : index
    %232 = vector.load %arg5[%c5_179, %c0_180, %c0_181] : memref<9x4x32xbf16, #tpu.memory_space<vmem>>, vector<1x4x32xbf16>
    %233 = vector.shape_cast %232 : vector<1x4x32xbf16> to vector<4x32xbf16>
    %cst_182 = arith.constant dense<0.000000e+00> : vector<4x384xf32>
    %234 = tpu.matmul %233, %220, %cst_182 {dimension_numbers = #tpu.dot_dimension_numbers<[1], [0], [0], [1], [0, 0, 1, 1], [], []>} : vector<4x32xbf16>, vector<32x384xbf16>, vector<4x384xf32> -> vector<4x384xf32>
    %235 = arith.addf %231, %234 : vector<4x384xf32>
    %c0_183 = arith.constant 0 : index
    %c0_184 = arith.constant 0 : index
    %c0_185 = arith.constant 0 : index
    %236 = vector.load %arg9[%c0_183, %c0_184, %c0_185] : memref<1x4x384xf32, #tpu.memory_space<vmem>>, vector<1x4x384xf32>
    %237 = vector.shape_cast %236 : vector<1x4x384xf32> to vector<4x384xf32>
    %238 = vector.shape_cast %235 : vector<4x384xf32> to vector<1x4x384xf32>
    tpu.vector_store %arg9[%c0_183, %c0_184, %c0_185], %238 {strides = array<i32>} : memref<1x4x384xf32, #tpu.memory_space<vmem>>, vector<1x4x384xf32>,
    %239 = vector.extract_strided_slice %4 {offsets = [0, 0], sizes = [1, 384], strides = [1, 1]} : vector<3x384xf32> to vector<1x384xf32>
    %c0_186 = arith.constant 0 : index
    %c0_187 = arith.constant 0 : index
    %c0_188 = arith.constant 0 : index
    %c36 = arith.constant 36 : index
    %240 = vector.load %arg2[%c0_186, %c0_187, %c0_188, %c36] : memref<1x3x32x422xbf16, #tpu.memory_space<vmem>>, vector<1x1x32x384xbf16>
    %241 = vector.shape_cast %240 : vector<1x1x32x384xbf16> to vector<32x384xbf16>
    %242 = arith.extf %241 : vector<32x384xbf16> to vector<32x384xf32>
    %243 = vector.broadcast %239 : vector<1x384xf32> to vector<32x384xf32>
    %244 = arith.mulf %243, %242 : vector<32x384xf32>
    %245 = vector.extract_strided_slice %4 {offsets = [1, 0], sizes = [1, 384], strides = [1, 1]} : vector<3x384xf32> to vector<1x384xf32>
    %c0_189 = arith.constant 0 : index
    %c1_190 = arith.constant 1 : index
    %c0_191 = arith.constant 0 : index
    %c36_192 = arith.constant 36 : index
    %246 = vector.load %arg2[%c0_189, %c1_190, %c0_191, %c36_192] : memref<1x3x32x422xbf16, #tpu.memory_space<vmem>>, vector<1x1x32x384xbf16>
    %247 = vector.shape_cast %246 : vector<1x1x32x384xbf16> to vector<32x384xbf16>
    %248 = arith.extf %247 : vector<32x384xbf16> to vector<32x384xf32>
    %249 = vector.broadcast %245 : vector<1x384xf32> to vector<32x384xf32>
    %250 = arith.mulf %249, %248 : vector<32x384xf32>
    %251 = arith.addf %244, %250 : vector<32x384xf32>
    %252 = vector.extract_strided_slice %4 {offsets = [2, 0], sizes = [1, 384], strides = [1, 1]} : vector<3x384xf32> to vector<1x384xf32>
    %c0_193 = arith.constant 0 : index
    %c2_194 = arith.constant 2 : index
    %c0_195 = arith.constant 0 : index
    %c36_196 = arith.constant 36 : index
    %253 = vector.load %arg2[%c0_193, %c2_194, %c0_195, %c36_196] : memref<1x3x32x422xbf16, #tpu.memory_space<vmem>>, vector<1x1x32x384xbf16>
    %254 = vector.shape_cast %253 : vector<1x1x32x384xbf16> to vector<32x384xbf16>
    %255 = arith.extf %254 : vector<32x384xbf16> to vector<32x384xf32>
    %256 = vector.broadcast %252 : vector<1x384xf32> to vector<32x384xf32>
    %257 = arith.mulf %256, %255 : vector<32x384xf32>
    %258 = arith.addf %251, %257 : vector<32x384xf32>
    %259 = arith.truncf %258 : vector<32x384xf32> to vector<32x384xbf16>
    %c0_197 = arith.constant 0 : index
    %c0_198 = arith.constant 0 : index
    %c0_199 = arith.constant 0 : index
    %260 = vector.load %arg8[%c0_197, %c0_198, %c0_199] : memref<1x4x384xf32, #tpu.memory_space<vmem>>, vector<1x4x384xf32>
    %261 = vector.shape_cast %260 : vector<1x4x384xf32> to vector<4x384xf32>
    %c6 = arith.constant 6 : index
    %c0_200 = arith.constant 0 : index
    %c0_201 = arith.constant 0 : index
    %262 = vector.load %arg4[%c6, %c0_200, %c0_201] : memref<9x4x32xbf16, #tpu.memory_space<vmem>>, vector<1x4x32xbf16>
    %263 = vector.shape_cast %262 : vector<1x4x32xbf16> to vector<4x32xbf16>
    %cst_202 = arith.constant dense<0.000000e+00> : vector<4x384xf32>
    %264 = tpu.matmul %263, %259, %cst_202 {dimension_numbers = #tpu.dot_dimension_numbers<[1], [0], [0], [1], [0, 0, 1, 1], [], []>} : vector<4x32xbf16>, vector<32x384xbf16>, vector<4x384xf32> -> vector<4x384xf32>
    %265 = arith.addf %261, %264 : vector<4x384xf32>
    %c0_203 = arith.constant 0 : index
    %c0_204 = arith.constant 0 : index
    %c0_205 = arith.constant 0 : index
    %266 = vector.load %arg8[%c0_203, %c0_204, %c0_205] : memref<1x4x384xf32, #tpu.memory_space<vmem>>, vector<1x4x384xf32>
    %267 = vector.shape_cast %266 : vector<1x4x384xf32> to vector<4x384xf32>
    %268 = vector.shape_cast %265 : vector<4x384xf32> to vector<1x4x384xf32>
    tpu.vector_store %arg8[%c0_203, %c0_204, %c0_205], %268 {strides = array<i32>} : memref<1x4x384xf32, #tpu.memory_space<vmem>>, vector<1x4x384xf32>,
    %c0_206 = arith.constant 0 : index
    %c0_207 = arith.constant 0 : index
    %c0_208 = arith.constant 0 : index
    %269 = vector.load %arg9[%c0_206, %c0_207, %c0_208] : memref<1x4x384xf32, #tpu.memory_space<vmem>>, vector<1x4x384xf32>
    %270 = vector.shape_cast %269 : vector<1x4x384xf32> to vector<4x384xf32>
    %c6_209 = arith.constant 6 : index
    %c0_210 = arith.constant 0 : index
    %c0_211 = arith.constant 0 : index
    %271 = vector.load %arg5[%c6_209, %c0_210, %c0_211] : memref<9x4x32xbf16, #tpu.memory_space<vmem>>, vector<1x4x32xbf16>
    %272 = vector.shape_cast %271 : vector<1x4x32xbf16> to vector<4x32xbf16>
    %cst_212 = arith.constant dense<0.000000e+00> : vector<4x384xf32>
    %273 = tpu.matmul %272, %259, %cst_212 {dimension_numbers = #tpu.dot_dimension_numbers<[1], [0], [0], [1], [0, 0, 1, 1], [], []>} : vector<4x32xbf16>, vector<32x384xbf16>, vector<4x384xf32> -> vector<4x384xf32>
    %274 = arith.addf %270, %273 : vector<4x384xf32>
    %c0_213 = arith.constant 0 : index
    %c0_214 = arith.constant 0 : index
    %c0_215 = arith.constant 0 : index
    %275 = vector.load %arg9[%c0_213, %c0_214, %c0_215] : memref<1x4x384xf32, #tpu.memory_space<vmem>>, vector<1x4x384xf32>
    %276 = vector.shape_cast %275 : vector<1x4x384xf32> to vector<4x384xf32>
    %277 = vector.shape_cast %274 : vector<4x384xf32> to vector<1x4x384xf32>
    tpu.vector_store %arg9[%c0_213, %c0_214, %c0_215], %277 {strides = array<i32>} : memref<1x4x384xf32, #tpu.memory_space<vmem>>, vector<1x4x384xf32>,
    %278 = vector.extract_strided_slice %4 {offsets = [0, 0], sizes = [1, 384], strides = [1, 1]} : vector<3x384xf32> to vector<1x384xf32>
    %c0_216 = arith.constant 0 : index
    %c0_217 = arith.constant 0 : index
    %c0_218 = arith.constant 0 : index
    %c37 = arith.constant 37 : index
    %279 = vector.load %arg2[%c0_216, %c0_217, %c0_218, %c37] : memref<1x3x32x422xbf16, #tpu.memory_space<vmem>>, vector<1x1x32x384xbf16>
    %280 = vector.shape_cast %279 : vector<1x1x32x384xbf16> to vector<32x384xbf16>
    %281 = arith.extf %280 : vector<32x384xbf16> to vector<32x384xf32>
    %282 = vector.broadcast %278 : vector<1x384xf32> to vector<32x384xf32>
    %283 = arith.mulf %282, %281 : vector<32x384xf32>
    %284 = vector.extract_strided_slice %4 {offsets = [1, 0], sizes = [1, 384], strides = [1, 1]} : vector<3x384xf32> to vector<1x384xf32>
    %c0_219 = arith.constant 0 : index
    %c1_220 = arith.constant 1 : index
    %c0_221 = arith.constant 0 : index
    %c37_222 = arith.constant 37 : index
    %285 = vector.load %arg2[%c0_219, %c1_220, %c0_221, %c37_222] : memref<1x3x32x422xbf16, #tpu.memory_space<vmem>>, vector<1x1x32x384xbf16>
    %286 = vector.shape_cast %285 : vector<1x1x32x384xbf16> to vector<32x384xbf16>
    %287 = arith.extf %286 : vector<32x384xbf16> to vector<32x384xf32>
    %288 = vector.broadcast %284 : vector<1x384xf32> to vector<32x384xf32>
    %289 = arith.mulf %288, %287 : vector<32x384xf32>
    %290 = arith.addf %283, %289 : vector<32x384xf32>
    %291 = vector.extract_strided_slice %4 {offsets = [2, 0], sizes = [1, 384], strides = [1, 1]} : vector<3x384xf32> to vector<1x384xf32>
    %c0_223 = arith.constant 0 : index
    %c2_224 = arith.constant 2 : index
    %c0_225 = arith.constant 0 : index
    %c37_226 = arith.constant 37 : index
    %292 = vector.load %arg2[%c0_223, %c2_224, %c0_225, %c37_226] : memref<1x3x32x422xbf16, #tpu.memory_space<vmem>>, vector<1x1x32x384xbf16>
    %293 = vector.shape_cast %292 : vector<1x1x32x384xbf16> to vector<32x384xbf16>
    %294 = arith.extf %293 : vector<32x384xbf16> to vector<32x384xf32>
    %295 = vector.broadcast %291 : vector<1x384xf32> to vector<32x384xf32>
    %296 = arith.mulf %295, %294 : vector<32x384xf32>
    %297 = arith.addf %290, %296 : vector<32x384xf32>
    %298 = arith.truncf %297 : vector<32x384xf32> to vector<32x384xbf16>
    %c0_227 = arith.constant 0 : index
    %c0_228 = arith.constant 0 : index
    %c0_229 = arith.constant 0 : index
    %299 = vector.load %arg8[%c0_227, %c0_228, %c0_229] : memref<1x4x384xf32, #tpu.memory_space<vmem>>, vector<1x4x384xf32>
    %300 = vector.shape_cast %299 : vector<1x4x384xf32> to vector<4x384xf32>
    %c7 = arith.constant 7 : index
    %c0_230 = arith.constant 0 : index
    %c0_231 = arith.constant 0 : index
    %301 = vector.load %arg4[%c7, %c0_230, %c0_231] : memref<9x4x32xbf16, #tpu.memory_space<vmem>>, vector<1x4x32xbf16>
    %302 = vector.shape_cast %301 : vector<1x4x32xbf16> to vector<4x32xbf16>
    %cst_232 = arith.constant dense<0.000000e+00> : vector<4x384xf32>
    %303 = tpu.matmul %302, %298, %cst_232 {dimension_numbers = #tpu.dot_dimension_numbers<[1], [0], [0], [1], [0, 0, 1, 1], [], []>} : vector<4x32xbf16>, vector<32x384xbf16>, vector<4x384xf32> -> vector<4x384xf32>
    %304 = arith.addf %300, %303 : vector<4x384xf32>
    %c0_233 = arith.constant 0 : index
    %c0_234 = arith.constant 0 : index
    %c0_235 = arith.constant 0 : index
    %305 = vector.load %arg8[%c0_233, %c0_234, %c0_235] : memref<1x4x384xf32, #tpu.memory_space<vmem>>, vector<1x4x384xf32>
    %306 = vector.shape_cast %305 : vector<1x4x384xf32> to vector<4x384xf32>
    %307 = vector.shape_cast %304 : vector<4x384xf32> to vector<1x4x384xf32>
    tpu.vector_store %arg8[%c0_233, %c0_234, %c0_235], %307 {strides = array<i32>} : memref<1x4x384xf32, #tpu.memory_space<vmem>>, vector<1x4x384xf32>,
    %c0_236 = arith.constant 0 : index
    %c0_237 = arith.constant 0 : index
    %c0_238 = arith.constant 0 : index
    %308 = vector.load %arg9[%c0_236, %c0_237, %c0_238] : memref<1x4x384xf32, #tpu.memory_space<vmem>>, vector<1x4x384xf32>
    %309 = vector.shape_cast %308 : vector<1x4x384xf32> to vector<4x384xf32>
    %c7_239 = arith.constant 7 : index
    %c0_240 = arith.constant 0 : index
    %c0_241 = arith.constant 0 : index
    %310 = vector.load %arg5[%c7_239, %c0_240, %c0_241] : memref<9x4x32xbf16, #tpu.memory_space<vmem>>, vector<1x4x32xbf16>
    %311 = vector.shape_cast %310 : vector<1x4x32xbf16> to vector<4x32xbf16>
    %cst_242 = arith.constant dense<0.000000e+00> : vector<4x384xf32>
    %312 = tpu.matmul %311, %298, %cst_242 {dimension_numbers = #tpu.dot_dimension_numbers<[1], [0], [0], [1], [0, 0, 1, 1], [], []>} : vector<4x32xbf16>, vector<32x384xbf16>, vector<4x384xf32> -> vector<4x384xf32>
    %313 = arith.addf %309, %312 : vector<4x384xf32>
    %c0_243 = arith.constant 0 : index
    %c0_244 = arith.constant 0 : index
    %c0_245 = arith.constant 0 : index
    %314 = vector.load %arg9[%c0_243, %c0_244, %c0_245] : memref<1x4x384xf32, #tpu.memory_space<vmem>>, vector<1x4x384xf32>
    %315 = vector.shape_cast %314 : vector<1x4x384xf32> to vector<4x384xf32>
    %316 = vector.shape_cast %313 : vector<4x384xf32> to vector<1x4x384xf32>
    tpu.vector_store %arg9[%c0_243, %c0_244, %c0_245], %316 {strides = array<i32>} : memref<1x4x384xf32, #tpu.memory_space<vmem>>, vector<1x4x384xf32>,
    %317 = vector.extract_strided_slice %4 {offsets = [0, 0], sizes = [1, 384], strides = [1, 1]} : vector<3x384xf32> to vector<1x384xf32>
    %c0_246 = arith.constant 0 : index
    %c0_247 = arith.constant 0 : index
    %c0_248 = arith.constant 0 : index
    %c38 = arith.constant 38 : index
    %318 = vector.load %arg2[%c0_246, %c0_247, %c0_248, %c38] : memref<1x3x32x422xbf16, #tpu.memory_space<vmem>>, vector<1x1x32x384xbf16>
    %319 = vector.shape_cast %318 : vector<1x1x32x384xbf16> to vector<32x384xbf16>
    %320 = arith.extf %319 : vector<32x384xbf16> to vector<32x384xf32>
    %321 = vector.broadcast %317 : vector<1x384xf32> to vector<32x384xf32>
    %322 = arith.mulf %321, %320 : vector<32x384xf32>
    %323 = vector.extract_strided_slice %4 {offsets = [1, 0], sizes = [1, 384], strides = [1, 1]} : vector<3x384xf32> to vector<1x384xf32>
    %c0_249 = arith.constant 0 : index
    %c1_250 = arith.constant 1 : index
    %c0_251 = arith.constant 0 : index
    %c38_252 = arith.constant 38 : index
    %324 = vector.load %arg2[%c0_249, %c1_250, %c0_251, %c38_252] : memref<1x3x32x422xbf16, #tpu.memory_space<vmem>>, vector<1x1x32x384xbf16>
    %325 = vector.shape_cast %324 : vector<1x1x32x384xbf16> to vector<32x384xbf16>
    %326 = arith.extf %325 : vector<32x384xbf16> to vector<32x384xf32>
    %327 = vector.broadcast %323 : vector<1x384xf32> to vector<32x384xf32>
    %328 = arith.mulf %327, %326 : vector<32x384xf32>
    %329 = arith.addf %322, %328 : vector<32x384xf32>
    %330 = vector.extract_strided_slice %4 {offsets = [2, 0], sizes = [1, 384], strides = [1, 1]} : vector<3x384xf32> to vector<1x384xf32>
    %c0_253 = arith.constant 0 : index
    %c2_254 = arith.constant 2 : index
    %c0_255 = arith.constant 0 : index
    %c38_256 = arith.constant 38 : index
    %331 = vector.load %arg2[%c0_253, %c2_254, %c0_255, %c38_256] : memref<1x3x32x422xbf16, #tpu.memory_space<vmem>>, vector<1x1x32x384xbf16>
    %332 = vector.shape_cast %331 : vector<1x1x32x384xbf16> to vector<32x384xbf16>
    %333 = arith.extf %332 : vector<32x384xbf16> to vector<32x384xf32>
    %334 = vector.broadcast %330 : vector<1x384xf32> to vector<32x384xf32>
    %335 = arith.mulf %334, %333 : vector<32x384xf32>
    %336 = arith.addf %329, %335 : vector<32x384xf32>
    %337 = arith.truncf %336 : vector<32x384xf32> to vector<32x384xbf16>
    %c0_257 = arith.constant 0 : index
    %c0_258 = arith.constant 0 : index
    %c0_259 = arith.constant 0 : index
    %338 = vector.load %arg8[%c0_257, %c0_258, %c0_259] : memref<1x4x384xf32, #tpu.memory_space<vmem>>, vector<1x4x384xf32>
    %339 = vector.shape_cast %338 : vector<1x4x384xf32> to vector<4x384xf32>
    %c8 = arith.constant 8 : index
    %c0_260 = arith.constant 0 : index
    %c0_261 = arith.constant 0 : index
    %340 = vector.load %arg4[%c8, %c0_260, %c0_261] : memref<9x4x32xbf16, #tpu.memory_space<vmem>>, vector<1x4x32xbf16>
    %341 = vector.shape_cast %340 : vector<1x4x32xbf16> to vector<4x32xbf16>
    %cst_262 = arith.constant dense<0.000000e+00> : vector<4x384xf32>
    %342 = tpu.matmul %341, %337, %cst_262 {dimension_numbers = #tpu.dot_dimension_numbers<[1], [0], [0], [1], [0, 0, 1, 1], [], []>} : vector<4x32xbf16>, vector<32x384xbf16>, vector<4x384xf32> -> vector<4x384xf32>
    %343 = arith.addf %339, %342 : vector<4x384xf32>
    %c0_263 = arith.constant 0 : index
    %c0_264 = arith.constant 0 : index
    %c0_265 = arith.constant 0 : index
    %344 = vector.load %arg8[%c0_263, %c0_264, %c0_265] : memref<1x4x384xf32, #tpu.memory_space<vmem>>, vector<1x4x384xf32>
    %345 = vector.shape_cast %344 : vector<1x4x384xf32> to vector<4x384xf32>
    %346 = vector.shape_cast %343 : vector<4x384xf32> to vector<1x4x384xf32>
    tpu.vector_store %arg8[%c0_263, %c0_264, %c0_265], %346 {strides = array<i32>} : memref<1x4x384xf32, #tpu.memory_space<vmem>>, vector<1x4x384xf32>,
    %c0_266 = arith.constant 0 : index
    %c0_267 = arith.constant 0 : index
    %c0_268 = arith.constant 0 : index
    %347 = vector.load %arg9[%c0_266, %c0_267, %c0_268] : memref<1x4x384xf32, #tpu.memory_space<vmem>>, vector<1x4x384xf32>
    %348 = vector.shape_cast %347 : vector<1x4x384xf32> to vector<4x384xf32>
    %c8_269 = arith.constant 8 : index
    %c0_270 = arith.constant 0 : index
    %c0_271 = arith.constant 0 : index
    %349 = vector.load %arg5[%c8_269, %c0_270, %c0_271] : memref<9x4x32xbf16, #tpu.memory_space<vmem>>, vector<1x4x32xbf16>
    %350 = vector.shape_cast %349 : vector<1x4x32xbf16> to vector<4x32xbf16>
    %cst_272 = arith.constant dense<0.000000e+00> : vector<4x384xf32>
    %351 = tpu.matmul %350, %337, %cst_272 {dimension_numbers = #tpu.dot_dimension_numbers<[1], [0], [0], [1], [0, 0, 1, 1], [], []>} : vector<4x32xbf16>, vector<32x384xbf16>, vector<4x384xf32> -> vector<4x384xf32>
    %352 = arith.addf %348, %351 : vector<4x384xf32>
    %c0_273 = arith.constant 0 : index
    %c0_274 = arith.constant 0 : index
    %c0_275 = arith.constant 0 : index
    %353 = vector.load %arg9[%c0_273, %c0_274, %c0_275] : memref<1x4x384xf32, #tpu.memory_space<vmem>>, vector<1x4x384xf32>
    %354 = vector.shape_cast %353 : vector<1x4x384xf32> to vector<4x384xf32>
    %355 = vector.shape_cast %352 : vector<4x384xf32> to vector<1x4x384xf32>
    tpu.vector_store %arg9[%c0_273, %c0_274, %c0_275], %355 {strides = array<i32>} : memref<1x4x384xf32, #tpu.memory_space<vmem>>, vector<1x4x384xf32>,
    %c0_i32_276 = arith.constant 0 : i32
    %356 = arith.cmpi eq, %arg1, %c0_i32_276 : i32
    %357 = arith.extui %356 : i1 to i32
    %c0_i32_277 = arith.constant 0 : i32
    %358 = arith.cmpi ne, %357, %c0_i32_277 : i32
    scf.if %358 {
      %cst_278 = arith.constant dense<0.000000e+00> : vector<384xf32>
      %359 = vector.multi_reduction <add>, %4, %cst_278 [0] : vector<3x384xf32> to vector<384xf32>
      %360 = vector.shape_cast %359 : vector<384xf32> to vector<1x384xf32>
      %c0_279 = arith.constant 0 : index
      %c0_280 = arith.constant 0 : index
      %c0_281 = arith.constant 0 : index
      %361 = vector.load %arg8[%c0_279, %c0_280, %c0_281] : memref<1x4x384xf32, #tpu.memory_space<vmem>>, vector<1x4x384xf32>
      %362 = vector.shape_cast %361 : vector<1x4x384xf32> to vector<4x384xf32>
      %c0_282 = arith.constant 0 : index
      %c0_283 = arith.constant 0 : index
      %363 = vector.load %arg6[%c0_282, %c0_283] : memref<4x1xf32, #tpu.memory_space<vmem>>, vector<4x1xf32>
      %364 = vector.broadcast %363 : vector<4x1xf32> to vector<4x384xf32>
      %365 = vector.broadcast %360 : vector<1x384xf32> to vector<4x384xf32>
      %366 = arith.mulf %364, %365 : vector<4x384xf32>
      %367 = arith.addf %362, %366 : vector<4x384xf32>
      %c0_284 = arith.constant 0 : index
      %c0_285 = arith.constant 0 : index
      %c0_286 = arith.constant 0 : index
      %368 = vector.load %arg8[%c0_284, %c0_285, %c0_286] : memref<1x4x384xf32, #tpu.memory_space<vmem>>, vector<1x4x384xf32>
      %369 = vector.shape_cast %368 : vector<1x4x384xf32> to vector<4x384xf32>
      %370 = vector.shape_cast %367 : vector<4x384xf32> to vector<1x4x384xf32>
      tpu.vector_store %arg8[%c0_284, %c0_285, %c0_286], %370 {strides = array<i32>} : memref<1x4x384xf32, #tpu.memory_space<vmem>>, vector<1x4x384xf32>,
      %c0_287 = arith.constant 0 : index
      %c0_288 = arith.constant 0 : index
      %c0_289 = arith.constant 0 : index
      %371 = vector.load %arg9[%c0_287, %c0_288, %c0_289] : memref<1x4x384xf32, #tpu.memory_space<vmem>>, vector<1x4x384xf32>
      %372 = vector.shape_cast %371 : vector<1x4x384xf32> to vector<4x384xf32>
      %c0_290 = arith.constant 0 : index
      %c0_291 = arith.constant 0 : index
      %373 = vector.load %arg7[%c0_290, %c0_291] : memref<4x1xf32, #tpu.memory_space<vmem>>, vector<4x1xf32>
      %374 = vector.broadcast %373 : vector<4x1xf32> to vector<4x384xf32>
      %375 = vector.broadcast %360 : vector<1x384xf32> to vector<4x384xf32>
      %376 = arith.mulf %374, %375 : vector<4x384xf32>
      %377 = arith.addf %372, %376 : vector<4x384xf32>
      %c0_292 = arith.constant 0 : index
      %c0_293 = arith.constant 0 : index
      %c0_294 = arith.constant 0 : index
      %378 = vector.load %arg9[%c0_292, %c0_293, %c0_294] : memref<1x4x384xf32, #tpu.memory_space<vmem>>, vector<1x4x384xf32>
      %379 = vector.shape_cast %378 : vector<1x4x384xf32> to vector<4x384xf32>
      %380 = vector.shape_cast %377 : vector<4x384xf32> to vector<1x4x384xf32>
      tpu.vector_store %arg9[%c0_292, %c0_293, %c0_294], %380 {strides = array<i32>} : memref<1x4x384xf32, #tpu.memory_space<vmem>>, vector<1x4x384xf32>,
    } else {
    }
    return
  }
  func.func @transform_0(%arg0: i32, %arg1: i32) -> (i32, i32, i32, i32) {
    %c0_i32 = arith.constant 0 : i32
    %c0_i32_0 = arith.constant 0 : i32
    %c0_i32_1 = arith.constant 0 : i32
    return %arg0, %c0_i32, %arg1, %c0_i32_0 : i32, i32, i32, i32
  }
  func.func @transform_1(%arg0: i32, %arg1: i32) -> (i32, i32, i32) {
    %c0_i32 = arith.constant 0 : i32
    %c0_i32_0 = arith.constant 0 : i32
    %c0_i32_1 = arith.constant 0 : i32
    return %arg0, %c0_i32, %c0_i32_0 : i32, i32, i32
  }
  func.func @transform_2(%arg0: i32, %arg1: i32) -> (i32, i32, i32) {
    %c0_i32 = arith.constant 0 : i32
    %c0_i32_0 = arith.constant 0 : i32
    %c0_i32_1 = arith.constant 0 : i32
    return %c0_i32, %c0_i32_0, %arg1 : i32, i32, i32
  }
  func.func @transform_3(%arg0: i32, %arg1: i32) -> (i32, i32, i32) {
    %c0_i32 = arith.constant 0 : i32
    %c0_i32_0 = arith.constant 0 : i32
    %c0_i32_1 = arith.constant 0 : i32
    return %c0_i32, %c0_i32_0, %arg1 : i32, i32, i32
  }
  func.func @transform_4(%arg0: i32, %arg1: i32) -> (i32, i32) {
    %c0_i32 = arith.constant 0 : i32
    %c0_i32_0 = arith.constant 0 : i32
    %c0_i32_1 = arith.constant 0 : i32
    return %c0_i32, %c0_i32_0 : i32, i32
  }
  func.func @transform_5(%arg0: i32, %arg1: i32) -> (i32, i32) {
    %c0_i32 = arith.constant 0 : i32
    %c0_i32_0 = arith.constant 0 : i32
    %c0_i32_1 = arith.constant 0 : i32
    return %c0_i32, %c0_i32_0 : i32, i32
  }
  func.func @transform_6(%arg0: i32, %arg1: i32) -> (i32, i32, i32) {
    %c0_i32 = arith.constant 0 : i32
    %c0_i32_0 = arith.constant 0 : i32
    %c0_i32_1 = arith.constant 0 : i32
    return %arg0, %c0_i32, %c0_i32_0 : i32, i32, i32
  }
  func.func @transform_7(%arg0: i32, %arg1: i32) -> (i32, i32, i32) {
    %c0_i32 = arith.constant 0 : i32
    %c0_i32_0 = arith.constant 0 : i32
    %c0_i32_1 = arith.constant 0 : i32
    return %arg0, %c0_i32, %c0_i32_0 : i32, i32, i32
  }
}

module attributes {stable_mosaic.version = 11 : i64} {
  func.func @bn_stats_kernel(%arg0: i32, %arg1: i32, %arg2: memref<1x4x384xf32, #tpu.memory_space<vmem>>, %arg3: memref<1x4x1xf32, #tpu.memory_space<vmem>>, %arg4: memref<1x4x1xf32, #tpu.memory_space<vmem>>) attributes {dimension_semantics = [#tpu.dimension_semantics<parallel>, #tpu.dimension_semantics<arbitrary>], iteration_bounds = array<i64: 1, 2>, scalar_prefetch = 0 : i64, scratch_operands = 0 : i64, tpu.core_type = #tpu.core_type<tc>, window_params = [{transform_indices = @transform_0, window_bounds = array<i64: 1, 4, 384>}, {transform_indices = @transform_1, window_bounds = array<i64: 1, 4, 1>}, {transform_indices = @transform_2, window_bounds = array<i64: 1, 4, 1>}]} {
    %c0_i32 = arith.constant 0 : i32
    %0 = arith.cmpi eq, %arg1, %c0_i32 : i32
    %1 = arith.extui %0 : i1 to i32
    %c0_i32_0 = arith.constant 0 : i32
    %2 = arith.cmpi ne, %1, %c0_i32_0 : i32
    scf.if %2 {
      %cst_16 = arith.constant 0.000000e+00 : f32
      %22 = vector.broadcast %cst_16 : f32 to vector<1x4x1xf32>
      %c0_17 = arith.constant 0 : index
      %c0_18 = arith.constant 0 : index
      %c0_19 = arith.constant 0 : index
      %23 = vector.load %arg3[%c0_17, %c0_18, %c0_19] : memref<1x4x1xf32, #tpu.memory_space<vmem>>, vector<1x4x1xf32>
      tpu.vector_store %arg3[%c0_17, %c0_18, %c0_19], %22 {strides = array<i32>} : memref<1x4x1xf32, #tpu.memory_space<vmem>>, vector<1x4x1xf32>,
      %cst_20 = arith.constant 0.000000e+00 : f32
      %24 = vector.broadcast %cst_20 : f32 to vector<1x4x1xf32>
      %c0_21 = arith.constant 0 : index
      %c0_22 = arith.constant 0 : index
      %c0_23 = arith.constant 0 : index
      %25 = vector.load %arg4[%c0_21, %c0_22, %c0_23] : memref<1x4x1xf32, #tpu.memory_space<vmem>>, vector<1x4x1xf32>
      tpu.vector_store %arg4[%c0_21, %c0_22, %c0_23], %24 {strides = array<i32>} : memref<1x4x1xf32, #tpu.memory_space<vmem>>, vector<1x4x1xf32>,
    } else {
    }
    %c0 = arith.constant 0 : index
    %c0_1 = arith.constant 0 : index
    %c0_2 = arith.constant 0 : index
    %3 = vector.load %arg2[%c0, %c0_1, %c0_2] : memref<1x4x384xf32, #tpu.memory_space<vmem>>, vector<1x4x384xf32>
    %4 = vector.shape_cast %3 : vector<1x4x384xf32> to vector<4x384xf32>
    %c0_3 = arith.constant 0 : index
    %c0_4 = arith.constant 0 : index
    %c0_5 = arith.constant 0 : index
    %5 = vector.load %arg3[%c0_3, %c0_4, %c0_5] : memref<1x4x1xf32, #tpu.memory_space<vmem>>, vector<1x4x1xf32>
    %6 = vector.shape_cast %5 : vector<1x4x1xf32> to vector<4x1xf32>
    %cst = arith.constant dense<0.000000e+00> : vector<4xf32>
    %7 = vector.multi_reduction <add>, %4, %cst [1] : vector<4x384xf32> to vector<4xf32>
    %8 = vector.shape_cast %7 : vector<4xf32> to vector<4x1xf32>
    %9 = arith.addf %6, %8 : vector<4x1xf32>
    %c0_6 = arith.constant 0 : index
    %c0_7 = arith.constant 0 : index
    %c0_8 = arith.constant 0 : index
    %10 = vector.load %arg3[%c0_6, %c0_7, %c0_8] : memref<1x4x1xf32, #tpu.memory_space<vmem>>, vector<1x4x1xf32>
    %11 = vector.shape_cast %10 : vector<1x4x1xf32> to vector<4x1xf32>
    %12 = vector.shape_cast %9 : vector<4x1xf32> to vector<1x4x1xf32>
    tpu.vector_store %arg3[%c0_6, %c0_7, %c0_8], %12 {strides = array<i32>} : memref<1x4x1xf32, #tpu.memory_space<vmem>>, vector<1x4x1xf32>,
    %c0_9 = arith.constant 0 : index
    %c0_10 = arith.constant 0 : index
    %c0_11 = arith.constant 0 : index
    %13 = vector.load %arg4[%c0_9, %c0_10, %c0_11] : memref<1x4x1xf32, #tpu.memory_space<vmem>>, vector<1x4x1xf32>
    %14 = vector.shape_cast %13 : vector<1x4x1xf32> to vector<4x1xf32>
    %15 = arith.mulf %4, %4 : vector<4x384xf32>
    %cst_12 = arith.constant dense<0.000000e+00> : vector<4xf32>
    %16 = vector.multi_reduction <add>, %15, %cst_12 [1] : vector<4x384xf32> to vector<4xf32>
    %17 = vector.shape_cast %16 : vector<4xf32> to vector<4x1xf32>
    %18 = arith.addf %14, %17 : vector<4x1xf32>
    %c0_13 = arith.constant 0 : index
    %c0_14 = arith.constant 0 : index
    %c0_15 = arith.constant 0 : index
    %19 = vector.load %arg4[%c0_13, %c0_14, %c0_15] : memref<1x4x1xf32, #tpu.memory_space<vmem>>, vector<1x4x1xf32>
    %20 = vector.shape_cast %19 : vector<1x4x1xf32> to vector<4x1xf32>
    %21 = vector.shape_cast %18 : vector<4x1xf32> to vector<1x4x1xf32>
    tpu.vector_store %arg4[%c0_13, %c0_14, %c0_15], %21 {strides = array<i32>} : memref<1x4x1xf32, #tpu.memory_space<vmem>>, vector<1x4x1xf32>,
    return
  }
  func.func @transform_0(%arg0: i32, %arg1: i32) -> (i32, i32, i32) {
    %c0_i32 = arith.constant 0 : i32
    %c0_i32_0 = arith.constant 0 : i32
    return %arg1, %c0_i32, %arg0 : i32, i32, i32
  }
  func.func @transform_1(%arg0: i32, %arg1: i32) -> (i32, i32, i32) {
    %c0_i32 = arith.constant 0 : i32
    %c0_i32_0 = arith.constant 0 : i32
    %c0_i32_1 = arith.constant 0 : i32
    return %arg0, %c0_i32, %c0_i32_0 : i32, i32, i32
  }
  func.func @transform_2(%arg0: i32, %arg1: i32) -> (i32, i32, i32) {
    %c0_i32 = arith.constant 0 : i32
    %c0_i32_0 = arith.constant 0 : i32
    %c0_i32_1 = arith.constant 0 : i32
    return %arg0, %c0_i32, %c0_i32_0 : i32, i32, i32
  }
}

module attributes {stable_mosaic.version = 11 : i64} {
  func.func @se_fuse_kernel(%arg0: i32, %arg1: i32, %arg2: memref<1x4x384xf32, #tpu.memory_space<vmem>>, %arg3: memref<1x4x384xf32, #tpu.memory_space<vmem>>, %arg4: memref<1x4x384xf32, #tpu.memory_space<vmem>>, %arg5: memref<4x1xf32, #tpu.memory_space<vmem>>, %arg6: memref<4x1xf32, #tpu.memory_space<vmem>>, %arg7: memref<1x4x384xf32, #tpu.memory_space<vmem>>) attributes {dimension_semantics = [#tpu.dimension_semantics<parallel>, #tpu.dimension_semantics<parallel>], iteration_bounds = array<i64: 1, 2>, scalar_prefetch = 0 : i64, scratch_operands = 0 : i64, tpu.core_type = #tpu.core_type<tc>, window_params = [{transform_indices = @transform_0, window_bounds = array<i64: 1, 4, 384>}, {transform_indices = @transform_1, window_bounds = array<i64: 1, 4, 384>}, {transform_indices = @transform_2, window_bounds = array<i64: 1, 4, 384>}, {pipeline_mode = #tpu.pipeline_mode<synchronous>, transform_indices = @transform_3, window_bounds = array<i64: 4, 1>}, {pipeline_mode = #tpu.pipeline_mode<synchronous>, transform_indices = @transform_4, window_bounds = array<i64: 4, 1>}, {transform_indices = @transform_5, window_bounds = array<i64: 1, 4, 384>}]} {
    %c0 = arith.constant 0 : index
    %c0_0 = arith.constant 0 : index
    %c0_1 = arith.constant 0 : index
    %0 = vector.load %arg2[%c0, %c0_0, %c0_1] : memref<1x4x384xf32, #tpu.memory_space<vmem>>, vector<1x4x384xf32>
    %1 = vector.shape_cast %0 : vector<1x4x384xf32> to vector<4x384xf32>
    %c0_2 = arith.constant 0 : index
    %c0_3 = arith.constant 0 : index
    %2 = vector.load %arg5[%c0_2, %c0_3] : memref<4x1xf32, #tpu.memory_space<vmem>>, vector<4x1xf32>
    %3 = vector.broadcast %2 : vector<4x1xf32> to vector<4x384xf32>
    %4 = arith.subf %1, %3 : vector<4x384xf32>
    %c0_4 = arith.constant 0 : index
    %c0_5 = arith.constant 0 : index
    %5 = vector.load %arg6[%c0_4, %c0_5] : memref<4x1xf32, #tpu.memory_space<vmem>>, vector<4x1xf32>
    %6 = vector.broadcast %5 : vector<4x1xf32> to vector<4x384xf32>
    %7 = arith.mulf %4, %6 : vector<4x384xf32>
    %c0_6 = arith.constant 0 : index
    %c0_7 = arith.constant 0 : index
    %c0_8 = arith.constant 0 : index
    %8 = vector.load %arg3[%c0_6, %c0_7, %c0_8] : memref<1x4x384xf32, #tpu.memory_space<vmem>>, vector<1x4x384xf32>
    %9 = vector.shape_cast %8 : vector<1x4x384xf32> to vector<4x384xf32>
    %cst = arith.constant 1.000000e+00 : f32
    %10 = vector.broadcast %cst : f32 to vector<4x384xf32>
    %11 = arith.addf %9, %10 : vector<4x384xf32>
    %12 = arith.mulf %11, %7 : vector<4x384xf32>
    %c0_9 = arith.constant 0 : index
    %c0_10 = arith.constant 0 : index
    %c0_11 = arith.constant 0 : index
    %13 = vector.load %arg4[%c0_9, %c0_10, %c0_11] : memref<1x4x384xf32, #tpu.memory_space<vmem>>, vector<1x4x384xf32>
    %14 = vector.shape_cast %13 : vector<1x4x384xf32> to vector<4x384xf32>
    %15 = arith.addf %12, %14 : vector<4x384xf32>
    %c0_12 = arith.constant 0 : index
    %c0_13 = arith.constant 0 : index
    %c0_14 = arith.constant 0 : index
    %16 = vector.load %arg7[%c0_12, %c0_13, %c0_14] : memref<1x4x384xf32, #tpu.memory_space<vmem>>, vector<1x4x384xf32>
    %17 = vector.shape_cast %16 : vector<1x4x384xf32> to vector<4x384xf32>
    %18 = vector.shape_cast %15 : vector<4x384xf32> to vector<1x4x384xf32>
    tpu.vector_store %arg7[%c0_12, %c0_13, %c0_14], %18 {strides = array<i32>} : memref<1x4x384xf32, #tpu.memory_space<vmem>>, vector<1x4x384xf32>,
    return
  }
  func.func @transform_0(%arg0: i32, %arg1: i32) -> (i32, i32, i32) {
    %c0_i32 = arith.constant 0 : i32
    %c0_i32_0 = arith.constant 0 : i32
    return %arg1, %c0_i32, %arg0 : i32, i32, i32
  }
  func.func @transform_1(%arg0: i32, %arg1: i32) -> (i32, i32, i32) {
    %c0_i32 = arith.constant 0 : i32
    %c0_i32_0 = arith.constant 0 : i32
    return %arg1, %c0_i32, %arg0 : i32, i32, i32
  }
  func.func @transform_2(%arg0: i32, %arg1: i32) -> (i32, i32, i32) {
    %c0_i32 = arith.constant 0 : i32
    %c0_i32_0 = arith.constant 0 : i32
    return %arg1, %c0_i32, %arg0 : i32, i32, i32
  }
  func.func @transform_3(%arg0: i32, %arg1: i32) -> (i32, i32) {
    %c0_i32 = arith.constant 0 : i32
    %c0_i32_0 = arith.constant 0 : i32
    %c0_i32_1 = arith.constant 0 : i32
    return %c0_i32, %c0_i32_0 : i32, i32
  }
  func.func @transform_4(%arg0: i32, %arg1: i32) -> (i32, i32) {
    %c0_i32 = arith.constant 0 : i32
    %c0_i32_0 = arith.constant 0 : i32
    %c0_i32_1 = arith.constant 0 : i32
    return %c0_i32, %c0_i32_0 : i32, i32
  }
  func.func @transform_5(%arg0: i32, %arg1: i32) -> (i32, i32, i32) {
    %c0_i32 = arith.constant 0 : i32
    %c0_i32_0 = arith.constant 0 : i32
    return %arg1, %c0_i32, %arg0 : i32, i32, i32
  }
}

</mosaic_0001>

<bundles_post_ra>
// kernel: senorm2d_forward.4
= control target key start
LH: loop header
LB: loop body
LE: loop exit
PB: predicated region body
PF: predicated region fallthrough
CT: control target
= control target key end

     0   :  { %s390_s9 = smov 0   ;;  %s392_s10 = smov 0   ;;  %s438_s0 = inlined_call_operand.vmem [shape: f32[2,4,384], index: 0, kind: input, shape index: {}]   ;;  %s439_s1 = inlined_call_operand.vmem [shape: f32[1,4,1], index: 1, kind: output, shape index: {0}]   ;;  %s440_s2 = inlined_call_operand.vmem [shape: f32[1,4,1], index: 2, kind: output, shape index: {1}]  }
   0x1   :  { %s394_s11 = smov 0  }
   0x2 LB: > { %s22_s12 = sadd.s32 1, %s368_s10  ;;  %p316_p0 = scmp.ge.s32.totalorder %s372_s11, 1  ;;  %s372_s11 = sphi %s394_s11, %s13_s11   ;;  %s368_s10 = sphi %s392_s10, %s442_s10   ;;  %s364_s9 = sphi %s390_s9, %s441_s9  }
   0x3   : > { %p23_p1 = scmp.ge.s32.totalorder %s22_s12, 2  ;;  %p134_p2 = scmp.lt.s32.totalorder %s372_s11, 3 }
   0x5   : > { %s444_s12 = smov (%p23_p1, %s22_s12), 0  ;;  %p135_p3 = pnand %p316_p0, %p134_p2 }
   0x6   : > { %p164_p4 = scmp.lt.s32.totalorder (!%p135_p3), %s364_s9, 1  ;;  %p318_p5 = scmp.ne.s32.totalorder (!%p135_p3), %s364_s9, 0 }
   0x7   : > { %138 = sbr.rel (%p135_p3) target bundleno = 173 (0xad), region = 24 }
   0xc   : > { %s165_s13 = scalar_select %p164_p4, %s364_s9, 1 }
   0xd   : > { %184 = sbr.rel (%p318_p5) target bundleno = 20 (0x14), region = 28 }
   0xe   : > { %s323_s14 = smul.u32 12, %s165_s13 }
  0x10   : > { %s171_s17 = scalar_lea.vmem %s438_s0, %s323_s14 }
  0x12   : > { %vm185_vm0 = vcmask 3072   ;;  %v374_v0 = vmov 0.0  }
  0x13   : > { %186 = vst.msk [vmem:[%s439_s1] sm:$0xf] %vm185_vm0, %v374_v0  ;;  %187 = vst.msk [vmem:[%s440_s2] sm:$0xf] %vm185_vm0, %v374_v0 }
  0x14 PF: > { %v188_v1 = vld [vmem:[%s171_s17] sm:$0xff]  ;;  %v189_v2 = vld [vmem:[%s171_s17 + $0x8] sm:$0xf]  ;;  %vm194_vm1 = vcmask 1043456   ;;  %vm203_vm2 = vcmask 3072  }
  0x15   : > { %v192_v3 = vcombine.high %v188_v1, %v188_v1  ;;  %v195_v4 = vsel %vm194_vm1, %v188_v1, 0.0  ;;  %v207_v5 = vmul.f32 %v189_v2, %v189_v2  ;;  %v206_v6 = vmul.f32 %v188_v1, %v188_v1 }
  0x16   : > { %v198_v8 = vsel %vm194_vm1, %v189_v2, 0.0 }
  0x17   : > { %v196_v7 = vsel %vm194_vm1, %v192_v3, 0.0  ;;  %v209_v10 = vcombine.high %v206_v6, %v206_v6  ;;  %v211_v11 = vsel %vm194_vm1, %v206_v6, 0.0  ;;  %v214_v14 = vsel %vm194_vm1, %v207_v5, 0.0 }
  0x18   : > { %v197_v9 = vadd.f32 %v196_v7, %v195_v4 }
  0x19   : > { %v212_v13 = vsel %vm194_vm1, %v209_v10, 0.0 }
  0x1a   : > { %v199_v12 = vadd.f32 %v198_v8, %v197_v9  ;;  %v213_v15 = vadd.f32 %v212_v13, %v211_v11  ;;  %v190_v17 = vld [vmem:[%s439_s1] sm:$0xf] }
  0x1b   : > { %v205_v20 = vld [vmem:[%s440_s2] sm:$0xf] }
  0x1c   : > { %200 = vadd.xlane.f32.xlu0 %v199_v12  ;;  %v215_v16 = vadd.f32 %v214_v14, %v213_v15 }
  0x20   : > { %216 = vadd.xlane.f32.xlu0 %v215_v16 }
  0xa5   : > { %v201_v18 = vpop.xlane.xlu0 %200 }
  0xa6   : > { %v202_v19 = vadd.f32 %v201_v18, %v190_v17 }
  0xa8   : > { %204 = vst.msk [vmem:[%s439_s1] sm:$0xf] %vm203_vm2, %v202_v19 }
  0xa9   : > { %v217_v21 = vpop.xlane.xlu0 %216 }
  0xaa   : > { %v218_v22 = vadd.f32 %v217_v21, %v205_v20 }
  0xac   : > { %219 = vst.msk [vmem:[%s440_s2] sm:$0xf] %vm203_vm2, %v218_v22 }
  0xad PF: > { %s13_s11 = sadd.s32 1, %s372_s11   ;;  %s441_s9 = smov %s368_s10 }
  0xae   : > { %p10_p6 = scmp.ge.s32.totalorder %s13_s11, 4   ;;  %s442_s10 = smov %s444_s12 }
  0xb0   :  { %12 = sbr.rel (!%p10_p6) target bundleno = 2 (0x2), region = 70 }

// kernel: senorm2d_forward.5
= control target key start
LH: loop header
LB: loop body
LE: loop exit
PB: predicated region body
PF: predicated region fallthrough
CT: control target
= control target key end

     0   :  { %s598_s18 = smov 0   ;;  %s600_s19 = smov 0   ;;  %s643_s0 = inlined_call_operand.vmem [shape: f32[2,4,384], index: 0, kind: input, shape index: {}]   ;;  %s644_s1 = inlined_call_operand.vmem [shape: f32[2,4,384], index: 1, kind: input, shape index: {}]   ;;  %s645_s2 = inlined_call_operand.vmem [shape: f32[2,4,384], index: 2, kind: input, shape index: {}]   ;;  %s646_s3 = inlined_call_operand.vmem [shape: f32[4,1], index: 3, kind: input, shape index: {}]   ;;  %s647_s4 = inlined_call_operand.vmem [shape: f32[4,1], index: 4, kind: input, shape index: {}]   ;;  %s648_s5 = inlined_call_operand.vmem [shape: f32[2,4,384], index: 5, kind: output, shape index: {}]  }
   0x1   :  { %s602_s20 = smov 0  }
   0x2 LB: > { %s24_s21 = sadd.s32 1, %s560_s19  ;;  %p507_p0 = scmp.ge.s32.totalorder %s564_s20, 1  ;;  %s564_s20 = sphi %s602_s20, %s15_s20   ;;  %s560_s19 = sphi %s600_s19, %s650_s19   ;;  %s556_s18 = sphi %s598_s18, %s649_s18  }
   0x3   : > { %p25_p1 = scmp.ge.s32.totalorder %s24_s21, 2  ;;  %p242_p2 = scmp.lt.s32.totalorder %s564_s20, 3 }
   0x5   : > { %s652_s21 = smov (%p25_p1, %s24_s21), 0  ;;  %p243_p3 = pnand %p507_p0, %p242_p2 }
   0x6   : > { %p297_p4 = scmp.lt.s32.totalorder (!%p243_p3), %s556_s18, 1 }
   0x7   : > { %246 = sbr.rel (%p243_p3) target bundleno = 151 (0x97), region = 40 }
   0xc   : > { %v338_v0 = vld [vmem:[%s646_s3] sm:$0xf]  ;;  %v566_v1 = vmov 0   ;;  %v567_v3 = vmov 839922192   ;;  %v346_v5 = vlaneseq  ;;  %s654_s18 = smov (!%p297_p4, %s556_s18), 1 }
   0xd   : > { %541 = vset.pattern.permute.xlu0 %v566_v1  ;;  %v353_v2 = vld [vmem:[%s647_s4] sm:$0xf]  ;;  %v344_v4 = vunpack.c.l.s4 %v567_v3  ;;  %s514_s26 = smul.u32 12, %s654_s18 }
   0xe   : > { %341 = vperm.xlu0 %541, %v338_v0   ;;  %v347_v7 = vshrl.u32 %v346_v5, 7 }
   0xf   : > { %v345_v6 = vunpack.c.0.s8 %v344_v4  ;;  %s314_s29 = scalar_lea.vmem %s644_s1, %s514_s26  ;;  %s304_s7 = scalar_lea.vmem %s643_s0, %s514_s26 }
  0x10   : > { %v368_v11 = vld [vmem:[%s314_s29] sm:$0xff]  ;;  %v337_v13 = vld [vmem:[%s304_s7 + $0x8] sm:$0xf]  ;;  %s324_s10 = scalar_lea.vmem %s645_s2, %s514_s26  ;;  %s334_s13 = scalar_lea.vmem %s648_s5, %s514_s26 }
  0x11   : > { %v348_v8 = vsub.s32 %v345_v6, %v347_v7  ;;  %v336_v12 = vld [vmem:[%s304_s7] sm:$0xff]  ;;  %v369_v14 = vld [vmem:[%s314_s29 + $0x8] sm:$0xf]  ;;  %v370_v16 = vadd.f32 1.0, %v368_v11 }
  0x12   : > { %356 = vperm.xlu0 %541, %v353_v2   ;;  %v371_v20 = vadd.f32 1.0, %v369_v14  ;;  %v374_v23 = vld [vmem:[%s324_s10] sm:$0xff]  ;;  %v375_v24 = vld [vmem:[%s324_s10 + $0x8] sm:$0xf] }
  0x89   : > { %v342_v9 = vpop.permute.xlu0 %341 }
  0x8a   : > { %v349_v10 = vrot.slane %v342_v9, %v348_v8 }
  0x8c   : > { %v351_v17 = vsub.f32 %v336_v12, %v349_v10  ;;  %v352_v18 = vsub.f32 %v337_v13, %v349_v10 }
  0x8d   : > { %v357_v15 = vpop.permute.xlu0 %356 }
  0x8e   : > { %v364_v19 = vrot.slane %v357_v15, %v348_v8 }
  0x90   : > { %v366_v21 = vmul.f32 %v364_v19, %v351_v17  ;;  %v367_v22 = vmul.f32 %v364_v19, %v352_v18 }
  0x92   : > { %v372_v25 = vmul.f32 %v370_v16, %v366_v21  ;;  %v373_v26 = vmul.f32 %v371_v20, %v367_v22 }
  0x94   : > { %v376_v27 = vadd.f32 %v374_v23, %v372_v25  ;;  %v377_v28 = vadd.f32 %v375_v24, %v373_v26 }
  0x96   : > { %378 = vst [vmem:[%s334_s13] sm:$0xff] %v376_v27  ;;  %379 = vst [vmem:[%s334_s13 + $0x8] sm:$0xf] %v377_v28 }
  0x97 PF: > { %s15_s20 = sadd.s32 1, %s564_s20   ;;  %s649_s18 = smov %s560_s19 }
  0x98   : > { %p12_p5 = scmp.ge.s32.totalorder %s15_s20, 4   ;;  %s650_s19 = smov %s652_s21 }
  0x9a   :  { %14 = sbr.rel (!%p12_p5) target bundleno = 2 (0x2), region = 76 }

// kernel: senorm2d_forward.3
= control target key start
LH: loop header
LB: loop body
LE: loop exit
PB: predicated region body
PF: predicated region fallthrough
CT: control target
= control target key end

     0   :  { %s6866_s24 = smov 0   ;;  %s6868_s25 = smov 0   ;;  %s9871_s0 = inlined_call_operand.vmem [shape: bf16[2,3,32,422], index: 0, kind: input, shape index: {}]   ;;  %s9872_s1 = inlined_call_operand.vmem [shape: f32[2,3,384], index: 1, kind: input, shape index: {}]   ;;  %s9873_s2 = inlined_call_operand.vmem [shape: bf16[9,4,32], index: 2, kind: input, shape index: {}]   ;;  %s9874_s3 = inlined_call_operand.vmem [shape: bf16[9,4,32], index: 3, kind: input, shape index: {}]   ;;  %s9875_s4 = inlined_call_operand.vmem [shape: f32[4,1], index: 4, kind: input, shape index: {}]   ;;  %s9876_s5 = inlined_call_operand.vmem [shape: f32[4,1], index: 5, kind: input, shape index: {}]   ;;  %s9877_s6 = inlined_call_operand.vmem [shape: f32[2,4,384], index: 6, kind: output, shape index: {0}]   ;;  %s9878_s7 = inlined_call_operand.vmem [shape: f32[2,4,384], index: 7, kind: output, shape index: {1}]  }
   0x1   :  { %s6870_s26 = smov 0  }
   0x2 LB: > { %s30_s27 = sadd.s32 1, %s6809_s25  ;;  %p5385_p0 = scmp.ge.s32.totalorder %s6813_s26, 1  ;;  %s6813_s26 = sphi %s6870_s26, %s18_s26   ;;  %s6809_s25 = sphi %s6868_s25, %s10241_s25   ;;  %s6805_s24 = sphi %s6866_s24, %s10240_s24  }
   0x3   : > { %p32_p1 = scmp.ge.s32.totalorder %s30_s27, 2  ;;  %p288_p2 = scmp.lt.s32.totalorder %s6813_s26, 3 }
   0x5   : > { %s10243_s27 = smov (%p32_p1, %s30_s27), 0  ;;  %p289_p3 = pnand %p5385_p0, %p288_p2 }
   0x7   : > { %292 = sbr.rel (%p289_p3) target bundleno = 752 (0x2f0), region = 44 }
   0xc   : > { %p344_p4 = scmp.lt.s32.totalorder %s6805_s24, 1  ;;  %v410_v0 = vlaneseq  ;;  %s6815_s9 = smov 127   ;;  %vm6817_vm0 = vmmov 0   ;;  %vm602_vm1 = vcmask 261120   ;;  %vm862_vm2 = vcmask 1039360  }
   0xd   : > { %s6819_s14 = smov 126   ;;  %s6820_s19 = smov 110   ;;  %vm1409_vm3 = vcmask 1031168   ;;  %vm1956_vm4 = vcmask 900096   ;;  %vm2503_vm5 = vcmask 891904   ;;  %vm3050_vm6 = vcmask 883712  }
   0xe   : > { %s10245_s24 = smov (!%p344_p4, %s6805_s24), 1  ;;  %v6905_v21 = vshrl.u32 %v410_v0, 7  ;;  %s6821_s20 = smov 109   ;;  %vm3597_vm7 = vcmask 752640   ;;  %vm4144_vm8 = vcmask 744448   ;;  %vm4691_vm9 = vcmask 736256  }
   0xf   : > { %s5786_s28 = smul.u32 192, %s10245_s24  ;;  %s6823_s12 = smov 92   ;;  %vm5171_vm10 = vcmask 1042432  }
  0x10   : > { %v6920_v37 = vsub.s32 0, %v6905_v21  ;;  %v416_v38 = vsub.s32 4, %v6905_v21  ;;  %s6934_s10 = smul.u32 12, %s10245_s24  ;;  %s6824_s18 = smov 91  }
  0x11   : > { %s6890_s8 = scalar_lea.vmem %s9871_s0, %s5786_s28  ;;  %s6822_s28 = smov 108  }
  0x12   : > { %v792_v1 = vld [vmem:[%s6890_s8 + $0x10] sm:$0xff]  ;;  %v790_v2 = vld [vmem:[%s6890_s8] sm:$0xff]  ;;  %v793_v3 = vld [vmem:[%s6890_s8 + $0x18] sm:$0xff]  ;;  %s6959_s13 = scalar_lea.vmem %s9872_s1, %s6934_s10  ;;  %s6825_s23 = smov 90  }
  0x13   : > { %v802_v4 = vunpack.c.l.bf16 %v792_v1  ;;  %v803_v5 = vunpack.c.h.bf16 %v792_v1  ;;  %v798_v6 = vunpack.c.l.bf16 %v790_v2  ;;  %v799_v7 = vunpack.c.h.bf16 %v790_v2  ;;  %v791_v8 = vld [vmem:[%s6890_s8 + $0x8] sm:$0xff]  ;;  %v794_v10 = vld [vmem:[%s6890_s8 + $0x20] sm:$0xff]  ;;  %v797_v15 = vld [vmem:[%s6890_s8 + $0x38] sm:$0xff]  ;;  %s9295_s11 = scalar_lea.vmem %s9877_s6, %s6934_s10  ;;  %s9303_s15 = scalar_lea.vmem %s9878_s7, %s6934_s10 }
  0x14   : > { %v795_v9 = vld [vmem:[%s6890_s8 + $0x28] sm:$0xff]  ;;  %v804_v11 = vunpack.c.l.bf16 %v793_v3  ;;  %v805_v12 = vunpack.c.h.bf16 %v793_v3  ;;  %v800_v13 = vunpack.c.l.bf16 %v791_v8  ;;  %v801_v14 = vunpack.c.h.bf16 %v791_v8  ;;  %v796_v16 = vld [vmem:[%s6890_s8 + $0x30] sm:$0xff]  ;;  %v5410_v30 = vld [vmem:[%s6890_s8 + $0x40] sm:$0xff] }
  0x15   : > { %v6900_v17 = vpack.i.bf16 %v803_v5, %v802_v4  ;;  %v6902_v18 = vpack.i.bf16 %v799_v7, %v798_v6  ;;  %v808_v19 = vunpack.c.l.bf16 %v795_v9  ;;  %v5411_v20 = vld [vmem:[%s6890_s8 + $0x48] sm:$0xff]  ;;  %v809_v23 = vunpack.c.h.bf16 %v795_v9  ;;  %v5413_v34 = vld [vmem:[%s6890_s8 + $0x58] sm:$0xff]  ;;  %v5412_v35 = vld [vmem:[%s6890_s8 + $0x50] sm:$0xff] }
  0x16   : > { %v6907_v22 = vpack.i.bf16 %v805_v12, %v804_v11  ;;  %v806_v24 = vunpack.c.l.bf16 %v794_v10  ;;  %v807_v25 = vunpack.c.h.bf16 %v794_v10  ;;  %v6913_v26 = vpack.i.bf16 %v801_v14, %v800_v13  ;;  %v5415_v36 = vld [vmem:[%s6890_s8 + $0x68] sm:$0xff]  ;;  %v6930_v43 = vld [vmem:[%s6890_s8 + $0x60] sm:$0xff]  ;;  %v5417_v44 = vld [vmem:[%s6890_s8 + $0x78] sm:$0xff] }
  0x17   : > { %5834 = vrot.lane.b32.xlu1 %v6900_v17, %s6815_s9  ;;  %5824 = vrot.lane.b32.xlu0 %v6902_v18, %s6815_s9  ;;  %v812_v27 = vunpack.c.l.bf16 %v797_v15  ;;  %v813_v28 = vunpack.c.h.bf16 %v797_v15  ;;  %v810_v29 = vunpack.c.l.bf16 %v796_v16  ;;  %v811_v31 = vunpack.c.h.bf16 %v796_v16  ;;  %v6945_v49 = vld [vmem:[%s6890_s8 + $0x70] sm:$0xff]  ;;  %v5419_v50 = vld [vmem:[%s6890_s8 + $0x88] sm:$0xff] }
  0x18   : > { %v909_v32 = vunpack.c.l.bf16 %v5411_v20  ;;  %v910_v33 = vunpack.c.h.bf16 %v5411_v20  ;;  %v6923_v39 = vpack.i.bf16 %v809_v23, %v808_v19  ;;  %v6925_v40 = vpack.i.bf16 %v807_v25, %v806_v24  ;;  %v5418_v55 = vld [vmem:[%s6890_s8 + $0x80] sm:$0xff]  ;;  %v5421_v56 = vld [vmem:[%s6890_s8 + $0x98] sm:$0xff]  ;;  %v5420_v61 = vld [vmem:[%s6890_s8 + $0x90] sm:$0xff] }
  0x19   : > { %v6927_v41 = vpack.i.bf16 %v813_v28, %v812_v27  ;;  %v907_v42 = vunpack.c.l.bf16 %v5410_v30  ;;  %v6940_v45 = vpack.i.bf16 %v811_v31, %v810_v29  ;;  %v908_v47 = vunpack.c.h.bf16 %v5410_v30  ;;  %v5423_v6 = vld [vmem:[%s6890_s8 + $0xa8] sm:$0xff]  ;;  %v6971_v11 = vld [vmem:[%s6890_s8 + $0xa0] sm:$0xff]  ;;  %v6984_v16 = vld [vmem:[%s6890_s8 + $0xb8] sm:$0xff] }
  0x1a   : > { %v6942_v46 = vpack.i.bf16 %v910_v33, %v909_v32  ;;  %v913_v48 = vunpack.c.l.bf16 %v5413_v34  ;;  %v914_v51 = vunpack.c.h.bf16 %v5413_v34  ;;  %v911_v52 = vunpack.c.l.bf16 %v5412_v35  ;;  %v6987_v19 = vld [vmem:[%s6959_s13] sm:$0x77]  ;;  %v387_v27 = vld [vmem:[%s6959_s13 + $0x8] sm:$0x7]  ;;  %v7010_v32 = vld [vmem:[%s6890_s8 + $0xb0] sm:$0xff] }
  0x1b   : > { %5839 = vrot.lane.b32.xlu1 %v6907_v22, %s6815_s9  ;;  %5829 = vrot.lane.b32.xlu0 %v6913_v26, %s6815_s9  ;;  %v912_v53 = vunpack.c.h.bf16 %v5412_v35  ;;  %v917_v54 = vunpack.c.l.bf16 %v5415_v36  ;;  %v918_v57 = vunpack.c.h.bf16 %v5415_v36  ;;  %v9882_v58 = vunpack.c.l.bf16 %v6930_v43 }
  0x1c   : > { %v916_v59 = vunpack.c.h.bf16 %v6930_v43  ;;  %v921_v60 = vunpack.c.l.bf16 %v5417_v44  ;;  %v922_v62 = vunpack.c.h.bf16 %v5417_v44  ;;  %v9881_v63 = vunpack.c.l.bf16 %v6945_v49 }
  0x1d   : > { %v920_v0 = vunpack.c.h.bf16 %v6945_v49  ;;  %v1029_v1 = vunpack.c.l.bf16 %v5419_v50  ;;  %v1030_v2 = vunpack.c.h.bf16 %v5419_v50  ;;  %v1027_v3 = vunpack.c.l.bf16 %v5418_v55 }
  0x1e   : > { %v1028_v4 = vunpack.c.h.bf16 %v5418_v55  ;;  %v1033_v5 = vunpack.c.l.bf16 %v5421_v56  ;;  %v6966_v7 = vpack.i.bf16 %v908_v47, %v907_v42  ;;  %v6968_v8 = vpack.i.bf16 %v914_v51, %v913_v48  ;;  %v2435_v55 = vld [vmem:[%s6890_s8 + $0x20] sm:$0xff] }
  0x1f   : > { %5849 = vrot.lane.b32.xlu1 %v6923_v39, %s6815_s9  ;;  %5844 = vrot.lane.b32.xlu0 %v6925_v40, %s6815_s9  ;;  %v1034_v9 = vunpack.c.h.bf16 %v5421_v56  ;;  %v1031_v10 = vunpack.c.l.bf16 %v5420_v61  ;;  %v6973_v12 = vpack.i.bf16 %v912_v53, %v911_v52  ;;  %v6975_v13 = vpack.i.bf16 %v918_v57, %v917_v54  ;;  %v7030_v54 = vld [vmem:[%s6890_s8 + $0x10] sm:$0xff] }
  0x20   : > { %v6981_v14 = vpack.i.bf16 %v916_v59, %v9882_v58  ;;  %v1032_v15 = vunpack.c.h.bf16 %v5420_v61  ;;  %v6989_v20 = vpack.i.bf16 %v922_v62, %v921_v60  ;;  %v6995_v23 = vpack.i.bf16 %v920_v0, %v9881_v63 }
  0x21   : > { %v1037_v24 = vunpack.c.l.bf16 %v5423_v6  ;;  %v1038_v25 = vunpack.c.h.bf16 %v5423_v6  ;;  %v7002_v28 = vpack.i.bf16 %v1030_v2, %v1029_v1  ;;  %v7004_v29 = vpack.i.bf16 %v1028_v4, %v1027_v3  ;;  %v7046_v3 = vld [vmem:[%s6890_s8 + $0x30] sm:$0xff] }
  0x22   : > { %v7006_v30 = vpack.i.bf16 %v1034_v9, %v1033_v5  ;;  %v1035_v31 = vunpack.c.l.bf16 %v6971_v11  ;;  %v7012_v33 = vpack.i.bf16 %v1032_v15, %v1031_v10  ;;  %v9886_v34 = vunpack.c.h.bf16 %v6971_v11  ;;  %v393_v10 = vld [vmem:[%s6890_s8 + $0x28] ss:$16 sps:$4 sm:$0xff]  }
  0x23   : > { %5859 = vrot.lane.b32.xlu1 %v6927_v41, %s6815_s9  ;;  %5854 = vrot.lane.b32.xlu0 %v6940_v45, %s6815_s9  ;;  %v413_v36 = vrot.slane %v6987_v19, %v6920_v37  ;;  %v417_v42 = vrot.slane %v6987_v19, %v416_v38  ;;  %v421_v44 = vrot.slane %v387_v27, %v6920_v37  ;;  %v472_v47 = vsub.s32 1, %v6905_v21 }
  0x24   : > { %v476_v48 = vsub.s32 5, %v6905_v21  ;;  %v7024_v50 = vpack.i.bf16 %v1038_v25, %v1037_v24  ;;  %v544_v53 = vsub.s32 2, %v6905_v21  ;;  %v9885_v38 = vunpack.c.h.bf16 %v7010_v32 }
  0x25   : > { %v481_v56 = vrot.slane %v387_v27, %v472_v47  ;;  %v473_v57 = vrot.slane %v6987_v19, %v472_v47  ;;  %v9879_v60 = vunpack.c.l.bf16 %v7030_v54  ;;  %v7041_v61 = vrot.slane %v413_v36, %v6920_v37 }
  0x26   : > { %v477_v62 = vrot.slane %v6987_v19, %v476_v48  ;;  %v553_v1 = vrot.slane %v387_v27, %v544_v53  ;;  %v9880_v2 = vunpack.c.h.bf16 %v7030_v54  ;;  %v7049_v4 = vrot.slane %v417_v42, %v6920_v37 }
  0x27   : > { %5869 = vrot.lane.b32.xlu1 %v6942_v46, %s6815_s9  ;;  %5864 = vrot.lane.b32.xlu0 %v6966_v7, %s6815_s9  ;;  %9987 = vst [vmem:[#allocation2_spill] sm:$0xff] %v7041_v61  ;;  %v7052_v5 = vrot.slane %v421_v44, %v6920_v37  ;;  %v545_v6 = vrot.slane %v6987_v19, %v544_v53  ;;  %v2448_v9 = vunpack.c.h.bf16 %v2435_v55  ;;  %v2447_v36 = vunpack.c.l.bf16 %v2435_v55 }
  0x28   : > { %9988 = vst [vmem:[#allocation3_spill] sm:$0xff] %v7049_v4  ;;  %v7056_v15 = vrot.slane %v481_v56, %v472_v47  ;;  %v7058_v24 = vrot.slane %v473_v57, %v472_v47  ;;  %v7060_v25 = vrot.slane %v477_v62, %v472_v47  ;;  %v7066_v27 = vpack.i.bf16 %v9880_v2, %v9879_v60  ;;  %v5395_v62 = vld [vmem:[%s6890_s8 + $0x68] ss:$16 sps:$4 sm:$0xff]  }
  0x29   : > { %9989 = vst [vmem:[#allocation4_spill] sm:$0xff] %v7052_v5  ;;  %v7072_v37 = vrot.slane %v553_v1, %v544_v53  ;;  %v406_v42 = vunpack.c.h.bf16 %v7046_v3  ;;  %v444_v44 = vmul.f32 %v2448_v9, %v7049_v4  ;;  %v548_v56 = vsub.s32 6, %v6905_v21  ;;  %v5403_v60 = vld [vmem:[%s6890_s8 + $0xa8] ss:$16 sps:$4 sm:$0xff]  }
  0x2a   : > { %9990 = vst [vmem:[#allocation5_spill] sm:$0xff] %v7056_v15  ;;  %9991 = vst [vmem:[#allocation6_spill] sm:$0xff] %v7058_v24  ;;  %v504_v47 = vmul.f32 %v916_v59, %v7060_v25  ;;  %v507_v48 = vmul.f32 %v920_v0, %v7060_v25  ;;  %v404_v57 = vunpack.c.l.bf16 %v393_v10  ;;  %v7085_v1 = vrot.slane %v545_v6, %v544_v53 }
  0x2b   : > { %9992 = vst [vmem:[#allocation7_spill] sm:$0xff] %v7060_v25  ;;  %9993 = vst [vmem:[#allocation8_spill] sm:$0xff] %v7066_v27  ;;  %5879 = vrot.lane.b32.xlu1 %v6968_v8, %s6815_s9  ;;  %5874 = vrot.lane.b32.xlu0 %v6973_v12, %s6815_s9  ;;  %v7087_v55 = vpack.i.bf16 %v2448_v9, %v2447_v36  ;;  %v447_v2 = vmul.f32 %v7049_v4, %v406_v42  ;;  %v9883_v51 = vmov 0.0   ;;  %v407_v63 = vunpack.c.h.bf16 %v393_v10 }
  0x2c   : > { %5642 = vmatprep.subr.bf16.mxu1 %v9883_v51  ;;  %v516_v35 = vadd.f32 %v504_v47, %v444_v44  ;;  %v549_v59 = vrot.slane %v6987_v19, %v548_v56  ;;  %v445_v0 = vmul.f32 %v7052_v5, %v404_v57  ;;  %v466_v6 = vunpack.c.l.bf16 %v5395_v62 }
  0x2d   : > { %9994 = vst [vmem:[#allocation9_spill] sm:$0xff] %v7087_v55  ;;  %v519_v21 = vadd.f32 %v507_v48, %v447_v2  ;;  %v469_v9 = vunpack.c.h.bf16 %v5395_v62  ;;  %v538_v58 = vunpack.c.l.bf16 %v5403_v60  ;;  %v448_v51 = vmul.f32 %v7052_v5, %v407_v63 }
  0x2e   : > { %v7097_v52 = vrot.slane %v549_v59, %v544_v53  ;;  %v541_v44 = vunpack.c.h.bf16 %v5403_v60  ;;  %v405_v19 = vunpack.c.l.bf16 %v7046_v3  ;;  %v505_v10 = vmul.f32 %v7056_v15, %v466_v6 }
  0x2f   : > { %5889 = vrot.lane.b32.xlu1 %v6975_v13, %s6815_s9  ;;  %5884 = vrot.lane.b32.xlu0 %v6981_v14, %s6815_s9  ;;  %v508_v47 = vmul.f32 %v7056_v15, %v469_v9  ;;  %v577_v56 = vmul.f32 %v7072_v37, %v538_v58  ;;  %v443_v57 = vmul.f32 %v2447_v36, %v7041_v61  ;;  %v9995_v59 = vunpack.c.l.bf16 %v7010_v32  ;;  %v7124_v9 = vld [vmem:[%s6890_s8] sm:$0xff] }
  0x30   : > { %v576_v2 = vmul.f32 %v9886_v34, %v7097_v52  ;;  %v579_v63 = vmul.f32 %v9885_v38, %v7097_v52  ;;  %v580_v53 = vmul.f32 %v7072_v37, %v541_v44  ;;  %v446_v60 = vmul.f32 %v7041_v61, %v405_v19 }
  0x31   : > { %v517_v58 = vadd.f32 %v505_v10, %v445_v0  ;;  %v520_v3 = vadd.f32 %v508_v47, %v448_v51  ;;  %v575_v62 = vmul.f32 %v1035_v31, %v7085_v1  ;;  %v578_v6 = vmul.f32 %v9995_v59, %v7085_v1  ;;  %v7136_v10 = vld [vmem:[%s6890_s8 + $0x50] sm:$0xff] }
  0x32   : > { %v588_v36 = vadd.f32 %v576_v2, %v516_v35  ;;  %v591_v48 = vadd.f32 %v579_v63, %v519_v21  ;;  %v9996_v34 = vunpack.c.l.bf16 %v6930_v43  ;;  %v9997_v35 = vunpack.c.l.bf16 %v6945_v49  ;;  %v7133_v21 = vld [vmem:[%s6890_s8 + $0x40] sm:$0xff] }
  0x33   : > { %5899 = vrot.lane.b32.xlu1 %v6989_v20, %s6815_s9  ;;  %5894 = vrot.lane.b32.xlu0 %v6995_v23, %s6815_s9  ;;  %v589_v44 = vadd.f32 %v577_v56, %v517_v58  ;;  %v592_v38 = vadd.f32 %v580_v53, %v520_v3  ;;  %v9998_v47 = vunpack.c.h.bf16 %v6971_v11  ;;  %v9999_v2 = vunpack.c.l.bf16 %v6984_v16  ;;  %v7155_v53 = vld [vmem:[%s6890_s8 + $0x80] sm:$0xff]  ;;  %v7165_v3 = vld [vmem:[%s6890_s8 + $0x90] sm:$0xff] }
  0x34   : > { %v503_v51 = vmul.f32 %v9996_v34, %v7058_v24  ;;  %v506_v0 = vmul.f32 %v9997_v35, %v7058_v24  ;;  %v10000_v43 = vunpack.c.h.bf16 %v6984_v16  ;;  %v7150_v63 = vpack.c.bf16 %v591_v48, %v588_v36  ;;  %v389_v36 = vld [vmem:[%s6890_s8 + $0x8] ss:$16 sps:$4 sm:$0xff]  }
  0x35   : > { %v7142_v56 = vpack.i.bf16 %v9998_v47, %v1035_v31  ;;  %v7152_v49 = vpack.i.bf16 %v406_v42, %v405_v19  ;;  %v7161_v11 = vpack.c.bf16 %v592_v38, %v589_v44  ;;  %v9887_v16 = vunpack.c.h.bf16 %v7124_v9  ;;  %v5391_v44 = vld [vmem:[%s6890_s8 + $0x48] ss:$16 sps:$4 sm:$0xff]  }
  0x36   : > { %v7148_v34 = vpack.i.bf16 %v10000_v43, %v9999_v2  ;;  %v515_v31 = vadd.f32 %v503_v51, %v443_v57  ;;  %v518_v58 = vadd.f32 %v506_v0, %v446_v60  ;;  %v10002_v42 = vmov %v9995_v59  ;;  %618 = vmatprep.subr.bf16.mxu0 %v7150_v63 }
  0x37   : > { %10001 = vst [vmem:[#allocation10_spill] sm:$0xff] %v7152_v49  ;;  %5909 = vrot.lane.b32.xlu1 %v7002_v28, %s6815_s9  ;;  %5904 = vrot.lane.b32.xlu0 %v7004_v29, %s6815_s9  ;;  %v10003_v19 = vunpack.c.h.bf16 %v7010_v32  ;;  %v10004_v38 = vunpack.c.h.bf16 %v7030_v54  ;;  %v459_v57 = vunpack.c.h.bf16 %v7133_v21  ;;  %v9888_v60 = vunpack.c.h.bf16 %v7136_v10 }
  0x38   : > { %5643 = vmatpush3.bf16.msra.mxu1 %v7161_v11  ;;  %v587_v51 = vadd.f32 %v575_v62, %v515_v31  ;;  %v590_v35 = vadd.f32 %v578_v6, %v518_v58  ;;  %v438_v32 = vmul.f32 %v7049_v4, %v9887_v16  ;;  %v9896_v0 = vunpack.c.h.bf16 %v7155_v53 }
  0x39   : > { %v7172_v48 = vpack.i.bf16 %v10003_v19, %v10002_v42  ;;  %v441_v59 = vmul.f32 %v10004_v38, %v7049_v4  ;;  %v10005_v47 = vmov 0.0   ;;  %v498_v2 = vmul.f32 %v7060_v25, %v459_v57  ;;  %v5399_v38 = vld [vmem:[%s6890_s8 + $0x88] ss:$16 sps:$4 sm:$0xff]  }
  0x3a   : > { %5644 = vmatprep.subr.bf16.mxu1 %v10005_v47  ;;  %v501_v43 = vmul.f32 %v7060_v25, %v9888_v60  ;;  %v534_v42 = vunpack.c.h.bf16 %v7165_v3  ;;  %v398_v19 = vunpack.c.l.bf16 %v389_v36  ;;  %v7197_v62 = vpack.c.bf16 %v590_v35, %v587_v51  ;;  %5646 = vmatprep.mubr.msk.bf16.mxu1 %vm6817_vm0, %v10005_v47 }
  0x3b   : > { %5919 = vrot.lane.b32.xlu1 %v7006_v30, %s6815_s9  ;;  %5914 = vrot.lane.b32.xlu0 %v7012_v33, %s6815_s9  ;;  %v570_v6 = vmul.f32 %v7097_v52, %v9896_v0  ;;  %v401_v31 = vunpack.c.h.bf16 %v389_v36  ;;  %v460_v58 = vunpack.c.l.bf16 %v5391_v44  ;;  %v510_v16 = vadd.f32 %v498_v2, %v438_v32 }
  0x3c   : > { %v513_v60 = vadd.f32 %v501_v43, %v441_v59  ;;  %v573_v49 = vmul.f32 %v7097_v52, %v534_v42  ;;  %v439_v55 = vmul.f32 %v7052_v5, %v398_v19  ;;  %619 = vmatpush1.bf16.msra.mxu0 %v7197_v62  ;;  %v463_v51 = vunpack.c.h.bf16 %v5391_v44 }
  0x3d   : > { %v442_v27 = vmul.f32 %v7052_v5, %v401_v31  ;;  %v499_v35 = vmul.f32 %v7056_v15, %v460_v58  ;;  %v532_v25 = vunpack.c.l.bf16 %v5399_v38  ;;  %v582_v4 = vadd.f32 %v570_v6, %v510_v16 }
  0x3e   : > { %v585_v0 = vadd.f32 %v573_v49, %v513_v60  ;;  %v535_v36 = vunpack.c.h.bf16 %v5399_v38  ;;  %v396_v32 = vunpack.c.l.bf16 %v7124_v9  ;;  %v502_v59 = vmul.f32 %v7056_v15, %v463_v51 }
  0x3f   : > { %5929 = vrot.lane.b32.xlu1 %v7024_v50, %s6815_s9  ;;  %5924 = vrot.lane.b32.xlu0 %v7142_v56, %s6815_s9  ;;  %v511_v2 = vadd.f32 %v499_v35, %v439_v55  ;;  %v571_v43 = vmul.f32 %v7072_v37, %v532_v25  ;;  %v458_v44 = vunpack.c.l.bf16 %v7133_v21  ;;  %v10006_v60 = vunpack.c.l.bf16 %v7030_v54 }
  0x40   : > { %v594_v19 = vpack.c.bf16 %v585_v0, %v582_v4  ;;  %v574_v16 = vmul.f32 %v7072_v37, %v535_v36  ;;  %v437_v49 = vmul.f32 %v7041_v61, %v396_v32  ;;  %v514_v6 = vadd.f32 %v502_v59, %v442_v27 }
  0x41   : > { %v440_v38 = vmul.f32 %v10006_v60, %v7041_v61  ;;  %v583_v31 = vadd.f32 %v571_v43, %v511_v2  ;;  %v461_v58 = vunpack.c.l.bf16 %v7136_v10  ;;  %v497_v55 = vmul.f32 %v7058_v24, %v458_v44 }
  0x42   : > { %620 = vmatprep.subr.bf16.mxu0 %v594_v19  ;;  %v530_v25 = vunpack.c.l.bf16 %v7155_v53  ;;  %v533_v4 = vunpack.c.l.bf16 %v7165_v3  ;;  %v586_v21 = vadd.f32 %v574_v16, %v514_v6  ;;  %v9897_v35 = vmov 0  }
  0x43   : > { %5939 = vrot.lane.b32.xlu1 %v7148_v34, %s6815_s9  ;;  %5934 = vrot.lane.b32.xlu0 %v7172_v48, %s6815_s9  ;;  %v500_v54 = vmul.f32 %v7058_v24, %v461_v58  ;;  %v509_v27 = vadd.f32 %v497_v55, %v437_v49  ;;  %v7238_v36 = vpack.i.bf16 %v459_v57, %v458_v44  ;;  %v10007_v49 = vunpack.c.h.bf16 %v7136_v10  ;;  %v601_v44 = vld [vmem:[%s9873_s2] sm:$0x3] }
  0x44   : > { %v569_v0 = vmul.f32 %v7085_v1, %v530_v25  ;;  %v572_v51 = vmul.f32 %v7085_v1, %v533_v4  ;;  %638 = vmatprep.mubr.bf16.mxu0 %v9897_v35  ;;  %v595_v59 = vpack.c.bf16 %v586_v21, %v583_v31  ;;  %6783 = vset.pattern.permute.xlu0 %v9897_v35  ;;  %v7381_v21 = vld [vmem:[%s6890_s8 + $0xb0] sm:$0xff] }
  0x45   : > { %v512_v2 = vadd.f32 %v500_v54, %v440_v38  ;;  %6784 = vset.pattern.permute.xlu1 %v9897_v35  ;;  %v7248_v60 = vpack.i.bf16 %v10007_v49, %v461_v58  ;;  %v10008_v38 = vunpack.c.h.bf16 %v7155_v53  ;;  %v7267_v6 = vpack.i.bf16 %v534_v42, %v533_v4  ;;  %v7378_v4 = vld [vmem:[%s6890_s8 + $0xb8] sm:$0xff]  ;;  %10015 = vst [vmem:[#allocation16_spill] sm:$0xff] %v7381_v21  ;;  %v7401_v49 = vld [vmem:[%s6890_s8 + $0x88] sm:$0xff] }
  0x46   : > { %v581_v43 = vadd.f32 %v569_v0, %v509_v27  ;;  %5645 = vmatpush3.bf16.msra.mxu1 %v595_v59  ;;  %v10011_v53 = vunpack.c.h.bf16 %v7124_v9  ;;  %10014 = vst [vmem:[#allocation15_spill] sm:$0xff] %v7378_v4  ;;  %10018 = vst [vmem:[#allocation19_spill] sm:$0xff] %v7401_v49 }
  0x47   : > { %5949 = vrot.lane.b32.xlu1 %v6913_v26, %s6819_s14  ;;  %5944 = vrot.lane.b32.xlu0 %v6902_v18, %s6819_s14  ;;  %v584_v16 = vadd.f32 %v572_v51, %v512_v2  ;;  %v7260_v10 = vpack.i.bf16 %v10008_v38, %v530_v25  ;;  %10010 = vst [vmem:[#allocation12_spill] sm:$0xff] %v7267_v6  ;;  %v7375_v25 = vld [vmem:[%s6890_s8 + $0x78] sm:$0xff] }
  0x48   : > { %5650 = vmatprep.subr.bf16.mxu1 %v10005_v47  ;;  %10013 = vst [vmem:[#allocation14_spill] sm:$0xff] %v7375_v25 }
  0x49   : > { %v593_v57 = vpack.c.bf16 %v584_v16, %v581_v43  ;;  %10009 = vst [vmem:[#allocation11_spill] sm:$0xff] %v7260_v10  ;;  %5647 = vmatmul.mubr.msk.bf16.vlgmr.msra.gmra.mxu1 %vm602_vm1, %v601_v44  ;;  %v7397_v43 = vunpack.c.l.bf16 %v7375_v25  ;;  %v9901_v16 = vunpack.c.h.bf16 %v7375_v25 }
  0x4a   : > { %5651 = vmatpush3.bf16.msra.mxu1 %v7161_v11  ;;  %5654 = vmatprep.mubr.msk.bf16.mxu1 %vm6817_vm0, %v10005_v47  ;;  %v7300_v11 = vpack.i.bf16 %v10011_v53, %v396_v32  ;;  %v5480_v32 = vld [vmem:[%s6890_s8 + $0x60] sm:$0xff]  ;;  %v7414_v53 = vld [vmem:[%s6890_s8 + $0x98] sm:$0xff] }
  0x4b   : > { %5959 = vrot.lane.b32.xlu1 %v6907_v22, %s6819_s14  ;;  %5954 = vrot.lane.b32.xlu0 %v6900_v17, %s6819_s14  ;;  %v2556_v0 = vunpack.c.l.bf16 %v5480_v32  ;;  %v2557_v51 = vunpack.c.h.bf16 %v5480_v32  ;;  %10017 = vst [vmem:[#allocation18_spill] sm:$0xff] %v7397_v43  ;;  %10022 = vst [vmem:[#allocation23_spill] sm:$0xff] %v7414_v53 }
  0x4c   : > { %621 = vmatpush1.bf16.msra.mxu0 %v593_v57  ;;  %5652 = vmatprep.subr.bf16.mxu1 %v10005_v47  ;;  %10012 = vst [vmem:[#allocation13_spill] sm:$0xff] %v7300_v11 }
  0x4d   : > { %713 = vmatprep.subr.bf16.mxu0 %v7150_v63  ;;  %v697_v63 = vld [vmem:[%s9874_s3] sm:$0x3] }
  0x4e   : > { %5653 = vmatpush3.bf16.msra.mxu1 %v595_v59  ;;  %v5482_v59 = vld [vmem:[%s6890_s8 + $0x70] sm:$0xff] }
  0x4f   : > { %5969 = vrot.lane.b32.xlu1 %v6923_v39, %s6819_s14  ;;  %5964 = vrot.lane.b32.xlu0 %v6925_v40, %s6819_s14 }
  0x50   : > { %5406 = vmatmul.mubr.msk.bf16.vlgmr.msra.gmra.mxu0 %vm602_vm1, %v601_v44  ;;  %5658 = vmatprep.subr.bf16.mxu1 %v10005_v47  ;;  %v2681_v44 = vunpack.c.h.bf16 %v7381_v21 }
  0x51   : > { %714 = vmatpush1.bf16.msra.mxu0 %v7197_v62  ;;  %733 = vmatprep.mubr.bf16.mxu0 %v9897_v35  ;;  %v7367_v62 = vld [vmem:[%s6890_s8 + $0x68] sm:$0xff] }
  0x52   : > { %715 = vmatprep.subr.bf16.mxu0 %v594_v19  ;;  %5655 = vmatmul.mubr.msk.bf16.vlgmr.msra.gmra.mxu1 %vm602_vm1, %v697_v63  ;;  %v9899_v27 = vunpack.c.h.bf16 %v7367_v62 }
  0x53   : > { %5979 = vrot.lane.b32.xlu1 %v6927_v41, %s6819_s14  ;;  %5974 = vrot.lane.b32.xlu0 %v6940_v45, %s6819_s14 }
  0x54   : > { %5662 = vmatprep.mubr.msk.bf16.mxu1 %vm6817_vm0, %v10005_v47 }
  0x55   : > { %716 = vmatpush1.bf16.msra.mxu0 %v593_v57  ;;  %v2682_v57 = vunpack.c.l.bf16 %v7378_v4 }
  0x57   : > { %5989 = vrot.lane.b32.xlu1 %v6942_v46, %s6819_s14  ;;  %5984 = vrot.lane.b32.xlu0 %v6966_v7, %s6819_s14  ;;  %v7433_v32 = vpack.i.bf16 %v2682_v57, %v2681_v44 }
  0x58   : > { %5408 = vmatmul.mubr.msk.bf16.vlgmr.msra.gmra.mxu0 %vm602_vm1, %v697_v63 }
  0x59   : > { %1184 = vmatprep.mubr.bf16.mxu0 %v9897_v35  ;;  %10023 = vst [vmem:[#allocation24_spill] sm:$0xff] %v7433_v32 }
  0x5b   : > { %5999 = vrot.lane.b32.xlu1 %v6968_v8, %s6819_s14  ;;  %5994 = vrot.lane.b32.xlu0 %v6973_v12, %s6819_s14 }
  0x5f   : > { %6009 = vrot.lane.b32.xlu1 %v6975_v13, %s6819_s14  ;;  %6004 = vrot.lane.b32.xlu0 %v6981_v14, %s6819_s14 }
  0x63   : > { %6019 = vrot.lane.b32.xlu1 %v6989_v20, %s6819_s14  ;;  %6014 = vrot.lane.b32.xlu0 %v6995_v23, %s6819_s14 }
  0x67   : > { %6029 = vrot.lane.b32.xlu1 %v7002_v28, %s6819_s14  ;;  %6024 = vrot.lane.b32.xlu0 %v7004_v29, %s6819_s14 }
  0x6b   : > { %6039 = vrot.lane.b32.xlu1 %v7006_v30, %s6819_s14  ;;  %6034 = vrot.lane.b32.xlu0 %v7012_v33, %s6819_s14 }
  0x6f   : > { %6049 = vrot.lane.b32.xlu1 %v7024_v50, %s6819_s14  ;;  %6044 = vrot.lane.b32.xlu0 %v7142_v56, %s6819_s14 }
  0x73   : > { %6059 = vrot.lane.b32.xlu1 %v7148_v34, %s6819_s14  ;;  %6054 = vrot.lane.b32.xlu0 %v7172_v48, %s6819_s14 }
  0x77   : > { %6069 = vrot.lane.b32.xlu1 %v6913_v26, %s6820_s19  ;;  %6064 = vrot.lane.b32.xlu0 %v6902_v18, %s6820_s19 }
  0x7b   : > { %6079 = vrot.lane.b32.xlu1 %v6907_v22, %s6820_s19  ;;  %6074 = vrot.lane.b32.xlu0 %v6900_v17, %s6820_s19 }
  0x7f   : > { %6089 = vrot.lane.b32.xlu1 %v6923_v39, %s6820_s19  ;;  %6084 = vrot.lane.b32.xlu0 %v6925_v40, %s6820_s19  ;;  %v2436_v40 = vld [vmem:[%s6890_s8 + $0x28] sm:$0xff] }
  0x80   : > { %v2449_v3 = vunpack.c.l.bf16 %v2436_v40  ;;  %v2450_v42 = vunpack.c.h.bf16 %v2436_v40 }
  0x82   : > { %v7390_v2 = vpack.i.bf16 %v2450_v42, %v2449_v3  ;;  %v7428_v3 = vpack.i.bf16 %v2557_v51, %v2556_v0  ;;  %v7431_v42 = vld [vmem:[%s6890_s8 + $0xa8] sm:$0xff] }
  0x83   : > { %6099 = vrot.lane.b32.xlu1 %v6927_v41, %s6820_s19  ;;  %6094 = vrot.lane.b32.xlu0 %v6940_v45, %s6820_s19  ;;  %v2438_v41 = vld [vmem:[%s6890_s8 + $0x38] sm:$0xff] }
  0x84   : > { %10016 = vst [vmem:[#allocation17_spill] sm:$0xff] %v7390_v2 }
  0x87   : > { %6109 = vrot.lane.b32.xlu1 %v6942_v46, %s6820_s19  ;;  %6104 = vrot.lane.b32.xlu0 %v6966_v7, %s6820_s19  ;;  %v5477_v46 = vld [vmem:[%s6890_s8 + $0x48] sm:$0xff]  ;;  %v5479_v7 = vld [vmem:[%s6890_s8 + $0x58] sm:$0xff] }
  0x88   : > { %v2550_v19 = vunpack.c.l.bf16 %v5477_v46  ;;  %v2551_v31 = vunpack.c.h.bf16 %v5477_v46  ;;  %v2554_v58 = vunpack.c.l.bf16 %v5479_v7  ;;  %v2555_v55 = vunpack.c.h.bf16 %v5479_v7 }
  0x89   : > { %v7350_v17 = vpop.permute.xlu1 %5834  ;;  %v7352_v39 = vpop.permute.xlu0 %5824 }
  0x8a   : > { %v7407_v63 = vpack.i.bf16 %v2551_v31, %v2550_v19  ;;  %v7420_v46 = vpack.i.bf16 %v2555_v55, %v2554_v58  ;;  %v9903_v19 = vunpack.c.l.bf16 %v7401_v49  ;;  %v7440_v58 = vld [vmem:[%s6890_s8 + $0xa0] sm:$0xff]  ;;  %v5827_v55 = vunpack.i.h.bf16 %v7352_v39 }
  0x8b   : > { %6119 = vrot.lane.b32.xlu1 %v6968_v8, %s6820_s19  ;;  %6114 = vrot.lane.b32.xlu0 %v6973_v12, %s6820_s19  ;;  %v2453_v8 = vunpack.c.l.bf16 %v2438_v41  ;;  %v2454_v12 = vunpack.c.h.bf16 %v2438_v41 }
  0x8d   : > { %v7360_v45 = vpop.permute.xlu1 %5839  ;;  %v7362_v9 = vpop.permute.xlu0 %5829  ;;  %v7405_v38 = vpack.i.bf16 %v2454_v12, %v2453_v8  ;;  %v5837_v8 = vunpack.i.h.bf16 %v7350_v17  ;;  %v5836_v12 = vunpack.i.l.bf16 %v7350_v17  ;;  %v7451_v17 = vpack.i.bf16 %v9901_v16, %v7397_v43 }
  0x8e   : > { %v5842_v35 = vunpack.i.h.bf16 %v7360_v45  ;;  %v5832_v16 = vunpack.i.h.bf16 %v7362_v9  ;;  %v5831_v31 = vunpack.i.l.bf16 %v7362_v9  ;;  %v7494_v9 = vld [vmem:[%s6890_s8 + $0x8] sm:$0xff] }
  0x8f   : > { %6129 = vrot.lane.b32.xlu1 %v6975_v13, %s6820_s19  ;;  %6124 = vrot.lane.b32.xlu0 %v6981_v14, %s6820_s19  ;;  %v9900_v14 = vunpack.c.l.bf16 %v7367_v62  ;;  %10019 = vst [vmem:[#allocation20_spill] sm:$0xff] %v7405_v38  ;;  %10024 = vst [vmem:[#allocation25_spill] sm:$0xff] %v7451_v17  ;;  %v866_v51 = vsel %vm862_vm2, %v5836_v12, %v5837_v8 }
  0x90   : > { %10030 = vst [vmem:[#allocation28_spill] sm:$0xff] %v7494_v9 }
  0x91   : > { %v7383_v54 = vpop.permute.xlu1 %5849  ;;  %v7385_v13 = vpop.permute.xlu0 %5844  ;;  %v7426_v7 = vpack.i.bf16 %v9899_v27, %v9900_v14  ;;  %v10025_v27 = vunpack.c.h.bf16 %v7401_v49 }
  0x92   : > { %v5852_v0 = vunpack.i.h.bf16 %v7383_v54  ;;  %v5846_v12 = vunpack.i.l.bf16 %v7385_v13 }
  0x93   : > { %6139 = vrot.lane.b32.xlu1 %v6989_v20, %s6820_s19  ;;  %6134 = vrot.lane.b32.xlu0 %v6995_v23, %s6820_s19  ;;  %v7409_v20 = vunpack.c.l.bf16 %v5482_v59  ;;  %v7411_v23 = vunpack.c.h.bf16 %v5482_v59  ;;  %v5826_v59 = vunpack.i.l.bf16 %v7352_v39  ;;  %v7473_v39 = vpack.i.bf16 %v10025_v27, %v9903_v19 }
  0x94   : > { %v5847_v27 = vunpack.i.h.bf16 %v7385_v13  ;;  %v10028_v19 = vunpack.c.h.bf16 %v7414_v53  ;;  %v10034_v13 = vunpack.c.l.bf16 %v7440_v58 }
  0x95   : > { %10020 = vst [vmem:[#allocation21_spill] sm:$0xff] %v7409_v20  ;;  %10021 = vst [vmem:[#allocation22_spill] sm:$0xff] %v7411_v23  ;;  %v7416_v40 = vpop.permute.xlu1 %5859  ;;  %v7418_v41 = vpop.permute.xlu0 %5854  ;;  %v863_v11 = vsel %vm862_vm2, %v5826_v59, %v5827_v55  ;;  %v10027_v59 = vunpack.c.l.bf16 %v7414_v53  ;;  %v10035_v53 = vunpack.c.h.bf16 %v7440_v58 }
  0x96   : > { %10026 = vst [vmem:[#allocation26_spill] sm:$0xff] %v7473_v39  ;;  %v7521_v25 = vmul.f32 %v863_v11, %v7041_v61 }
  0x97   : > { %6149 = vrot.lane.b32.xlu1 %v7002_v28, %s6820_s19  ;;  %6144 = vrot.lane.b32.xlu0 %v7004_v29, %s6820_s19  ;;  %v5841_v28 = vunpack.i.l.bf16 %v7360_v45  ;;  %v5851_v45 = vunpack.i.l.bf16 %v7383_v54  ;;  %v7491_v32 = vpack.i.bf16 %v10028_v19, %v10027_v59  ;;  %v10032_v54 = vunpack.c.h.bf16 %v7431_v42 }
  0x98   : > { %v7511_v19 = vpack.i.bf16 %v10035_v53, %v10034_v13  ;;  %v10037_v59 = vunpack.c.h.bf16 %v7378_v4  ;;  %v865_v53 = vsel %vm862_vm2, %v5831_v31, %v5832_v16  ;;  %v5861_v16 = vunpack.i.l.bf16 %v7416_v40 }
  0x99   : > { %v7460_v14 = vpop.permute.xlu1 %5869  ;;  %v7462_v29 = vpop.permute.xlu0 %5864  ;;  %10029 = vst [vmem:[#allocation27_spill] sm:$0xff] %v7491_v32  ;;  %v867_v6 = vsel %vm862_vm2, %v5837_v8, %v5841_v28  ;;  %v7518_v8 = vmul.f32 %v866_v51, %v7041_v61  ;;  %v868_v49 = vsel %vm862_vm2, %v5841_v28, %v5842_v35  ;;  %v871_v13 = vsel %vm862_vm2, %v5851_v45, %v5852_v0 }
  0x9a   : > { %10036 = vst [vmem:[#allocation30_spill] sm:$0xff] %v7511_v19  ;;  %v7515_v32 = vpack.i.bf16 %v10037_v59, %v2682_v57  ;;  %v10041_v57 = vld [vmem:[#allocation3_spill] sm:$0xff]  ;;  %v869_v51 = vsel %vm862_vm2, %v5846_v12, %v5847_v27  ;;  %v5867_v0 = vunpack.i.h.bf16 %v7462_v29  ;;  %v7547_v59 = vmul.f32 %v868_v49, %v7052_v5 }
  0x9b   : > { %6159 = vrot.lane.b32.xlu1 %v7006_v30, %s6820_s19  ;;  %6154 = vrot.lane.b32.xlu0 %v7012_v33, %s6820_s19  ;;  %v10031_v33 = vunpack.c.l.bf16 %v7431_v42  ;;  %v7537_v35 = vmul.f32 %v867_v6, %v10041_v57  ;;  %v5856_v12 = vunpack.i.l.bf16 %v7418_v41  ;;  %v7565_v49 = vmul.f32 %v869_v51, %v7041_v61 }
  0x9c   : > { %10038 = vst [vmem:[#allocation31_spill] sm:$0xff] %v7515_v32  ;;  %v5866_v32 = vunpack.i.l.bf16 %v7462_v29 }
  0x9d   : > { %v7497_v30 = vpop.permute.xlu1 %5879  ;;  %v7499_v10 = vpop.permute.xlu0 %5874  ;;  %v7505_v39 = vpack.i.bf16 %v10032_v54, %v10031_v33  ;;  %v10039_v33 = vunpack.c.l.bf16 %v7381_v21 }
  0x9e   : > { %v5877_v11 = vunpack.i.h.bf16 %v7499_v10 }
  0x9f   : > { %10033 = vst [vmem:[#allocation29_spill] sm:$0xff] %v7505_v39  ;;  %v7526_v54 = vpack.i.bf16 %v2681_v44, %v10039_v33  ;;  %v864_v39 = vsel %vm862_vm2, %v5827_v55, %v5831_v31  ;;  %6169 = vrot.lane.b32.xlu1 %v7024_v50, %s6820_s19  ;;  %6164 = vrot.lane.b32.xlu0 %v7142_v56, %s6820_s19  ;;  %v5862_v55 = vunpack.i.h.bf16 %v7416_v40  ;;  %v5857_v31 = vunpack.i.h.bf16 %v7418_v41 }
  0xa0   : > { %v870_v44 = vsel %vm862_vm2, %v5847_v27, %v5851_v45  ;;  %v5871_v50 = vunpack.i.l.bf16 %v7460_v14  ;;  %v888_v6 = vmul.f32 %v864_v39, %v10041_v57  ;;  %v7551_v45 = vmul.f32 %v865_v53, %v7052_v5 }
  0xa1   : > { %10040 = vst [vmem:[#allocation32_spill] sm:$0xff] %v7526_v54  ;;  %v5890_v56 = vpop.permute.xlu1 %5889  ;;  %v5885_v28 = vpop.permute.xlu0 %5884  ;;  %v895_v27 = vmul.f32 %v871_v13, %v7052_v5  ;;  %v7555_v40 = vmul.f32 %v870_v44, %v10041_v57  ;;  %v5881_v33 = vunpack.i.l.bf16 %v7497_v30  ;;  %v874_v39 = vsel %vm862_vm2, %v5861_v16, %v5862_v55 }
  0xa2   : > { %v5892_v53 = vunpack.i.h.bf16 %v5890_v56  ;;  %v5891_v13 = vunpack.i.l.bf16 %v5890_v56  ;;  %v873_v44 = vsel %vm862_vm2, %v5857_v31, %v5861_v16  ;;  %v5872_v41 = vunpack.i.h.bf16 %v7460_v14 }
  0xa3   : > { %6179 = vrot.lane.b32.xlu1 %v7148_v34, %s6820_s19  ;;  %6174 = vrot.lane.b32.xlu0 %v7172_v48, %s6820_s19  ;;  %v972_v54 = vsel %vm862_vm2, %v5867_v0, %v5871_v50  ;;  %v5887_v4 = vunpack.i.h.bf16 %v5885_v28  ;;  %v5886_v17 = vunpack.i.l.bf16 %v5885_v28  ;;  %v872_v51 = vsel %vm862_vm2, %v5856_v12, %v5857_v31  ;;  %v10042_v12 = vld [vmem:[#allocation7_spill] sm:$0xff] }
  0xa4   : > { %v5882_v55 = vunpack.i.h.bf16 %v7497_v30  ;;  %v975_v56 = vsel %vm862_vm2, %v5877_v11, %v5881_v33  ;;  %v5876_v16 = vunpack.i.l.bf16 %v7499_v10  ;;  %v898_v14 = vmul.f32 %v874_v39, %v7052_v5 }
  0xa5   : > { %v5900_v19 = vpop.permute.xlu1 %5899  ;;  %v5895_v34 = vpop.permute.xlu0 %5894  ;;  %v979_v29 = vsel %vm862_vm2, %v5891_v13, %v5892_v53  ;;  %v897_v31 = vmul.f32 %v873_v44, %v10041_v57  ;;  %v973_v30 = vsel %vm862_vm2, %v5871_v50, %v5872_v41  ;;  %v996_v20 = vmul.f32 %v972_v54, %v10042_v12 }
  0xa6   : > { %v5902_v48 = vunpack.i.h.bf16 %v5900_v19  ;;  %v5901_v21 = vunpack.i.l.bf16 %v5900_v19  ;;  %v5897_v19 = vunpack.i.h.bf16 %v5895_v34  ;;  %v5896_v28 = vunpack.i.l.bf16 %v5895_v34 }
  0xa7   : > { %6189 = vrot.lane.b32.xlu1 %v6913_v26, %s6821_s20  ;;  %6184 = vrot.lane.b32.xlu0 %v6902_v18, %s6821_s20  ;;  %v971_v10 = vsel %vm862_vm2, %v5866_v32, %v5867_v0  ;;  %v999_v26 = vmul.f32 %v975_v56, %v10042_v12  ;;  %v978_v18 = vsel %vm862_vm2, %v5887_v4, %v5891_v13  ;;  %v10043_v32 = vld [vmem:[#allocation8_spill] sm:$0xff] }
  0xa8   : > { %v977_v39 = vsel %vm862_vm2, %v5886_v17, %v5887_v4  ;;  %v982_v53 = vsel %vm862_vm2, %v5901_v21, %v5902_v48  ;;  %v976_v34 = vsel %vm862_vm2, %v5881_v33, %v5882_v55  ;;  %v974_v44 = vsel %vm862_vm2, %v5876_v16, %v5877_v11 }
  0xa9   : > { %v5910_v43 = vpop.permute.xlu1 %5909  ;;  %v5905_v47 = vpop.permute.xlu0 %5904  ;;  %v1003_v50 = vmul.f32 %v979_v29, %v7056_v15  ;;  %v896_v0 = vmul.f32 %v872_v51, %v7041_v61  ;;  %v7600_v4 = vmul.f32 %v973_v30, %v7056_v15  ;;  %v981_v17 = vsel %vm862_vm2, %v5897_v19, %v5901_v21 }
  0xaa   : > { %v980_v33 = vsel %vm862_vm2, %v5896_v28, %v5897_v19  ;;  %v7605_v11 = vmul.f32 %v971_v10, %v7058_v24  ;;  %v1002_v13 = vmul.f32 %v978_v18, %v10042_v12  ;;  %v1006_v41 = vmul.f32 %v982_v53, %v7056_v15  ;;  %v10044_v10 = vld [vmem:[#allocation9_spill] sm:$0xff] }
  0xab   : > { %6199 = vrot.lane.b32.xlu1 %v6907_v22, %s6821_s20  ;;  %6194 = vrot.lane.b32.xlu0 %v10043_v32, %s6821_s20  ;;  %v1001_v22 = vmul.f32 %v977_v39, %v7058_v24  ;;  %v7611_v51 = vmul.f32 %v976_v34, %v7056_v15  ;;  %v7614_v56 = vmul.f32 %v974_v44, %v7058_v24  ;;  %v5912_v30 = vunpack.i.h.bf16 %v5910_v43 }
  0xac   : > { %v7616_v21 = vadd.f32 %v996_v20, %v888_v6  ;;  %v7619_v16 = vadd.f32 %v999_v26, %v7537_v35  ;;  %v7621_v29 = vadd.f32 %v1003_v50, %v895_v27  ;;  %v1005_v19 = vmul.f32 %v981_v17, %v10042_v12 }
  0xad   : > { %v5920_v48 = vpop.permute.xlu1 %5919  ;;  %v5915_v55 = vpop.permute.xlu0 %5914  ;;  %v1004_v28 = vmul.f32 %v980_v33, %v7058_v24  ;;  %v5911_v18 = vunpack.i.l.bf16 %v5910_v43  ;;  %v5907_v39 = vunpack.i.h.bf16 %v5905_v47  ;;  %v7630_v35 = vadd.f32 %v1001_v22, %v7565_v49  ;;  %v10045_v49 = vld [vmem:[#allocation10_spill] sm:$0xff] }
  0xae   : > { %v5921_v20 = vunpack.i.l.bf16 %v5920_v48  ;;  %v5917_v6 = vunpack.i.h.bf16 %v5915_v55  ;;  %v1018_v27 = vadd.f32 %v1006_v41, %v898_v14  ;;  %v5906_v26 = vunpack.i.l.bf16 %v5905_v47  ;;  %v7642_v41 = vld [vmem:[%s6890_s8 + $0x18] sm:$0xff] }
  0xaf   : > { %6209 = vrot.lane.b32.xlu1 %v7390_v2, %s6821_s20  ;;  %6204 = vrot.lane.b32.xlu0 %v10044_v10, %s6821_s20  ;;  %v1014_v44 = vadd.f32 %v1002_v13, %v7555_v40  ;;  %v1016_v2 = vadd.f32 %v1004_v28, %v896_v0  ;;  %v5922_v10 = vunpack.i.h.bf16 %v5920_v48  ;;  %v5916_v43 = vunpack.i.l.bf16 %v5915_v55  ;;  %10046 = vst [vmem:[#allocation7_spill] sm:$0xff] %v7642_v41 }
  0xb0   : > { %v1017_v14 = vadd.f32 %v1005_v19, %v897_v31  ;;  %v1093_v47 = vsel %vm862_vm2, %v5911_v18, %v5912_v30  ;;  %v1092_v22 = vsel %vm862_vm2, %v5907_v39, %v5911_v18  ;;  %v1095_v40 = vsel %vm862_vm2, %v5917_v6, %v5921_v20 }
  0xb1   : > { %v5930_v53 = vpop.permute.xlu1 %5929  ;;  %v5925_v34 = vpop.permute.xlu0 %5924  ;;  %v1091_v0 = vsel %vm862_vm2, %v5906_v26, %v5907_v39  ;;  %v9919_v39 = vunpack.c.l.bf16 %v7642_v41 }
  0xb2   : > { %v5932_v50 = vunpack.i.h.bf16 %v5930_v53  ;;  %v5931_v17 = vunpack.i.l.bf16 %v5930_v53  ;;  %v5927_v33 = vunpack.i.h.bf16 %v5925_v34  ;;  %v5926_v54 = vunpack.i.l.bf16 %v5925_v34 }
  0xb3   : > { %6219 = vrot.lane.b32.xlu1 %v7405_v38, %s6821_s20  ;;  %6214 = vrot.lane.b32.xlu0 %v10045_v49, %s6821_s20  ;;  %v1096_v49 = vsel %vm862_vm2, %v5921_v20, %v5922_v10  ;;  %v1094_v38 = vsel %vm862_vm2, %v5916_v43, %v5917_v6 }
  0xb4   : > { %v1098_v13 = vsel %vm862_vm2, %v5927_v33, %v5931_v17  ;;  %v1099_v48 = vsel %vm862_vm2, %v5931_v17, %v5932_v50  ;;  %v1097_v55 = vsel %vm862_vm2, %v5926_v54, %v5927_v33  ;;  %v1119_v54 = vmul.f32 %v1095_v40, %v7097_v52 }
  0xb5   : > { %v5940_v28 = vpop.permute.xlu1 %5939  ;;  %v5935_v53 = vpop.permute.xlu0 %5934  ;;  %v1122_v31 = vmul.f32 %v1098_v13, %v7097_v52  ;;  %v1123_v26 = vmul.f32 %v1099_v48, %v7072_v37  ;;  %v1121_v20 = vmul.f32 %v1097_v55, %v7085_v1  ;;  %v1120_v48 = vmul.f32 %v1096_v49, %v7072_v37 }
  0xb6   : > { %v5942_v19 = vunpack.i.h.bf16 %v5940_v28  ;;  %v5941_v30 = vunpack.i.l.bf16 %v5940_v28  ;;  %v5937_v34 = vunpack.i.h.bf16 %v5935_v53  ;;  %v5936_v18 = vunpack.i.l.bf16 %v5935_v53 }
  0xb7   : > { %6229 = vrot.lane.b32.xlu1 %v7407_v63, %s6821_s20  ;;  %6224 = vrot.lane.b32.xlu0 %v7238_v36, %s6821_s20  ;;  %v1118_v28 = vmul.f32 %v1094_v38, %v7085_v1  ;;  %v1134_v53 = vadd.f32 %v1122_v31, %v1014_v44  ;;  %v1012_v49 = vadd.f32 %v7611_v51, %v7547_v59 }
  0xb8   : > { %v1102_v50 = vsel %vm862_vm2, %v5941_v30, %v5942_v19  ;;  %v1101_v17 = vsel %vm862_vm2, %v5937_v34, %v5941_v30  ;;  %v1100_v10 = vsel %vm862_vm2, %v5936_v18, %v5937_v34  ;;  %v1116_v19 = vmul.f32 %v1092_v22, %v7097_v52 }
  0xb9   : > { %v1126_v6 = vmul.f32 %v1102_v50, %v7072_v37  ;;  %v1124_v33 = vmul.f32 %v1100_v10, %v7085_v1  ;;  %v7663_v43 = vpop.permute.xlu1 %5949  ;;  %v7665_v13 = vpop.permute.xlu0 %5944  ;;  %v1125_v40 = vmul.f32 %v1101_v17, %v7097_v52  ;;  %v9918_v18 = vunpack.c.h.bf16 %v7642_v41 }
  0xba   : > { %v1010_v38 = vadd.f32 %v7614_v56, %v7518_v8  ;;  %v1117_v44 = vmul.f32 %v1093_v47, %v7072_v37  ;;  %v1131_v22 = vadd.f32 %v1119_v54, %v7619_v16  ;;  %v1115_v31 = vmul.f32 %v1091_v0, %v7085_v1  ;;  %v7695_v16 = vld [vmem:[%s6890_s8 + $0x80] sm:$0xff] }
  0xbb   : > { %6239 = vrot.lane.b32.xlu1 %v7420_v46, %s6821_s20  ;;  %6234 = vrot.lane.b32.xlu0 %v7248_v60, %s6821_s20  ;;  %v1137_v55 = vadd.f32 %v1125_v40, %v1017_v14  ;;  %v1138_v30 = vadd.f32 %v1126_v6, %v1018_v27  ;;  %v1136_v34 = vadd.f32 %v1124_v33, %v1016_v2  ;;  %v10050_v0 = vunpack.c.l.bf16 %v7367_v62 }
  0xbc   : > { %v1135_v14 = vadd.f32 %v1123_v26, %v7621_v29  ;;  %v1133_v17 = vadd.f32 %v1121_v20, %v7630_v35  ;;  %v1009_v59 = vadd.f32 %v7600_v4, %v7551_v45  ;;  %v1007_v8 = vadd.f32 %v7605_v11, %v7521_v25  ;;  %10047 = vst [vmem:[#allocation8_spill] sm:$0xff] %v7695_v16  ;;  %v7706_v4 = vld [vmem:[%s6890_s8 + $0x90] sm:$0xff] }
  0xbd   : > { %v7683_v50 = vpop.permute.xlu1 %5959  ;;  %v7685_v27 = vpop.permute.xlu0 %5954  ;;  %v1143_v2 = vpack.c.bf16 %v1137_v55, %v1134_v53  ;;  %v1128_v51 = vadd.f32 %v1116_v19, %v7616_v21  ;;  %v1132_v56 = vadd.f32 %v1120_v48, %v1012_v49  ;;  %v1130_v45 = vadd.f32 %v1118_v28, %v1010_v38  ;;  %v7728_v26 = vld [vmem:[%s6890_s8 + $0x30] sm:$0xff]  ;;  %v7744_v19 = vld [vmem:[%s6890_s8 + $0x38] sm:$0xff]  ;;  %v7747_v55 = vld [vmem:[%s6890_s8 + $0x20] sm:$0xff] }
  0xbe   : > { %v7701_v29 = vpack.c.bf16 %v1138_v30, %v1135_v14  ;;  %v7703_v35 = vpack.c.bf16 %v1136_v34, %v1133_v17  ;;  %v10048_v11 = vunpack.c.l.bf16 %v7494_v9  ;;  %v7720_v47 = vpack.i.bf16 %v9918_v18, %v9919_v39  ;;  %10054 = vst [vmem:[#allocation34_spill] sm:$0xff] %v7744_v19  ;;  %v7750_v30 = vld [vmem:[%s6890_s8 + $0x28] sm:$0xff]  ;;  %v10057_v49 = vld [vmem:[#allocation18_spill] sm:$0xff]  ;;  %v10058_v38 = vld [vmem:[#allocation21_spill] sm:$0xff] }
  0xbf   : > { %6249 = vrot.lane.b32.xlu1 %v7426_v7, %s6821_s20  ;;  %6244 = vrot.lane.b32.xlu0 %v7428_v3, %s6821_s20  ;;  %v7708_v25 = vpack.c.bf16 %v1131_v22, %v1128_v51  ;;  %v10049_v7 = vunpack.c.h.bf16 %v7494_v9  ;;  %v7725_v54 = vpack.i.bf16 %v7411_v23, %v10050_v0  ;;  %v1129_v6 = vadd.f32 %v1117_v44, %v1009_v59  ;;  %v7765_v51 = vld [vmem:[%s6890_s8 + $0x60] sm:$0xff] }
  0xc0   : > { %1164 = vmatprep.subr.bf16.mxu0 %v1143_v2  ;;  %5659 = vmatpush3.bf16.msra.mxu1 %v7701_v29  ;;  %v1127_v33 = vadd.f32 %v1115_v31, %v1007_v8  ;;  %v10051_v40 = vunpack.c.h.bf16 %v7440_v58  ;;  %v10052_v48 = vunpack.c.l.bf16 %v7431_v42  ;;  %v9927_v53 = vunpack.c.h.bf16 %v7695_v16  ;;  %10055 = vst [vmem:[#allocation35_spill] sm:$0xff] %v7750_v30  ;;  %v10060_v31 = vld [vmem:[#allocation16_spill] sm:$0xff]  ;;  %10063 = vst [vmem:[#allocation21_spill] sm:$0xff] %v7765_v51  ;;  %v10071_v44 = vld [vmem:[#allocation14_spill] sm:$0xff] }
  0xc1   : > { %v7714_v21 = vpack.i.bf16 %v10049_v7, %v10048_v11  ;;  %1165 = vmatpush1.bf16.msra.mxu0 %v7703_v35  ;;  %v7732_v10 = vpop.permute.xlu1 %5969  ;;  %v7734_v20 = vpop.permute.xlu0 %5964  ;;  %v10056_v34 = vmov 0.0   ;;  %v10059_v22 = vunpack.c.l.bf16 %v7440_v58  ;;  %v10061_v14 = vunpack.c.l.bf16 %v10060_v31  ;;  %v7768_v11 = vld [vmem:[%s6890_s8 + $0x68] sm:$0xff]  ;;  %v10065_v7 = vld [vmem:[#allocation25_spill] sm:$0xff] }
  0xc2   : > { %v7740_v28 = vpack.i.bf16 %v10052_v48, %v10051_v40  ;;  %1166 = vmatprep.subr.bf16.mxu0 %v7708_v25  ;;  %5660 = vmatprep.subr.bf16.mxu1 %v10056_v34  ;;  %v3215_v59 = vunpack.c.l.bf16 %v7695_v16  ;;  %v3219_v8 = vunpack.c.l.bf16 %v7706_v4  ;;  %10064 = vst [vmem:[#allocation16_spill] sm:$0xff] %v7768_v11  ;;  %v10066_v0 = vpack.i.bf16 %v7411_v23, %v10058_v38 }
  0xc3   : > { %v7760_v17 = vpack.i.bf16 %v10061_v14, %v10059_v22  ;;  %6259 = vrot.lane.b32.xlu1 %v10065_v7, %s6821_s20  ;;  %v7776_v58 = vpack.c.bf16 %v1132_v56, %v1129_v6  ;;  %v1139_v40 = vpack.c.bf16 %v1130_v45, %v1127_v33  ;;  %v3546_v22 = vunpack.c.h.bf16 %v7728_v26  ;;  %v5426_v56 = vld [vmem:[%s9873_s2 + $0x2] sm:$0x3]  ;;  %v10067_v45 = vld [vmem:[#allocation19_spill] sm:$0xff]  ;;  %383 = vst [vmem:[%s9295_s11 + $0x8] sm:$0xf] %v10056_v34 }
  0xc4   : > { %10053 = vst [vmem:[#allocation33_spill] sm:$0xff] %v7740_v28  ;;  %6254 = vrot.lane.b32.xlu0 %v10066_v0, %s6821_s20  ;;  %v3547_v31 = vunpack.c.l.bf16 %v7744_v19  ;;  %v3542_v14 = vunpack.c.h.bf16 %v7747_v55  ;;  %v3543_v18 = vunpack.c.l.bf16 %v7750_v30  ;;  %v10068_v6 = vunpack.c.l.bf16 %v10067_v45  ;;  %385 = vst [vmem:[%s9303_s15 + $0x8] sm:$0xf] %v10056_v34 }
  0xc5   : > { %10062 = vst [vmem:[#allocation18_spill] sm:$0xff] %v7760_v17  ;;  %5661 = vmatpush3.bf16.msra.mxu1 %v7776_v58  ;;  %1167 = vmatpush1.bf16.msra.mxu0 %v1139_v40  ;;  %v7784_v7 = vpop.permute.xlu1 %5979  ;;  %v7786_v39 = vpop.permute.xlu0 %5974  ;;  %v10070_v0 = vunpack.c.h.bf16 %v7367_v62  ;;  %v10072_v48 = vunpack.c.h.bf16 %v10071_v44  ;;  %v3651_v41 = vunpack.c.h.bf16 %v7765_v51  ;;  %v3652_v19 = vunpack.c.l.bf16 %v7768_v11  ;;  %v10075_v62 = vld [vmem:[#allocation26_spill] sm:$0xff]  ;;  %v10076_v44 = vld [vmem:[#allocation11_spill] sm:$0xff] }
  0xc6   : > { %v7795_v33 = vpack.i.bf16 %v10068_v6, %v9927_v53  ;;  %v5952_v28 = vunpack.i.h.bf16 %v7663_v43  ;;  %v5951_v30 = vunpack.i.l.bf16 %v7663_v43  ;;  %v5947_v16 = vunpack.i.h.bf16 %v7665_v13  ;;  %1260 = vmatprep.subr.bf16.mxu0 %v1143_v2  ;;  %5666 = vmatprep.subr.bf16.mxu1 %v10056_v34  ;;  %v7834_v11 = vld [vmem:[%s6890_s8] sm:$0xff] }
  0xc7   : > { %v7801_v17 = vpack.i.bf16 %v10072_v48, %v10070_v0  ;;  %v7809_v6 = vpack.i.bf16 %v3219_v8, %v3215_v59  ;;  %6269 = vrot.lane.b32.xlu1 %v10075_v62, %s6821_s20  ;;  %v10077_v48 = vunpack.c.h.bf16 %v7706_v4  ;;  %v10078_v0 = vld [vmem:[#allocation23_spill] sm:$0xff]  ;;  %v10081_v43 = vunpack.c.h.bf16 %v10067_v45 }
  0xc8   : > { %10069 = vst [vmem:[#allocation25_spill] sm:$0xff] %v7795_v33  ;;  %6264 = vrot.lane.b32.xlu0 %v10076_v44, %s6821_s20  ;;  %v10079_v53 = vunpack.c.l.bf16 %v10078_v0  ;;  %v10082_v2 = vunpack.c.h.bf16 %v10078_v0  ;;  %v10084_v59 = vunpack.c.h.bf16 %v7431_v42  ;;  %v10085_v8 = vld [vmem:[#allocation15_spill] sm:$0xff]  ;;  %5663 = vmatmul.mubr.msk.bf16.vlgmr.msra.gmra.mxu1 %vm602_vm1, %v5426_v56  ;;  %v7840_v44 = vpack.i.bf16 %v3543_v18, %v3542_v14 }
  0xc9   : > { %10073 = vst [vmem:[#allocation19_spill] sm:$0xff] %v7801_v17  ;;  %10074 = vst [vmem:[#allocation14_spill] sm:$0xff] %v7809_v6  ;;  %v10086_v6 = vunpack.c.h.bf16 %v10085_v8  ;;  %5427 = vmatmul.mubr.msk.bf16.vlgmr.msra.gmra.mxu0 %vm602_vm1, %v5426_v56  ;;  %v5946_v42 = vunpack.i.l.bf16 %v7665_v13  ;;  %5667 = vmatpush3.bf16.msra.mxu1 %v7701_v29  ;;  %v7850_v0 = vpop.permute.xlu0 %5984  ;;  %v7852_v56 = vpack.i.bf16 %v3652_v19, %v3651_v41  ;;  %v3541_v18 = vunpack.c.l.bf16 %v7747_v55  ;;  %v10092_v55 = vld [vmem:[#allocation12_spill] sm:$0xff] }
  0xca   : > { %v7819_v17 = vpack.i.bf16 %v10079_v53, %v10077_v48  ;;  %v7825_v33 = vpack.i.bf16 %v10082_v2, %v10081_v43  ;;  %v7838_v53 = vpack.i.bf16 %v3547_v31, %v3546_v22  ;;  %10089 = vst [vmem:[#allocation36_spill] sm:$0xff] %v7840_v44  ;;  %v9931_v48 = vunpack.c.l.bf16 %v7765_v51  ;;  %1261 = vmatpush1.bf16.msra.mxu0 %v7703_v35 }
  0xcb   : > { %v7831_v62 = vpack.i.bf16 %v10086_v6, %v10084_v59  ;;  %v7848_v6 = vpop.permute.xlu1 %5989  ;;  %10090 = vst [vmem:[#allocation37_spill] sm:$0xff] %v7852_v56  ;;  %v3545_v22 = vunpack.c.l.bf16 %v7728_v26  ;;  %v1412_v31 = vsel %vm1409_vm3, %v5951_v30, %v5952_v28  ;;  %v1411_v14 = vsel %vm1409_vm3, %v5947_v16, %v5951_v30  ;;  %1262 = vmatprep.subr.bf16.mxu0 %v7708_v25  ;;  %v10091_v28 = vld [vmem:[#allocation27_spill] sm:$0xff] }
  0xcc   : > { %10080 = vst [vmem:[#allocation26_spill] sm:$0xff] %v7819_v17  ;;  %10083 = vst [vmem:[#allocation11_spill] sm:$0xff] %v7825_v33  ;;  %v5962_v13 = vunpack.i.h.bf16 %v7683_v50  ;;  %5668 = vmatprep.subr.bf16.mxu1 %v10056_v34  ;;  %v9932_v29 = vunpack.c.h.bf16 %v7834_v11  ;;  %v5961_v35 = vunpack.i.l.bf16 %v7683_v50  ;;  %v5957_v41 = vunpack.i.h.bf16 %v7685_v27  ;;  %6279 = vrot.lane.b32.xlu1 %v10091_v28, %s6821_s20 }
  0xcd   : > { %10087 = vst [vmem:[#allocation23_spill] sm:$0xff] %v7831_v62  ;;  %10088 = vst [vmem:[#allocation15_spill] sm:$0xff] %v7838_v53  ;;  %v5956_v19 = vunpack.i.l.bf16 %v7685_v27  ;;  %v5972_v26 = vunpack.i.h.bf16 %v7732_v10  ;;  %6274 = vrot.lane.b32.xlu0 %v10092_v55, %s6821_s20  ;;  %v5971_v25 = vunpack.i.l.bf16 %v7732_v10  ;;  %v5967_v30 = vunpack.i.h.bf16 %v7734_v20  ;;  %5670 = vmatprep.mubr.msk.bf16.mxu1 %vm6817_vm0, %v10056_v34  ;;  %v7885_v59 = vpop.permute.xlu0 %5994 }
  0xce   : > { %v5966_v43 = vunpack.i.l.bf16 %v7734_v20  ;;  %v10093_v50 = vmov 0   ;;  %v7879_v27 = vpack.i.bf16 %v10058_v38, %v9931_v48  ;;  %v1410_v2 = vsel %vm1409_vm3, %v5946_v42, %v5947_v16  ;;  %5669 = vmatpush3.bf16.msra.mxu1 %v7776_v58  ;;  %1263 = vmatpush1.bf16.msra.mxu0 %v1139_v40  ;;  %v5429_v20 = vld [vmem:[%s9874_s3 + $0x2] sm:$0x3] }
  0xcf   : > { %1280 = vmatprep.mubr.bf16.mxu0 %v10093_v50  ;;  %v7883_v10 = vpop.permute.xlu1 %5999  ;;  %v7890_v8 = vpack.i.bf16 %v3545_v22, %v3541_v18  ;;  %v7893_v28 = vmul.f32 %v1412_v31, %v7052_v5  ;;  %v7896_v55 = vmul.f32 %v1411_v14, %v10041_v57  ;;  %v1415_v16 = vsel %vm1409_vm3, %v5961_v35, %v5962_v13  ;;  %v10098_v31 = vld [vmem:[#allocation29_spill] sm:$0xff]  ;;  %v10099_v14 = vld [vmem:[#allocation30_spill] sm:$0xff] }
  0xd0   : > { %10094 = vst [vmem:[#allocation27_spill] sm:$0xff] %v7879_v27  ;;  %5674 = vmatprep.subr.bf16.mxu1 %v10056_v34  ;;  %v10096_v58 = vunpack.c.l.bf16 %v7494_v9  ;;  %v1414_v42 = vsel %vm1409_vm3, %v5957_v41, %v5961_v35  ;;  %v1413_v18 = vsel %vm1409_vm3, %v5956_v19, %v5957_v41  ;;  %v1418_v22 = vsel %vm1409_vm3, %v5971_v25, %v5972_v26 }
  0xd1   : > { %10095 = vst [vmem:[#allocation12_spill] sm:$0xff] %v7890_v8  ;;  %6289 = vrot.lane.b32.xlu1 %v10098_v31, %s6821_s20  ;;  %6284 = vrot.lane.b32.xlu0 %v10099_v14, %s6821_s20  ;;  %v7914_v13 = vmul.f32 %v1410_v2, %v7041_v61  ;;  %v1417_v48 = vsel %vm1409_vm3, %v5967_v30, %v5971_v25  ;;  %v5981_v35 = vunpack.i.l.bf16 %v7784_v7  ;;  %v5977_v41 = vunpack.i.h.bf16 %v7786_v39  ;;  %v6005_v31 = vpop.permute.xlu0 %6004 }
  0xd2   : > { %v7904_v40 = vpack.i.bf16 %v10096_v58, %v9932_v29  ;;  %v1416_v58 = vsel %vm1409_vm3, %v5966_v43, %v5967_v30  ;;  %v5982_v29 = vunpack.i.h.bf16 %v7784_v7  ;;  %5671 = vmatmul.mubr.msk.bf16.vlgmr.msra.gmra.mxu1 %vm602_vm1, %v5429_v20  ;;  %5430 = vmatmul.mubr.msk.bf16.vlgmr.msra.gmra.mxu0 %vm602_vm1, %v5429_v20  ;;  %v5991_v19 = vunpack.i.l.bf16 %v7848_v6 }
  0xd3   : > { %v5987_v26 = vunpack.i.h.bf16 %v7850_v0  ;;  %v6010_v2 = vpop.permute.xlu1 %6009  ;;  %5678 = vmatprep.mubr.msk.bf16.mxu1 %vm6817_vm0, %v10056_v34  ;;  %1731 = vmatprep.mubr.bf16.mxu0 %v10093_v50  ;;  %v7929_v25 = vmul.f32 %v1415_v16, %v7052_v5  ;;  %v1438_v30 = vmul.f32 %v1414_v42, %v10041_v57  ;;  %v7933_v7 = vmul.f32 %v1413_v18, %v7041_v61  ;;  %v10101_v16 = vld [vmem:[#allocation32_spill] sm:$0xff] }
  0xd4   : > { %10097 = vst [vmem:[#allocation38_spill] sm:$0xff] %v7904_v40  ;;  %v1442_v43 = vmul.f32 %v1418_v22, %v7052_v5  ;;  %v7937_v20 = vmul.f32 %v1417_v48, %v10041_v57  ;;  %v5976_v14 = vunpack.i.l.bf16 %v7786_v39  ;;  %v6001_v45 = vunpack.i.l.bf16 %v7883_v10  ;;  %v10100_v40 = vld [vmem:[#allocation31_spill] sm:$0xff] }
  0xd5   : > { %v5997_v51 = vunpack.i.h.bf16 %v7885_v59  ;;  %6299 = vrot.lane.b32.xlu1 %v10100_v40, %s6821_s20  ;;  %6294 = vrot.lane.b32.xlu0 %v10101_v16, %s6821_s20  ;;  %v7947_v42 = vmul.f32 %v1416_v58, %v7041_v61  ;;  %v1421_v18 = vsel %vm1409_vm3, %v5981_v35, %v5982_v29  ;;  %v6012_v22 = vunpack.i.h.bf16 %v6010_v2  ;;  %v6015_v40 = vpop.permute.xlu0 %6014 }
  0xd6   : > { %v6011_v48 = vunpack.i.l.bf16 %v6010_v2  ;;  %v1420_v8 = vsel %vm1409_vm3, %v5977_v41, %v5981_v35  ;;  %v5992_v39 = vunpack.i.h.bf16 %v7848_v6  ;;  %v1519_v27 = vsel %vm1409_vm3, %v5987_v26, %v5991_v19  ;;  %v10102_v6 = vld [vmem:[#allocation13_spill] sm:$0xff] }
  0xd7   : > { %v5986_v56 = vunpack.i.l.bf16 %v7850_v0  ;;  %v6020_v23 = vpop.permute.xlu1 %6019  ;;  %v6007_v44 = vunpack.i.h.bf16 %v6005_v31  ;;  %v6006_v53 = vunpack.i.l.bf16 %v6005_v31  ;;  %v1419_v58 = vsel %vm1409_vm3, %v5976_v14, %v5977_v41 }
  0xd8   : > { %v6022_v16 = vunpack.i.h.bf16 %v6020_v23  ;;  %v6021_v62 = vunpack.i.l.bf16 %v6020_v23  ;;  %v6002_v29 = vunpack.i.h.bf16 %v7883_v10  ;;  %v1522_v2 = vsel %vm1409_vm3, %v5997_v51, %v6001_v45 }
  0xd9   : > { %v5996_v35 = vunpack.i.l.bf16 %v7885_v59  ;;  %6309 = vrot.lane.b32.xlu1 %v7714_v21, %s6822_s28  ;;  %6304 = vrot.lane.b32.xlu0 %v10102_v6, %s6822_s28  ;;  %v1445_v0 = vmul.f32 %v1421_v18, %v7052_v5  ;;  %v1526_v31 = vsel %vm1409_vm3, %v6011_v48, %v6012_v22  ;;  %v6017_v23 = vunpack.i.h.bf16 %v6015_v40  ;;  %v6025_v9 = vpop.permute.xlu0 %6024 }
  0xda   : > { %v6016_v33 = vunpack.i.l.bf16 %v6015_v40  ;;  %v1444_v41 = vmul.f32 %v1420_v8, %v10041_v57  ;;  %v1520_v10 = vsel %vm1409_vm3, %v5991_v19, %v5992_v39  ;;  %v1543_v14 = vmul.f32 %v1519_v27, %v10042_v12 }
  0xdb   : > { %v1518_v59 = vsel %vm1409_vm3, %v5986_v56, %v5987_v26  ;;  %v6030_v17 = vpop.permute.xlu1 %6029  ;;  %v1546_v21 = vmul.f32 %v1522_v2, %v10042_v12  ;;  %v1525_v6 = vsel %vm1409_vm3, %v6007_v44, %v6011_v48  ;;  %v1524_v18 = vsel %vm1409_vm3, %v6006_v53, %v6007_v44 }
  0xdc   : > { %v1529_v22 = vsel %vm1409_vm3, %v6021_v62, %v6022_v16  ;;  %v1523_v40 = vsel %vm1409_vm3, %v6001_v45, %v6002_v29  ;;  %v1521_v8 = vsel %vm1409_vm3, %v5996_v35, %v5997_v51  ;;  %v1550_v19 = vmul.f32 %v1526_v31, %v7056_v15  ;;  %v10103_v31 = vld [vmem:[#allocation17_spill] sm:$0xff] }
  0xdd   : > { %6319 = vrot.lane.b32.xlu1 %v7720_v47, %s6822_s28  ;;  %6314 = vrot.lane.b32.xlu0 %v10043_v32, %s6822_s28  ;;  %v1443_v56 = vmul.f32 %v1419_v58, %v7041_v61  ;;  %v7981_v27 = vmul.f32 %v1520_v10, %v7056_v15  ;;  %v1528_v53 = vsel %vm1409_vm3, %v6017_v23, %v6021_v62  ;;  %v6035_v32 = vpop.permute.xlu0 %6034  ;;  %v6032_v35 = vunpack.i.h.bf16 %v6030_v17 }
  0xde   : > { %v1527_v44 = vsel %vm1409_vm3, %v6016_v33, %v6017_v23  ;;  %v7986_v45 = vmul.f32 %v1518_v59, %v7058_v24  ;;  %v1549_v51 = vmul.f32 %v1525_v6, %v10042_v12  ;;  %v1548_v26 = vmul.f32 %v1524_v18, %v7058_v24  ;;  %v10104_v23 = vld [vmem:[#allocation9_spill] sm:$0xff] }
  0xdf   : > { %v1553_v47 = vmul.f32 %v1529_v22, %v7056_v15  ;;  %v6040_v48 = vpop.permute.xlu1 %6039  ;;  %v7992_v39 = vmul.f32 %v1523_v40, %v7056_v15  ;;  %v7995_v16 = vmul.f32 %v1521_v8, %v7058_v24  ;;  %v7998_v62 = vadd.f32 %v1543_v14, %v7896_v55 }
  0xe0   : > { %v8000_v33 = vadd.f32 %v1546_v21, %v1438_v30  ;;  %v8002_v58 = vadd.f32 %v1550_v19, %v1442_v43  ;;  %v1552_v29 = vmul.f32 %v1528_v53, %v10042_v12  ;;  %v1551_v2 = vmul.f32 %v1527_v44, %v7058_v24  ;;  %v10106_v24 = vld [vmem:[#allocation10_spill] sm:$0xff] }
  0xe1   : > { %6329 = vrot.lane.b32.xlu1 %v10103_v31, %s6822_s28  ;;  %6324 = vrot.lane.b32.xlu0 %v10104_v23, %s6822_s28  ;;  %v6031_v10 = vunpack.i.l.bf16 %v6030_v17  ;;  %v6027_v59 = vunpack.i.h.bf16 %v6025_v9  ;;  %v6041_v6 = vunpack.i.l.bf16 %v6040_v48  ;;  %v6037_v55 = vunpack.i.h.bf16 %v6035_v32  ;;  %v6045_v18 = vpop.permute.xlu0 %6044  ;;  %v10105_v17 = vld [vmem:[#allocation20_spill] sm:$0xff] }
  0xe2   : > { %v8011_v30 = vadd.f32 %v1548_v26, %v7947_v42  ;;  %v1565_v43 = vadd.f32 %v1553_v47, %v1445_v0  ;;  %v6026_v14 = vunpack.i.l.bf16 %v6025_v9  ;;  %v1561_v22 = vadd.f32 %v1549_v51, %v7937_v20 }
  0xe3   : > { %v6050_v21 = vpop.permute.xlu1 %6049  ;;  %v6047_v19 = vunpack.i.h.bf16 %v6045_v18  ;;  %v6046_v53 = vunpack.i.l.bf16 %v6045_v18  ;;  %v1563_v44 = vadd.f32 %v1551_v2, %v1443_v56  ;;  %v6042_v31 = vunpack.i.h.bf16 %v6040_v48 }
  0xe4   : > { %v6052_v40 = vunpack.i.h.bf16 %v6050_v21  ;;  %v6051_v8 = vunpack.i.l.bf16 %v6050_v21  ;;  %v6036_v23 = vunpack.i.l.bf16 %v6035_v32  ;;  %v1564_v42 = vadd.f32 %v1552_v29, %v1444_v41 }
  0xe5   : > { %6339 = vrot.lane.b32.xlu1 %v10105_v17, %s6822_s28  ;;  %6334 = vrot.lane.b32.xlu0 %v10106_v24, %s6822_s28  ;;  %v1640_v9 = vsel %vm1409_vm3, %v6031_v10, %v6032_v35  ;;  %v1639_v0 = vsel %vm1409_vm3, %v6027_v59, %v6031_v10  ;;  %v1642_v20 = vsel %vm1409_vm3, %v6037_v55, %v6041_v6  ;;  %v6055_v32 = vpop.permute.xlu0 %6054 }
  0xe6   : > { %v1645_v51 = vsel %vm1409_vm3, %v6047_v19, %v6051_v8  ;;  %v1638_v26 = vsel %vm1409_vm3, %v6026_v14, %v6027_v59  ;;  %v1646_v56 = vsel %vm1409_vm3, %v6051_v8, %v6052_v40  ;;  %v1644_v47 = vsel %vm1409_vm3, %v6046_v53, %v6047_v19 }
  0xe7   : > { %v6060_v48 = vpop.permute.xlu1 %6059  ;;  %v1669_v2 = vmul.f32 %v1645_v51, %v7097_v52  ;;  %v6057_v29 = vunpack.i.h.bf16 %v6055_v32  ;;  %v6056_v35 = vunpack.i.l.bf16 %v6055_v32  ;;  %v1643_v10 = vsel %vm1409_vm3, %v6041_v6, %v6042_v31 }
  0xe8   : > { %v6062_v24 = vunpack.i.h.bf16 %v6060_v48  ;;  %v6061_v41 = vunpack.i.l.bf16 %v6060_v48  ;;  %v1641_v21 = vsel %vm1409_vm3, %v6036_v23, %v6037_v55  ;;  %v1666_v59 = vmul.f32 %v1642_v20, %v7097_v52 }
  0xe9   : > { %6349 = vrot.lane.b32.xlu1 %v7407_v63, %s6822_s28  ;;  %6344 = vrot.lane.b32.xlu0 %v7238_v36, %s6822_s28  ;;  %v1670_v14 = vmul.f32 %v1646_v56, %v7072_v37  ;;  %v1647_v8 = vsel %vm1409_vm3, %v6056_v35, %v6057_v29  ;;  %v1668_v6 = vmul.f32 %v1644_v47, %v7085_v1  ;;  %v8042_v36 = vpop.permute.xlu0 %6064 }
  0xea   : > { %v1649_v18 = vsel %vm1409_vm3, %v6061_v41, %v6062_v24  ;;  %v1648_v40 = vsel %vm1409_vm3, %v6057_v29, %v6061_v41  ;;  %v1671_v19 = vmul.f32 %v1647_v8, %v7085_v1  ;;  %v1667_v31 = vmul.f32 %v1643_v10, %v7072_v37  ;;  %v5522_v24 = vld [vmem:[%s6890_s8 + $0x50] sm:$0xff] }
  0xeb   : > { %v1673_v55 = vmul.f32 %v1649_v18, %v7072_v37  ;;  %v8040_v63 = vpop.permute.xlu1 %6069  ;;  %v1672_v53 = vmul.f32 %v1648_v40, %v7097_v52  ;;  %v1665_v23 = vmul.f32 %v1641_v21, %v7085_v1  ;;  %v1681_v17 = vadd.f32 %v1669_v2, %v1561_v22  ;;  %v8102_v18 = vld [vmem:[%s6890_s8 + $0x98] sm:$0xff] }
  0xec   : > { %v1663_v20 = vmul.f32 %v1639_v0, %v7097_v52  ;;  %v1683_v47 = vadd.f32 %v1671_v19, %v1563_v44  ;;  %v1559_v48 = vadd.f32 %v7992_v39, %v7929_v25  ;;  %v1557_v32 = vadd.f32 %v7995_v16, %v7933_v7  ;;  %v8069_v7 = vld [vmem:[%s6890_s8 + $0x48] sm:$0xff]  ;;  %v8072_v16 = vld [vmem:[%s6890_s8 + $0x10] sm:$0xff]  ;;  %10109 = vst [vmem:[#allocation31_spill] sm:$0xff] %v8102_v18 }
  0xed   : > { %6359 = vrot.lane.b32.xlu1 %v7420_v46, %s6822_s28  ;;  %6354 = vrot.lane.b32.xlu0 %v7248_v60, %s6822_s28  ;;  %v1684_v51 = vadd.f32 %v1672_v53, %v1564_v42  ;;  %v1685_v56 = vadd.f32 %v1673_v55, %v1565_v43  ;;  %v1664_v22 = vmul.f32 %v1640_v9, %v7072_v37  ;;  %v8059_v46 = vld [vmem:[%s6890_s8 + $0x40] sm:$0xff]  ;;  %v8064_v42 = vpop.permute.xlu0 %6074  ;;  %v10110_v55 = vld [vmem:[#allocation35_spill] sm:$0xff]  ;;  %v10111_v53 = vld [vmem:[#allocation33_spill] sm:$0xff] }
  0xee   : > { %v1678_v0 = vadd.f32 %v1666_v59, %v8000_v33  ;;  %v1662_v2 = vmul.f32 %v1638_v26, %v7085_v1  ;;  %v1682_v25 = vadd.f32 %v1670_v14, %v8002_v58  ;;  %v1680_v39 = vadd.f32 %v1668_v6, %v8011_v30  ;;  %10107 = vst [vmem:[#allocation29_spill] sm:$0xff] %v8072_v16 }
  0xef   : > { %v8062_v60 = vpop.permute.xlu1 %6079  ;;  %v1690_v43 = vpack.c.bf16 %v1684_v51, %v1681_v17  ;;  %v1556_v33 = vadd.f32 %v7981_v27, %v7893_v28  ;;  %v1554_v44 = vadd.f32 %v7986_v45, %v7914_v13  ;;  %v1675_v9 = vadd.f32 %v1663_v20, %v7998_v62  ;;  %v8086_v28 = vld [vmem:[%s6890_s8 + $0x58] sm:$0xff]  ;;  %v8094_v62 = vld [vmem:[%s6890_s8 + $0x88] sm:$0xff]  ;;  %v10113_v20 = vld [vmem:[#allocation34_spill] sm:$0xff] }
  0xf0   : > { %v1679_v26 = vadd.f32 %v1667_v31, %v1559_v48  ;;  %v1691_v58 = vpack.c.bf16 %v1685_v56, %v1682_v25  ;;  %v1689_v30 = vpack.c.bf16 %v1683_v47, %v1680_v39  ;;  %v1677_v41 = vadd.f32 %v1665_v23, %v1557_v32  ;;  %10108 = vst [vmem:[#allocation30_spill] sm:$0xff] %v8094_v62  ;;  %v10114_v47 = vld [vmem:[#allocation16_spill] sm:$0xff]  ;;  %v6786_v32 = vld [vmem:[%s6890_s8 + $0x78] sm:$0xff]  ;;  %v10115_v39 = vld [vmem:[#allocation7_spill] sm:$0xff] }
  0xf1   : > { %6369 = vrot.lane.b32.xlu1 %v7725_v54, %s6822_s28  ;;  %6364 = vrot.lane.b32.xlu0 %v7428_v3, %s6822_s28  ;;  %v3643_v29 = vunpack.c.h.bf16 %v8059_v46  ;;  %v8088_v13 = vpack.c.bf16 %v1678_v0, %v1675_v9  ;;  %v3644_v27 = vunpack.c.l.bf16 %v8069_v7  ;;  %v9945_v45 = vunpack.c.h.bf16 %v8072_v16  ;;  %v8098_v35 = vpop.permute.xlu0 %6084 }
  0xf2   : > { %1711 = vmatprep.subr.bf16.mxu0 %v1690_v43  ;;  %v3533_v54 = vunpack.c.l.bf16 %v7834_v11  ;;  %5675 = vmatpush3.bf16.msra.mxu1 %v1691_v58  ;;  %v1676_v10 = vadd.f32 %v1664_v22, %v1556_v33  ;;  %v1674_v21 = vadd.f32 %v1662_v2, %v1554_v44  ;;  %v3537_v59 = vunpack.c.l.bf16 %v8072_v16  ;;  %v5448_v2 = vld [vmem:[%s9873_s2 + $0x4] sm:$0x3] }
  0xf3   : > { %1712 = vmatpush1.bf16.msra.mxu0 %v1689_v30  ;;  %v8096_v3 = vpop.permute.xlu1 %6089  ;;  %v3647_v14 = vunpack.c.h.bf16 %v5522_v24  ;;  %5676 = vmatprep.subr.bf16.mxu1 %v10056_v34  ;;  %v3648_v40 = vunpack.c.l.bf16 %v8086_v28  ;;  %v3642_v8 = vunpack.c.l.bf16 %v8059_v46  ;;  %v3646_v6 = vunpack.c.l.bf16 %v5522_v24 }
  0xf4   : > { %1713 = vmatprep.subr.bf16.mxu0 %v8088_v13  ;;  %v3544_v19 = vunpack.c.h.bf16 %v10110_v55  ;;  %v10112_v31 = vpack.i.bf16 %v10058_v38, %v10057_v49  ;;  %v8115_v23 = vpack.c.bf16 %v1679_v26, %v1676_v10  ;;  %v1686_v17 = vpack.c.bf16 %v1677_v41, %v1674_v21 }
  0xf5   : > { %6379 = vrot.lane.b32.xlu1 %v10111_v53, %s6822_s28  ;;  %v3548_v51 = vunpack.c.h.bf16 %v10113_v20  ;;  %v9944_v56 = vunpack.c.l.bf16 %v8094_v62  ;;  %v9943_v48 = vunpack.c.h.bf16 %v10114_v47  ;;  %v3657_v22 = vunpack.c.h.bf16 %v6786_v32  ;;  %v8125_v38 = vpop.permute.xlu0 %6094 }
  0xf6   : > { %6374 = vrot.lane.b32.xlu0 %v10112_v31, %s6822_s28  ;;  %v9942_v0 = vunpack.c.l.bf16 %v8102_v18  ;;  %5677 = vmatpush3.bf16.msra.mxu1 %v8115_v23  ;;  %v8130_v25 = vpack.i.bf16 %v3644_v27, %v3643_v29  ;;  %v10116_v33 = vunpack.c.l.bf16 %v10115_v39  ;;  %v8138_v9 = vpack.i.bf16 %v3537_v59, %v3533_v54  ;;  %v10117_v29 = vld [vmem:[#allocation18_spill] sm:$0xff]  ;;  %v10118_v27 = vld [vmem:[#allocation24_spill] sm:$0xff]  ;;  %v6787_v31 = vld [vmem:[%s6890_s8 + $0xa8] sm:$0xff] }
  0xf7   : > { %1714 = vmatpush1.bf16.msra.mxu0 %v1686_v17  ;;  %v8123_v46 = vpop.permute.xlu1 %6099  ;;  %v6072_v26 = vunpack.i.h.bf16 %v8040_v63  ;;  %v6071_v24 = vunpack.i.l.bf16 %v8040_v63  ;;  %v6067_v41 = vunpack.i.h.bf16 %v8042_v36  ;;  %5682 = vmatprep.subr.bf16.mxu1 %v10056_v34  ;;  %v8144_v10 = vpack.i.bf16 %v3648_v40, %v3647_v14  ;;  %v10121_v63 = vld [vmem:[#allocation8_spill] sm:$0xff] }
  0xf8   : > { %v8136_v44 = vpack.i.bf16 %v10116_v33, %v9945_v45  ;;  %1807 = vmatprep.subr.bf16.mxu0 %v1690_v43  ;;  %v8150_v54 = vpack.i.bf16 %v3646_v6, %v3642_v8  ;;  %v8152_v21 = vpack.i.bf16 %v3548_v51, %v3544_v19  ;;  %v10122_v59 = vunpack.c.h.bf16 %v10121_v63  ;;  %v6788_v51 = vld [vmem:[%s6890_s8 + $0xb8] sm:$0xff] }
  0xf9   : > { %6389 = vrot.lane.b32.xlu1 %v10117_v29, %s6822_s28  ;;  %5679 = vmatmul.mubr.msk.bf16.vlgmr.msra.gmra.mxu1 %vm602_vm1, %v5448_v2  ;;  %v8164_v14 = vpack.i.bf16 %v3657_v22, %v9943_v48  ;;  %v10125_v40 = vunpack.c.h.bf16 %v7706_v4  ;;  %v6066_v6 = vunpack.i.l.bf16 %v8042_v36  ;;  %v8175_v19 = vpop.permute.xlu0 %6104  ;;  %v3773_v20 = vunpack.c.h.bf16 %v6787_v31  ;;  %v5451_v48 = vld [vmem:[%s9874_s3 + $0x4] sm:$0x3] }
  0xfa   : > { %6384 = vrot.lane.b32.xlu0 %v10118_v27, %s6822_s28  ;;  %10119 = vst [vmem:[#allocation32_spill] sm:$0xff] %v8150_v54  ;;  %10120 = vst [vmem:[#allocation13_spill] sm:$0xff] %v8152_v21  ;;  %v8158_v43 = vpack.i.bf16 %v9944_v56, %v10122_v59  ;;  %5449 = vmatmul.mubr.msk.bf16.vlgmr.msra.gmra.mxu0 %vm602_vm1, %v5448_v2  ;;  %v3777_v32 = vunpack.c.h.bf16 %v6788_v51  ;;  %v3765_v22 = vunpack.c.h.bf16 %v8094_v62  ;;  %v6082_v33 = vunpack.i.h.bf16 %v8062_v60  ;;  %v10135_v56 = vld [vmem:[#allocation14_spill] sm:$0xff] }
  0xfb   : > { %10124 = vst [vmem:[#allocation9_spill] sm:$0xff] %v8164_v14  ;;  %v8170_v8 = vpack.i.bf16 %v9942_v0, %v10125_v40  ;;  %5683 = vmatpush3.bf16.msra.mxu1 %v1691_v58  ;;  %1808 = vmatpush1.bf16.msra.mxu0 %v1689_v30  ;;  %v8173_v55 = vpop.permute.xlu1 %6109  ;;  %v1959_v4 = vsel %vm1956_vm4, %v6071_v24, %v6072_v26  ;;  %v3769_v36 = vunpack.c.h.bf16 %v8102_v18  ;;  %v6081_v58 = vunpack.i.l.bf16 %v8062_v60  ;;  %v10127_v26 = vld [vmem:[#allocation25_spill] sm:$0xff]  ;;  %v10129_v60 = vld [vmem:[#allocation28_spill] sm:$0xff] }
  0xfc   : > { %10123 = vst [vmem:[#allocation17_spill] sm:$0xff] %v8158_v43  ;;  %v1958_v2 = vsel %vm1956_vm4, %v6067_v41, %v6071_v24  ;;  %1809 = vmatprep.subr.bf16.mxu0 %v8088_v13  ;;  %5684 = vmatprep.subr.bf16.mxu1 %v10056_v34  ;;  %v6077_v30 = vunpack.i.h.bf16 %v8064_v42  ;;  %v6076_v63 = vunpack.i.l.bf16 %v8064_v42  ;;  %v6092_v59 = vunpack.i.h.bf16 %v8096_v3  ;;  %v10128_v24 = vld [vmem:[#allocation19_spill] sm:$0xff] }
  0xfd   : > { %10126 = vst [vmem:[#allocation20_spill] sm:$0xff] %v8170_v8  ;;  %6399 = vrot.lane.b32.xlu1 %v10127_v26, %s6822_s28  ;;  %v6091_v13 = vunpack.i.l.bf16 %v8096_v3  ;;  %v6087_v40 = vunpack.i.h.bf16 %v8098_v35  ;;  %v6086_v31 = vunpack.i.l.bf16 %v8098_v35  ;;  %5686 = vmatprep.mubr.msk.bf16.mxu1 %vm6817_vm0, %v10056_v34  ;;  %v10130_v42 = vunpack.c.h.bf16 %v10129_v60  ;;  %v8207_v26 = vld [vmem:[%s6890_s8 + $0x70] sm:$0xff]  ;;  %v8213_v35 = vpop.permute.xlu0 %6114 }
  0xfe   : > { %6394 = vrot.lane.b32.xlu0 %v10128_v24, %s6822_s28  ;;  %1827 = vmatprep.mubr.bf16.mxu0 %v10093_v50  ;;  %v10131_v51 = vunpack.c.h.bf16 %v10115_v39  ;;  %v1957_v24 = vsel %vm1956_vm4, %v6066_v6, %v6067_v41  ;;  %v8218_v60 = vpack.i.bf16 %v3777_v32, %v3773_v20  ;;  %v8230_v41 = vpack.i.bf16 %v3769_v36, %v3765_v22 }
  0xff   : > { %5685 = vmatpush3.bf16.msra.mxu1 %v8115_v23  ;;  %1810 = vmatpush1.bf16.msra.mxu0 %v1686_v17  ;;  %v8211_v3 = vpop.permute.xlu1 %6119  ;;  %v8226_v23 = vmul.f32 %v1958_v2, %v10041_v57  ;;  %v1962_v17 = vsel %vm1956_vm4, %v6081_v58, %v6082_v33  ;;  %v1961_v6 = vsel %vm1956_vm4, %v6077_v30, %v6081_v58  ;;  %v6102_v58 = vunpack.i.h.bf16 %v8123_v46 }
 0x100   : > { %v8204_v0 = vpack.i.bf16 %v10131_v51, %v10130_v42  ;;  %10133 = vst [vmem:[#allocation35_spill] sm:$0xff] %v8218_v60  ;;  %v8223_v51 = vmul.f32 %v1959_v4, %v7052_v5  ;;  %5690 = vmatprep.subr.bf16.mxu1 %v10056_v34  ;;  %10134 = vst [vmem:[#allocation33_spill] sm:$0xff] %v8230_v41  ;;  %v1960_v20 = vsel %vm1956_vm4, %v6076_v63, %v6077_v30  ;;  %v10136_v4 = vld [vmem:[#allocation26_spill] sm:$0xff] }
 0x101   : > { %v1965_v32 = vsel %vm1956_vm4, %v6091_v13, %v6092_v59  ;;  %6409 = vrot.lane.b32.xlu1 %v10135_v56, %s6822_s28  ;;  %v8241_v33 = vmul.f32 %v1957_v24, %v7041_v61  ;;  %v1964_v22 = vsel %vm1956_vm4, %v6087_v40, %v6091_v13  ;;  %v1963_v36 = vsel %vm1956_vm4, %v6086_v31, %v6087_v40  ;;  %v6125_v45 = vpop.permute.xlu0 %6124 }
 0x102   : > { %10132 = vst [vmem:[#allocation10_spill] sm:$0xff] %v8204_v0  ;;  %6404 = vrot.lane.b32.xlu0 %v10136_v4, %s6822_s28  ;;  %5687 = vmatmul.mubr.msk.bf16.vlgmr.msra.gmra.mxu1 %vm602_vm1, %v5451_v48  ;;  %v6101_v30 = vunpack.i.l.bf16 %v8123_v46  ;;  %v6097_v63 = vunpack.i.h.bf16 %v8125_v38  ;;  %v6111_v59 = vunpack.i.l.bf16 %v8173_v55  ;;  %v6107_v4 = vunpack.i.h.bf16 %v8175_v19 }
 0x103   : > { %5452 = vmatmul.mubr.msk.bf16.vlgmr.msra.gmra.mxu0 %vm602_vm1, %v5451_v48  ;;  %v6130_v24 = vpop.permute.xlu1 %6129  ;;  %5694 = vmatprep.mubr.msk.bf16.mxu1 %vm6817_vm0, %v10056_v34  ;;  %v8256_v13 = vmul.f32 %v1962_v17, %v7052_v5  ;;  %v8259_v48 = vmul.f32 %v1961_v6, %v10041_v57  ;;  %v8262_v46 = vmul.f32 %v1960_v20, %v7041_v61  ;;  %v6096_v2 = vunpack.i.l.bf16 %v8125_v38  ;;  %v10137_v17 = vld [vmem:[#allocation11_spill] sm:$0xff] }
 0x104   : > { %2278 = vmatprep.mubr.bf16.mxu0 %v10093_v50  ;;  %v8265_v40 = vmul.f32 %v1965_v32, %v7052_v5  ;;  %v8268_v31 = vmul.f32 %v1964_v22, %v10041_v57  ;;  %v6121_v42 = vunpack.i.l.bf16 %v8211_v3  ;;  %v6117_v39 = vunpack.i.h.bf16 %v8213_v35  ;;  %v10138_v6 = vld [vmem:[#allocation23_spill] sm:$0xff] }
 0x105   : > { %6419 = vrot.lane.b32.xlu1 %v10137_v17, %s6822_s28  ;;  %v8278_v20 = vmul.f32 %v1963_v36, %v7041_v61  ;;  %v1968_v32 = vsel %vm1956_vm4, %v6101_v30, %v6102_v58  ;;  %v6132_v41 = vunpack.i.h.bf16 %v6130_v24  ;;  %v6131_v22 = vunpack.i.l.bf16 %v6130_v24  ;;  %v6135_v17 = vpop.permute.xlu0 %6134 }
 0x106   : > { %6414 = vrot.lane.b32.xlu0 %v10138_v6, %s6822_s28  ;;  %v1967_v60 = vsel %vm1956_vm4, %v6097_v63, %v6101_v30  ;;  %v6112_v38 = vunpack.i.h.bf16 %v8173_v55  ;;  %v2066_v0 = vsel %vm1956_vm4, %v6107_v4, %v6111_v59  ;;  %v6106_v50 = vunpack.i.l.bf16 %v8175_v19  ;;  %v10139_v55 = vld [vmem:[#allocation15_spill] sm:$0xff]  ;;  %v10140_v19 = vld [vmem:[#allocation36_spill] sm:$0xff] }
 0x107   : > { %v6140_v8 = vpop.permute.xlu1 %6139  ;;  %v6127_v56 = vunpack.i.h.bf16 %v6125_v45  ;;  %v6126_v6 = vunpack.i.l.bf16 %v6125_v45  ;;  %v1966_v47 = vsel %vm1956_vm4, %v6096_v2, %v6097_v63  ;;  %v6122_v58 = vunpack.i.h.bf16 %v8211_v3  ;;  %v8296_v2 = vld [vmem:[%s6890_s8 + $0x78] sm:$0xff] }
 0x108   : > { %v6142_v18 = vunpack.i.h.bf16 %v6140_v8  ;;  %v6141_v36 = vunpack.i.l.bf16 %v6140_v8  ;;  %v2069_v24 = vsel %vm1956_vm4, %v6117_v39, %v6121_v42  ;;  %v6116_v30 = vunpack.i.l.bf16 %v8213_v35  ;;  %10141 = vst [vmem:[#allocation34_spill] sm:$0xff] %v8296_v2 }
 0x109   : > { %6429 = vrot.lane.b32.xlu1 %v10139_v55, %s6823_s12  ;;  %v1992_v62 = vmul.f32 %v1968_v32, %v7052_v5  ;;  %v2073_v45 = vsel %vm1956_vm4, %v6131_v22, %v6132_v41  ;;  %v6137_v8 = vunpack.i.h.bf16 %v6135_v17  ;;  %v6136_v14 = vunpack.i.l.bf16 %v6135_v17  ;;  %v6145_v16 = vpop.permute.xlu0 %6144 }
 0x10a   : > { %6424 = vrot.lane.b32.xlu0 %v10140_v19, %s6823_s12  ;;  %v1991_v3 = vmul.f32 %v1967_v60, %v10041_v57  ;;  %v2067_v63 = vsel %vm1956_vm4, %v6111_v59, %v6112_v38  ;;  %v2090_v35 = vmul.f32 %v2066_v0, %v10042_v12  ;;  %v2065_v43 = vsel %vm1956_vm4, %v6106_v50, %v6107_v4  ;;  %v10142_v0 = vld [vmem:[#allocation22_spill] sm:$0xff]  ;;  %v10144_v4 = vld [vmem:[#allocation37_spill] sm:$0xff] }
 0x10b   : > { %v6150_v55 = vpop.permute.xlu1 %6149  ;;  %v2093_v19 = vmul.f32 %v2069_v24, %v10042_v12  ;;  %v2072_v32 = vsel %vm1956_vm4, %v6127_v56, %v6131_v22  ;;  %v2071_v41 = vsel %vm1956_vm4, %v6126_v6, %v6127_v56  ;;  %v2076_v17 = vsel %vm1956_vm4, %v6141_v36, %v6142_v18  ;;  %v10145_v38 = vld [vmem:[#allocation6_spill] sm:$0xff] }
 0x10c   : > { %v2070_v5 = vsel %vm1956_vm4, %v6121_v42, %v6122_v58  ;;  %v2068_v60 = vsel %vm1956_vm4, %v6116_v30, %v6117_v39  ;;  %v2097_v59 = vmul.f32 %v2073_v45, %v7056_v15  ;;  %v10143_v50 = vpack.i.bf16 %v10057_v49, %v10142_v0 }
 0x10d   : > { %v1990_v56 = vmul.f32 %v1966_v47, %v7041_v61  ;;  %v8318_v18 = vmul.f32 %v2067_v63, %v7056_v15  ;;  %v2075_v42 = vsel %vm1956_vm4, %v6137_v8, %v6141_v36  ;;  %v2074_v39 = vsel %vm1956_vm4, %v6136_v14, %v6137_v8  ;;  %v6155_v45 = vpop.permute.xlu0 %6154 }
 0x10e   : > { %6439 = vrot.lane.b32.xlu1 %v10143_v50, %s6823_s12  ;;  %6434 = vrot.lane.b32.xlu0 %v10144_v4, %s6823_s12  ;;  %v8323_v6 = vmul.f32 %v2065_v43, %v10145_v38  ;;  %v2096_v49 = vmul.f32 %v2072_v32, %v10042_v12  ;;  %v2095_v58 = vmul.f32 %v2071_v41, %v10145_v38  ;;  %v6152_v41 = vunpack.i.h.bf16 %v6150_v55 }
 0x10f   : > { %v2100_v24 = vmul.f32 %v2076_v17, %v7056_v15  ;;  %v6160_v30 = vpop.permute.xlu1 %6159  ;;  %v8329_v47 = vmul.f32 %v2070_v5, %v7056_v15  ;;  %v8332_v63 = vmul.f32 %v2068_v60, %v10145_v38  ;;  %v8335_v36 = vadd.f32 %v2090_v35, %v8226_v23  ;;  %v10146_v5 = vld [vmem:[#allocation27_spill] sm:$0xff]  ;;  %v10147_v17 = vld [vmem:[#allocation12_spill] sm:$0xff] }
 0x110   : > { %v8338_v43 = vadd.f32 %v2093_v19, %v8259_v48  ;;  %v8341_v14 = vadd.f32 %v2097_v59, %v8265_v40  ;;  %v2099_v8 = vmul.f32 %v2075_v42, %v10042_v12  ;;  %v2098_v32 = vmul.f32 %v2074_v39, %v10145_v38 }
 0x111   : > { %v6151_v60 = vunpack.i.l.bf16 %v6150_v55  ;;  %v6147_v23 = vunpack.i.h.bf16 %v6145_v16  ;;  %v6161_v35 = vunpack.i.l.bf16 %v6160_v30  ;;  %v6157_v0 = vunpack.i.h.bf16 %v6155_v45  ;;  %v6165_v50 = vpop.permute.xlu0 %6164 }
 0x112   : > { %6449 = vrot.lane.b32.xlu1 %v10146_v5, %s6823_s12  ;;  %6444 = vrot.lane.b32.xlu0 %v10147_v17, %s6823_s12  ;;  %v8350_v48 = vadd.f32 %v2095_v58, %v8278_v20  ;;  %v2112_v40 = vadd.f32 %v2100_v24, %v1992_v62  ;;  %v6146_v19 = vunpack.i.l.bf16 %v6145_v16  ;;  %v2108_v42 = vadd.f32 %v2096_v49, %v8268_v31 }
 0x113   : > { %v6170_v59 = vpop.permute.xlu1 %6169  ;;  %v6167_v38 = vunpack.i.h.bf16 %v6165_v50  ;;  %v6166_v5 = vunpack.i.l.bf16 %v6165_v50  ;;  %v2110_v4 = vadd.f32 %v2098_v32, %v1990_v56  ;;  %v6162_v15 = vunpack.i.h.bf16 %v6160_v30 }
 0x114   : > { %v6172_v39 = vunpack.i.h.bf16 %v6170_v59  ;;  %v6171_v22 = vunpack.i.l.bf16 %v6170_v59  ;;  %v6156_v17 = vunpack.i.l.bf16 %v6155_v45  ;;  %v2111_v20 = vadd.f32 %v2099_v8, %v1991_v3 }
 0x115   : > { %v2187_v16 = vsel %vm1956_vm4, %v6151_v60, %v6152_v41  ;;  %v2186_v62 = vsel %vm1956_vm4, %v6147_v23, %v6151_v60  ;;  %v2189_v31 = vsel %vm1956_vm4, %v6157_v0, %v6161_v35  ;;  %v2185_v49 = vsel %vm1956_vm4, %v6146_v19, %v6147_v23  ;;  %v10148_v60 = vld [vmem:[#allocation38_spill] sm:$0xff] }
 0x116   : > { %6459 = vrot.lane.b32.xlu1 %v10118_v27, %s6823_s12  ;;  %6454 = vrot.lane.b32.xlu0 %v10111_v53, %s6823_s12  ;;  %v2192_v55 = vsel %vm1956_vm4, %v6167_v38, %v6171_v22  ;;  %v2193_v56 = vsel %vm1956_vm4, %v6171_v22, %v6172_v39  ;;  %v2191_v58 = vsel %vm1956_vm4, %v6166_v5, %v6167_v38  ;;  %v6175_v27 = vpop.permute.xlu0 %6174  ;;  %v9962_v38 = vunpack.c.l.bf16 %v8207_v26 }
 0x117   : > { %v6180_v24 = vpop.permute.xlu1 %6179  ;;  %v2216_v53 = vmul.f32 %v2192_v55, %v7097_v52  ;;  %v6177_v45 = vunpack.i.h.bf16 %v6175_v27  ;;  %v6176_v8 = vunpack.i.l.bf16 %v6175_v27  ;;  %v2190_v32 = vsel %vm1956_vm4, %v6161_v35, %v6162_v15  ;;  %v8378_v35 = vld [vmem:[%s6890_s8 + $0xb0] sm:$0xff] }
 0x118   : > { %v6182_v3 = vunpack.i.h.bf16 %v6180_v24  ;;  %v6181_v30 = vunpack.i.l.bf16 %v6180_v24  ;;  %v2188_v41 = vsel %vm1956_vm4, %v6156_v17, %v6157_v0  ;;  %v2213_v22 = vmul.f32 %v2189_v31, %v7097_v52 }
 0x119   : > { %v2217_v23 = vmul.f32 %v2193_v56, %v7072_v37  ;;  %v2194_v15 = vsel %vm1956_vm4, %v6176_v8, %v6177_v45  ;;  %v2215_v17 = vmul.f32 %v2191_v58, %v7085_v1  ;;  %v2214_v31 = vmul.f32 %v2190_v32, %v7072_v37  ;;  %v8403_v8 = vld [vmem:[%s6890_s8 + $0xb8] sm:$0xff] }
 0x11a   : > { %6469 = vrot.lane.b32.xlu1 %v10148_v60, %s6823_s12  ;;  %6464 = vrot.lane.b32.xlu0 %v10117_v29, %s6823_s12  ;;  %v2196_v19 = vsel %vm1956_vm4, %v6181_v30, %v6182_v3  ;;  %v2195_v59 = vsel %vm1956_vm4, %v6177_v45, %v6181_v30  ;;  %v2218_v29 = vmul.f32 %v2194_v15, %v7085_v1  ;;  %v8385_v39 = vpop.permute.xlu0 %6184  ;;  %v4322_v30 = vunpack.c.h.bf16 %v8378_v35 }
 0x11b   : > { %v2220_v0 = vmul.f32 %v2196_v19, %v7072_v37  ;;  %v8383_v50 = vpop.permute.xlu1 %6189  ;;  %v2219_v5 = vmul.f32 %v2195_v59, %v7097_v52  ;;  %v2212_v55 = vmul.f32 %v2188_v41, %v7085_v1  ;;  %v2228_v56 = vadd.f32 %v2216_v53, %v2108_v42  ;;  %v8444_v19 = vld [vmem:[%s6890_s8 + $0x90] sm:$0xff] }
 0x11c   : > { %v2210_v24 = vmul.f32 %v2186_v62, %v7097_v52  ;;  %v2230_v3 = vadd.f32 %v2218_v29, %v2110_v4  ;;  %v2106_v45 = vadd.f32 %v8329_v47, %v8256_v13  ;;  %v2104_v42 = vadd.f32 %v8332_v63, %v8262_v46  ;;  %v5554_v46 = vld [vmem:[%s6890_s8 + $0xa0] sm:$0xff]  ;;  %v8414_v47 = vld [vmem:[%s6890_s8 + $0xa8] sm:$0xff]  ;;  %10152 = vst [vmem:[#allocation8_spill] sm:$0xff] %v8444_v19 }
 0x11d   : > { %v2231_v58 = vadd.f32 %v2219_v5, %v2111_v20  ;;  %v2232_v27 = vadd.f32 %v2220_v0, %v2112_v40  ;;  %v2211_v62 = vmul.f32 %v2187_v16, %v7072_v37  ;;  %v2225_v53 = vadd.f32 %v2213_v22, %v8338_v43  ;;  %v8417_v63 = vld [vmem:[%s6890_s8 + $0x8] sm:$0xff] }
 0x11e   : > { %6479 = vrot.lane.b32.xlu1 %v8130_v25, %s6823_s12  ;;  %6474 = vrot.lane.b32.xlu0 %v8136_v44, %s6823_s12  ;;  %v2209_v44 = vmul.f32 %v2185_v49, %v7085_v1  ;;  %v8408_v40 = vpop.permute.xlu0 %6194  ;;  %v2229_v32 = vadd.f32 %v2217_v23, %v8341_v14  ;;  %v2227_v13 = vadd.f32 %v2215_v17, %v8350_v48  ;;  %v4319_v22 = vunpack.c.l.bf16 %v8414_v47 }
 0x11f   : > { %v8406_v20 = vpop.permute.xlu1 %6199  ;;  %v2237_v4 = vpack.c.bf16 %v2231_v58, %v2228_v56  ;;  %10149 = vst [vmem:[#allocation7_spill] sm:$0xff] %v8417_v63  ;;  %v2103_v43 = vadd.f32 %v8318_v18, %v8223_v51  ;;  %v2101_v16 = vadd.f32 %v8323_v6, %v8241_v33  ;;  %v2222_v49 = vadd.f32 %v2210_v24, %v8335_v36  ;;  %v8434_v18 = vld [vmem:[%s6890_s8 + $0x18] sm:$0xff]  ;;  %v8437_v33 = vld [vmem:[%s6890_s8 + $0x80] sm:$0xff] }
 0x120   : > { %v2226_v41 = vadd.f32 %v2214_v31, %v2106_v45  ;;  %v8428_v14 = vpack.c.bf16 %v2232_v27, %v2229_v32  ;;  %v8430_v48 = vpack.c.bf16 %v2230_v3, %v2227_v13  ;;  %v2224_v60 = vadd.f32 %v2212_v55, %v2104_v42  ;;  %10150 = vst [vmem:[#allocation18_spill] sm:$0xff] %v8434_v18 }
 0x121   : > { %v4323_v51 = vunpack.c.l.bf16 %v8403_v8  ;;  %10151 = vst [vmem:[#allocation24_spill] sm:$0xff] %v8437_v33  ;;  %2258 = vmatprep.subr.bf16.mxu0 %v2237_v4  ;;  %v8439_v6 = vpack.c.bf16 %v2225_v53, %v2222_v49  ;;  %v4318_v36 = vunpack.c.h.bf16 %v5554_v46  ;;  %v9961_v23 = vunpack.c.l.bf16 %v8417_v63  ;;  %v10159_v53 = vld [vmem:[#allocation21_spill] sm:$0xff]  ;;  %v5470_v49 = vld [vmem:[%s9873_s2 + $0x6] sm:$0x3] }
 0x122   : > { %6489 = vrot.lane.b32.xlu1 %v8138_v9, %s6823_s12  ;;  %6484 = vrot.lane.b32.xlu0 %v8144_v10, %s6823_s12  ;;  %v8450_v15 = vpop.permute.xlu0 %6204  ;;  %v2223_v17 = vadd.f32 %v2211_v62, %v2103_v43  ;;  %v2221_v0 = vadd.f32 %v2209_v44, %v2101_v16  ;;  %v4317_v29 = vunpack.c.l.bf16 %v5554_v46  ;;  %v4321_v5 = vunpack.c.l.bf16 %v8378_v35 }
 0x123   : > { %5691 = vmatpush3.bf16.msra.mxu1 %v8428_v14  ;;  %2259 = vmatpush1.bf16.msra.mxu0 %v8430_v48  ;;  %v8448_v59 = vpop.permute.xlu1 %6209  ;;  %v10153_v31 = vunpack.c.h.bf16 %v8069_v7  ;;  %v10154_v55 = vunpack.c.h.bf16 %v8086_v28  ;;  %v9957_v24 = vunpack.c.l.bf16 %v8434_v18  ;;  %v9960_v58 = vunpack.c.h.bf16 %v8437_v33 }
 0x124   : > { %2260 = vmatprep.subr.bf16.mxu0 %v8439_v6  ;;  %5692 = vmatprep.subr.bf16.mxu1 %v10056_v34  ;;  %v9958_v27 = vunpack.c.h.bf16 %v8296_v2  ;;  %v8468_v35 = vpack.c.bf16 %v2226_v41, %v2223_v17  ;;  %v8470_v3 = vpack.c.bf16 %v2224_v60, %v2221_v0  ;;  %v4309_v7 = vunpack.c.l.bf16 %v8437_v33 }
 0x125   : > { %v8459_v56 = vpack.i.bf16 %v10154_v55, %v10153_v31  ;;  %v4313_v28 = vunpack.c.l.bf16 %v8444_v19  ;;  %v10156_v45 = vunpack.c.h.bf16 %v8207_v26  ;;  %v10157_v42 = vunpack.c.l.bf16 %v8296_v2  ;;  %v8519_v55 = vld [vmem:[%s6890_s8 + $0x30] sm:$0xff] }
 0x126   : > { %6499 = vrot.lane.b32.xlu1 %v8150_v54, %s6823_s12  ;;  %6494 = vrot.lane.b32.xlu0 %v8152_v21, %s6823_s12  ;;  %v10160_v44 = vunpack.c.l.bf16 %v10159_v53  ;;  %v8486_v13 = vpack.i.bf16 %v4323_v51, %v4322_v30  ;;  %v9959_v46 = vunpack.c.h.bf16 %v8444_v19  ;;  %v8493_v16 = vpop.permute.xlu0 %6214  ;;  %v8498_v30 = vpack.i.bf16 %v4319_v22, %v4318_v36  ;;  %v10162_v36 = vld [vmem:[#allocation29_spill] sm:$0xff] }
 0x127   : > { %10155 = vst [vmem:[#allocation25_spill] sm:$0xff] %v8459_v56  ;;  %v8478_v62 = vpack.i.bf16 %v10157_v42, %v10156_v45  ;;  %5693 = vmatpush3.bf16.msra.mxu1 %v8468_v35  ;;  %2261 = vmatpush1.bf16.msra.mxu0 %v8470_v3  ;;  %v8491_v43 = vpop.permute.xlu1 %6219  ;;  %v10161_v41 = vunpack.c.h.bf16 %v7834_v11  ;;  %v8506_v51 = vpack.i.bf16 %v4321_v5, %v4317_v29  ;;  %v6192_v17 = vunpack.i.h.bf16 %v8383_v50  ;;  %v8522_v29 = vld [vmem:[%s6890_s8 + $0x38] sm:$0xff]  ;;  %v8525_v5 = vld [vmem:[%s6890_s8 + $0x20] sm:$0xff] }
 0x128   : > { %v8484_v32 = vpack.i.bf16 %v9962_v38, %v10160_v44  ;;  %v6191_v0 = vunpack.i.l.bf16 %v8383_v50  ;;  %v6187_v31 = vunpack.i.h.bf16 %v8385_v39  ;;  %2354 = vmatprep.subr.bf16.mxu0 %v2237_v4  ;;  %5698 = vmatprep.subr.bf16.mxu1 %v10056_v34  ;;  %v10163_v22 = vunpack.c.h.bf16 %v10162_v36  ;;  %10164 = vst [vmem:[#allocation28_spill] sm:$0xff] %v8522_v29  ;;  %v10165_v45 = vld [vmem:[#allocation17_spill] sm:$0xff]  ;;  %v10167_v4 = vld [vmem:[#allocation30_spill] sm:$0xff]  ;;  %v10170_v44 = vld [vmem:[#allocation16_spill] sm:$0xff] }
 0x129   : > { %10158 = vst [vmem:[#allocation19_spill] sm:$0xff] %v8478_v62  ;;  %v8504_v60 = vpack.i.bf16 %v9961_v23, %v10161_v41  ;;  %v10166_v50 = vld [vmem:[#allocation9_spill] sm:$0xff]  ;;  %v10168_v42 = vunpack.c.l.bf16 %v10167_v4  ;;  %v10171_v41 = vunpack.c.h.bf16 %v10170_v44  ;;  %v4087_v44 = vunpack.c.h.bf16 %v8434_v18 }
 0x12a   : > { %v8516_v11 = vpack.i.bf16 %v9957_v24, %v10163_v22  ;;  %6509 = vrot.lane.b32.xlu1 %v10165_v45, %s6823_s12  ;;  %6504 = vrot.lane.b32.xlu0 %v10166_v50, %s6823_s12  ;;  %v8543_v22 = vpack.i.bf16 %v4313_v28, %v4309_v7  ;;  %v4083_v24 = vunpack.c.h.bf16 %v8417_v63  ;;  %v8547_v45 = vld [vmem:[%s6890_s8 + $0x28] sm:$0xff]  ;;  %v4324_v7 = vunpack.c.h.bf16 %v8403_v8 }
 0x12b   : > { %v8535_v53 = vpack.i.bf16 %v10168_v42, %v9960_v58  ;;  %v8541_v36 = vpack.i.bf16 %v9958_v27, %v10171_v41  ;;  %10174 = vst [vmem:[#allocation22_spill] sm:$0xff] %v8547_v45  ;;  %5695 = vmatmul.mubr.msk.bf16.vlgmr.msra.gmra.mxu1 %vm602_vm1, %v5470_v49  ;;  %5471 = vmatmul.mubr.msk.bf16.vlgmr.msra.gmra.mxu0 %vm602_vm1, %v5470_v49  ;;  %v10175_v50 = vld [vmem:[#allocation31_spill] sm:$0xff]  ;;  %v4320_v41 = vunpack.c.h.bf16 %v8414_v47  ;;  %v6186_v28 = vunpack.i.l.bf16 %v8385_v39  ;;  %v8563_v49 = vpop.permute.xlu1 %6229  ;;  %v8565_v27 = vpop.permute.xlu0 %6224 }
 0x12c   : > { %10173 = vst [vmem:[#allocation23_spill] sm:$0xff] %v8543_v22  ;;  %v10176_v4 = vunpack.c.l.bf16 %v10175_v50  ;;  %5699 = vmatpush3.bf16.msra.mxu1 %v8428_v14  ;;  %2355 = vmatpush1.bf16.msra.mxu0 %v8430_v48  ;;  %v4640_v50 = vunpack.c.h.bf16 %v8519_v55  ;;  %v2506_v47 = vsel %vm2503_vm5, %v6191_v0, %v6192_v17  ;;  %v2505_v8 = vsel %vm2503_vm5, %v6187_v31, %v6191_v0  ;;  %v8577_v48 = vld [vmem:[%s6890_s8 + $0x60] sm:$0xff] }
 0x12d   : > { %10169 = vst [vmem:[#allocation26_spill] sm:$0xff] %v8535_v53  ;;  %10172 = vst [vmem:[#allocation11_spill] sm:$0xff] %v8541_v36  ;;  %v6202_v39 = vunpack.i.h.bf16 %v8406_v20  ;;  %2356 = vmatprep.subr.bf16.mxu0 %v8439_v6  ;;  %5700 = vmatprep.subr.bf16.mxu1 %v10056_v34  ;;  %v4637_v14 = vunpack.c.l.bf16 %v8547_v45  ;;  %v6201_v58 = vunpack.i.l.bf16 %v8406_v20  ;;  %v6197_v23 = vunpack.i.h.bf16 %v8408_v40  ;;  %v10178_v0 = vld [vmem:[#allocation14_spill] sm:$0xff]  ;;  %v10179_v6 = vld [vmem:[#allocation20_spill] sm:$0xff] }
 0x12e   : > { %v8555_v42 = vpack.i.bf16 %v10176_v4, %v9959_v46  ;;  %v4641_v4 = vunpack.c.l.bf16 %v8522_v29  ;;  %v4636_v46 = vunpack.c.h.bf16 %v8525_v5  ;;  %v6196_v38 = vunpack.i.l.bf16 %v8408_v40  ;;  %6519 = vrot.lane.b32.xlu1 %v10178_v0, %s6823_s12  ;;  %6514 = vrot.lane.b32.xlu0 %v10179_v6, %s6823_s12  ;;  %v8596_v29 = vld [vmem:[%s6890_s8 + $0x68] sm:$0xff] }
 0x12f   : > { %v6212_v17 = vunpack.i.h.bf16 %v8448_v59  ;;  %v6211_v19 = vunpack.i.l.bf16 %v8448_v59  ;;  %v6207_v2 = vunpack.i.h.bf16 %v8450_v15  ;;  %v6206_v33 = vunpack.i.l.bf16 %v8450_v15  ;;  %5702 = vmatprep.mubr.msk.bf16.mxu1 %vm6817_vm0, %v10056_v34  ;;  %v8601_v59 = vpop.permute.xlu1 %6239  ;;  %v8603_v6 = vpop.permute.xlu0 %6234  ;;  %v5473_v15 = vld [vmem:[%s9874_s3 + $0x6] sm:$0x3] }
 0x130   : > { %10177 = vst [vmem:[#allocation27_spill] sm:$0xff] %v8555_v42  ;;  %v10180_v20 = vmov 0   ;;  %v8593_v40 = vpack.i.bf16 %v4087_v44, %v4083_v24  ;;  %v2504_v0 = vsel %vm2503_vm5, %v6186_v28, %v6187_v31  ;;  %5701 = vmatpush3.bf16.msra.mxu1 %v8468_v35  ;;  %2357 = vmatpush1.bf16.msra.mxu0 %v8470_v3  ;;  %v6237_v44 = vunpack.i.h.bf16 %v8603_v6 }
 0x131   : > { %2374 = vmatprep.mubr.bf16.mxu0 %v10180_v20  ;;  %v8608_v45 = vpack.i.bf16 %v4324_v7, %v4320_v41  ;;  %v8610_v24 = vpack.i.bf16 %v4641_v4, %v4640_v50  ;;  %v8617_v35 = vmul.f32 %v2505_v8, %v10041_v57  ;;  %v2509_v3 = vsel %vm2503_vm5, %v6201_v58, %v6202_v39  ;;  %v10186_v50 = vld [vmem:[#allocation10_spill] sm:$0xff]  ;;  %v10187_v4 = vld [vmem:[#allocation35_spill] sm:$0xff] }
 0x132   : > { %10181 = vst [vmem:[#allocation38_spill] sm:$0xff] %v8593_v40  ;;  %v10184_v40 = vld [vmem:[#allocation4_spill] sm:$0xff]  ;;  %5706 = vmatprep.subr.bf16.mxu1 %v10056_v34  ;;  %v8621_v28 = vpack.i.bf16 %v4637_v14, %v4636_v46  ;;  %v2508_v42 = vsel %vm2503_vm5, %v6197_v23, %v6201_v58  ;;  %v2507_v41 = vsel %vm2503_vm5, %v6196_v38, %v6197_v23  ;;  %v6222_v58 = vunpack.i.h.bf16 %v8491_v43 }
 0x133   : > { %10182 = vst [vmem:[#allocation21_spill] sm:$0xff] %v8608_v45  ;;  %10183 = vst [vmem:[#allocation29_spill] sm:$0xff] %v8610_v24  ;;  %v8614_v31 = vmul.f32 %v2506_v47, %v10184_v40  ;;  %v2512_v7 = vsel %vm2503_vm5, %v6211_v19, %v6212_v17  ;;  %6529 = vrot.lane.b32.xlu1 %v10186_v50, %s6823_s12  ;;  %6524 = vrot.lane.b32.xlu0 %v10187_v4, %s6823_s12  ;;  %v6221_v38 = vunpack.i.l.bf16 %v8491_v43  ;;  %v6245_v50 = vpop.permute.xlu0 %6244 }
 0x134   : > { %10185 = vst [vmem:[#allocation17_spill] sm:$0xff] %v8621_v28  ;;  %v8632_v8 = vmul.f32 %v2504_v0, %v7041_v61  ;;  %v2511_v46 = vsel %vm2503_vm5, %v6207_v2, %v6211_v19  ;;  %v2510_v39 = vsel %vm2503_vm5, %v6206_v33, %v6207_v2  ;;  %5703 = vmatmul.mubr.msk.bf16.vlgmr.msra.gmra.mxu1 %vm602_vm1, %v5473_v15  ;;  %v6217_v23 = vunpack.i.h.bf16 %v8493_v16  ;;  %v6250_v0 = vpop.permute.xlu1 %6249 }
 0x135   : > { %5474 = vmatmul.mubr.msk.bf16.vlgmr.msra.gmra.mxu0 %vm602_vm1, %v5473_v15  ;;  %v6231_v14 = vunpack.i.l.bf16 %v8563_v49  ;;  %v6227_v17 = vunpack.i.h.bf16 %v8565_v27  ;;  %5710 = vmatprep.mubr.msk.bf16.mxu1 %vm6817_vm0, %v10056_v34  ;;  %v8647_v2 = vmul.f32 %v2509_v3, %v10184_v40  ;;  %v8650_v33 = vmul.f32 %v2508_v42, %v10041_v57  ;;  %v10188_v3 = vld [vmem:[#allocation33_spill] sm:$0xff] }
 0x136   : > { %2825 = vmatprep.mubr.bf16.mxu0 %v10180_v20  ;;  %v8653_v19 = vmul.f32 %v2507_v41, %v7041_v61  ;;  %v2536_v43 = vmul.f32 %v2512_v7, %v10184_v40  ;;  %v8657_v15 = vmul.f32 %v2511_v46, %v10041_v57  ;;  %v6216_v4 = vunpack.i.l.bf16 %v8493_v16 }
 0x137   : > { %v6241_v47 = vunpack.i.l.bf16 %v8601_v59  ;;  %6539 = vrot.lane.b32.xlu1 %v10188_v3, %s6823_s12  ;;  %6534 = vrot.lane.b32.xlu0 %v8459_v56, %s6823_s12  ;;  %v8667_v42 = vmul.f32 %v2510_v39, %v7041_v61  ;;  %v2515_v41 = vsel %vm2503_vm5, %v6221_v38, %v6222_v58  ;;  %v6252_v7 = vunpack.i.h.bf16 %v6250_v0  ;;  %v6255_v3 = vpop.permute.xlu0 %6254 }
 0x138   : > { %v6251_v46 = vunpack.i.l.bf16 %v6250_v0  ;;  %v2514_v28 = vsel %vm2503_vm5, %v6217_v23, %v6221_v38  ;;  %v6232_v16 = vunpack.i.h.bf16 %v8563_v49  ;;  %v2613_v24 = vsel %vm2503_vm5, %v6227_v17, %v6231_v14  ;;  %v6260_v20 = vpop.permute.xlu1 %6259  ;;  %v10189_v49 = vld [vmem:[#allocation15_spill] sm:$0xff] }
 0x139   : > { %v6226_v45 = vunpack.i.l.bf16 %v8565_v27  ;;  %v6247_v22 = vunpack.i.h.bf16 %v6245_v50  ;;  %v6246_v18 = vunpack.i.l.bf16 %v6245_v50  ;;  %v6262_v56 = vunpack.i.h.bf16 %v6260_v20  ;;  %v10190_v27 = vld [vmem:[#allocation36_spill] sm:$0xff] }
 0x13a   : > { %v6261_v36 = vunpack.i.l.bf16 %v6260_v20  ;;  %v2513_v39 = vsel %vm2503_vm5, %v6216_v4, %v6217_v23  ;;  %v6242_v58 = vunpack.i.h.bf16 %v8601_v59  ;;  %v2616_v0 = vsel %vm2503_vm5, %v6237_v44, %v6241_v47 }
 0x13b   : > { %v6236_v38 = vunpack.i.l.bf16 %v8603_v6  ;;  %6549 = vrot.lane.b32.xlu1 %v10189_v49, %s6824_s18  ;;  %6544 = vrot.lane.b32.xlu0 %v10190_v27, %s6824_s18  ;;  %v2539_v53 = vmul.f32 %v2515_v41, %v10184_v40  ;;  %v2620_v50 = vsel %vm2503_vm5, %v6251_v46, %v6252_v7  ;;  %v6257_v20 = vunpack.i.h.bf16 %v6255_v3  ;;  %v6265_v54 = vpop.permute.xlu0 %6264 }
 0x13c   : > { %v6256_v63 = vunpack.i.l.bf16 %v6255_v3  ;;  %v2538_v23 = vmul.f32 %v2514_v28, %v10041_v57  ;;  %v2614_v59 = vsel %vm2503_vm5, %v6231_v14, %v6232_v16  ;;  %v2637_v4 = vmul.f32 %v2613_v24, %v10042_v12  ;;  %v6270_v21 = vpop.permute.xlu1 %6269  ;;  %v10191_v57 = vld [vmem:[#allocation5_spill] sm:$0xff] }
 0x13d   : > { %v2612_v6 = vsel %vm2503_vm5, %v6226_v45, %v6227_v17  ;;  %v2640_v49 = vmul.f32 %v2616_v0, %v10042_v12  ;;  %v2619_v27 = vsel %vm2503_vm5, %v6247_v22, %v6251_v46  ;;  %v2618_v41 = vsel %vm2503_vm5, %v6246_v18, %v6247_v22  ;;  %v10192_v45 = vld [vmem:[#allocation37_spill] sm:$0xff] }
 0x13e   : > { %v2623_v7 = vsel %vm2503_vm5, %v6261_v36, %v6262_v56  ;;  %v2617_v3 = vsel %vm2503_vm5, %v6241_v47, %v6242_v58  ;;  %v2615_v28 = vsel %vm2503_vm5, %v6236_v38, %v6237_v44  ;;  %v2644_v14 = vmul.f32 %v2620_v50, %v10191_v57  ;;  %v10193_v44 = vld [vmem:[#allocation6_spill] sm:$0xff] }
 0x13f   : > { %6559 = vrot.lane.b32.xlu1 %v8478_v62, %s6824_s18  ;;  %6554 = vrot.lane.b32.xlu0 %v10192_v45, %s6824_s18  ;;  %v2537_v17 = vmul.f32 %v2513_v39, %v7041_v61  ;;  %v8702_v18 = vmul.f32 %v2614_v59, %v10191_v57  ;;  %v2622_v56 = vsel %vm2503_vm5, %v6257_v20, %v6261_v36  ;;  %v6275_v38 = vpop.permute.xlu0 %6274 }
 0x140   : > { %v2621_v22 = vsel %vm2503_vm5, %v6256_v63, %v6257_v20  ;;  %v8707_v47 = vmul.f32 %v2612_v6, %v10193_v44  ;;  %v2643_v46 = vmul.f32 %v2619_v27, %v10042_v12  ;;  %v2642_v16 = vmul.f32 %v2618_v41, %v10193_v44  ;;  %v6280_v0 = vpop.permute.xlu1 %6279  ;;  %v10194_v41 = vld [vmem:[#allocation12_spill] sm:$0xff] }
 0x141   : > { %v2647_v58 = vmul.f32 %v2623_v7, %v10191_v57  ;;  %v8713_v39 = vmul.f32 %v2617_v3, %v10191_v57  ;;  %v8716_v50 = vmul.f32 %v2615_v28, %v10193_v44  ;;  %v8719_v36 = vadd.f32 %v2637_v4, %v8617_v35 }
 0x142   : > { %v8722_v63 = vadd.f32 %v2640_v49, %v8650_v33  ;;  %v8724_v20 = vadd.f32 %v2644_v14, %v2536_v43  ;;  %v2646_v59 = vmul.f32 %v2622_v56, %v10042_v12  ;;  %v2645_v6 = vmul.f32 %v2621_v22, %v10193_v44 }
 0x143   : > { %v6272_v27 = vunpack.i.h.bf16 %v6270_v21  ;;  %6569 = vrot.lane.b32.xlu1 %v8484_v32, %s6824_s18  ;;  %6564 = vrot.lane.b32.xlu0 %v10194_v41, %s6824_s18  ;;  %v6271_v7 = vunpack.i.l.bf16 %v6270_v21  ;;  %v6267_v3 = vunpack.i.h.bf16 %v6265_v54  ;;  %v6281_v35 = vunpack.i.l.bf16 %v6280_v0  ;;  %v6285_v14 = vpop.permute.xlu0 %6284 }
 0x144   : > { %v6277_v4 = vunpack.i.h.bf16 %v6275_v38  ;;  %v8733_v33 = vadd.f32 %v2642_v16, %v8667_v42  ;;  %v2659_v43 = vadd.f32 %v2647_v58, %v2539_v53  ;;  %v6266_v49 = vunpack.i.l.bf16 %v6265_v54  ;;  %v6290_v28 = vpop.permute.xlu1 %6289 }
 0x145   : > { %v2655_v45 = vadd.f32 %v2643_v46, %v8657_v15  ;;  %v6292_v56 = vunpack.i.h.bf16 %v6290_v28  ;;  %v6291_v22 = vunpack.i.l.bf16 %v6290_v28  ;;  %v6287_v24 = vunpack.i.h.bf16 %v6285_v14 }
 0x146   : > { %v6286_v32 = vunpack.i.l.bf16 %v6285_v14  ;;  %v2657_v62 = vadd.f32 %v2645_v6, %v2537_v17  ;;  %v6282_v44 = vunpack.i.h.bf16 %v6280_v0  ;;  %v6276_v41 = vunpack.i.l.bf16 %v6275_v38 }
 0x147   : > { %6579 = vrot.lane.b32.xlu1 %v8486_v13, %s6824_s18  ;;  %6574 = vrot.lane.b32.xlu0 %v8498_v30, %s6824_s18  ;;  %v2658_v21 = vadd.f32 %v2646_v59, %v2538_v23  ;;  %v2734_v54 = vsel %vm2503_vm5, %v6271_v7, %v6272_v27  ;;  %v2733_v53 = vsel %vm2503_vm5, %v6267_v3, %v6271_v7  ;;  %v6295_v0 = vpop.permute.xlu0 %6294 }
 0x148   : > { %v2736_v15 = vsel %vm2503_vm5, %v6277_v4, %v6281_v35  ;;  %v2739_v42 = vsel %vm2503_vm5, %v6287_v24, %v6291_v22  ;;  %v2732_v46 = vsel %vm2503_vm5, %v6266_v49, %v6267_v3  ;;  %v2740_v17 = vsel %vm2503_vm5, %v6291_v22, %v6292_v56  ;;  %v6300_v58 = vpop.permute.xlu1 %6299 }
 0x149   : > { %v2738_v16 = vsel %vm2503_vm5, %v6286_v32, %v6287_v24  ;;  %v2763_v38 = vmul.f32 %v2739_v42, %v7097_v52  ;;  %v6302_v6 = vunpack.i.h.bf16 %v6300_v58  ;;  %v6301_v23 = vunpack.i.l.bf16 %v6300_v58 }
 0x14a   : > { %v6297_v59 = vunpack.i.h.bf16 %v6295_v0  ;;  %v6296_v27 = vunpack.i.l.bf16 %v6295_v0  ;;  %v2737_v7 = vsel %vm2503_vm5, %v6281_v35, %v6282_v44  ;;  %v2735_v28 = vsel %vm2503_vm5, %v6276_v41, %v6277_v4 }
 0x14b   : > { %6589 = vrot.lane.b32.xlu1 %v8504_v60, %s6824_s18  ;;  %6584 = vrot.lane.b32.xlu0 %v8506_v51, %s6824_s18  ;;  %v2760_v24 = vmul.f32 %v2736_v15, %v7097_v52  ;;  %v4635_v3 = vunpack.c.l.bf16 %v8525_v5  ;;  %v2764_v49 = vmul.f32 %v2740_v17, %v7072_v37  ;;  %v2743_v14 = vsel %vm2503_vm5, %v6301_v23, %v6302_v6  ;;  %v8765_v32 = vpop.permute.xlu0 %6304 }
 0x14c   : > { %v2742_v56 = vsel %vm2503_vm5, %v6297_v59, %v6301_v23  ;;  %v2741_v44 = vsel %vm2503_vm5, %v6296_v27, %v6297_v59  ;;  %v2762_v35 = vmul.f32 %v2738_v16, %v7085_v1  ;;  %v2767_v4 = vmul.f32 %v2743_v14, %v7072_v37  ;;  %v8763_v22 = vpop.permute.xlu1 %6309 }
 0x14d   : > { %v2765_v60 = vmul.f32 %v2741_v44, %v7085_v1  ;;  %v2766_v41 = vmul.f32 %v2742_v56, %v7097_v52  ;;  %v2761_v15 = vmul.f32 %v2737_v7, %v7072_v37  ;;  %v2759_v42 = vmul.f32 %v2735_v28, %v7085_v1  ;;  %v8831_v44 = vld [vmem:[%s6890_s8 + $0x50] sm:$0xff] }
 0x14e   : > { %v2775_v17 = vadd.f32 %v2763_v38, %v2655_v45  ;;  %v2757_v58 = vmul.f32 %v2733_v53, %v7097_v52  ;;  %v2779_v0 = vadd.f32 %v2767_v4, %v2659_v43  ;;  %v4639_v23 = vunpack.c.l.bf16 %v8519_v55  ;;  %v8793_v43 = vld [vmem:[%s6890_s8 + $0x40] sm:$0xff] }
 0x14f   : > { %6599 = vrot.lane.b32.xlu1 %v8130_v25, %s6824_s18  ;;  %6594 = vrot.lane.b32.xlu0 %v8516_v11, %s6824_s18  ;;  %v2778_v16 = vadd.f32 %v2766_v41, %v2658_v21  ;;  %v2777_v6 = vadd.f32 %v2765_v60, %v2657_v62  ;;  %v2653_v59 = vadd.f32 %v8713_v39, %v8647_v2  ;;  %v8785_v21 = vpop.permute.xlu0 %6314  ;;  %v8790_v39 = vld [vmem:[%s6890_s8] sm:$0xff]  ;;  %v6312_v7 = vunpack.i.h.bf16 %v8763_v22 }
 0x150   : > { %v2651_v45 = vadd.f32 %v8716_v50, %v8653_v19  ;;  %v2758_v53 = vmul.f32 %v2734_v54, %v7072_v37  ;;  %v2772_v25 = vadd.f32 %v2760_v24, %v8722_v63  ;;  %v2756_v38 = vmul.f32 %v2732_v46, %v7085_v1  ;;  %v8783_v11 = vpop.permute.xlu1 %6319  ;;  %v8801_v46 = vld [vmem:[%s6890_s8 + $0x48] sm:$0xff] }
 0x151   : > { %v2784_v62 = vpack.c.bf16 %v2778_v16, %v2775_v17  ;;  %v2776_v55 = vadd.f32 %v2764_v49, %v8724_v20  ;;  %v2774_v2 = vadd.f32 %v2762_v35, %v8733_v33  ;;  %v2650_v19 = vadd.f32 %v8702_v18, %v8614_v31  ;;  %10195 = vst [vmem:[#allocation9_spill] sm:$0xff] %v8801_v46  ;;  %v8834_v35 = vld [vmem:[%s6890_s8 + $0x58] sm:$0xff]  ;;  %v10201_v16 = vld [vmem:[#allocation32_spill] sm:$0xff] }
 0x152   : > { %v2648_v50 = vadd.f32 %v8707_v47, %v8632_v8  ;;  %v2769_v63 = vadd.f32 %v2757_v58, %v8719_v36  ;;  %v2773_v54 = vadd.f32 %v2761_v15, %v2653_v59  ;;  %v2771_v31 = vadd.f32 %v2759_v42, %v2651_v45  ;;  %v4621_v8 = vld [vmem:[%s6890_s8 + $0x10] sm:$0xff]  ;;  %10198 = vst [vmem:[#allocation30_spill] sm:$0xff] %v8834_v35  ;;  %v10203_v45 = vld [vmem:[#allocation7_spill] sm:$0xff] }
 0x153   : > { %6609 = vrot.lane.b32.xlu1 %v8138_v9, %s6824_s18  ;;  %6604 = vrot.lane.b32.xlu0 %v8144_v10, %s6824_s18  ;;  %v8807_v20 = vpack.c.bf16 %v2779_v0, %v2776_v55  ;;  %v8809_v33 = vpack.c.bf16 %v2777_v6, %v2774_v2  ;;  %v10196_v47 = vunpack.c.h.bf16 %v8577_v48  ;;  %v10197_v36 = vunpack.c.l.bf16 %v8596_v29  ;;  %v8827_v24 = vpop.permute.xlu0 %6324  ;;  %v10202_v0 = vld [vmem:[#allocation13_spill] sm:$0xff] }
 0x154   : > { %2805 = vmatprep.subr.bf16.mxu0 %v2784_v62  ;;  %v8812_v18 = vpack.c.bf16 %v2772_v25, %v2769_v63  ;;  %v4628_v9 = vunpack.c.h.bf16 %v8790_v39  ;;  %v4737_v10 = vunpack.c.h.bf16 %v8793_v43  ;;  %v8825_v28 = vpop.permute.xlu1 %6329  ;;  %v2770_v49 = vadd.f32 %v2758_v53, %v2650_v19 }
 0x155   : > { %v8818_v27 = vpack.i.bf16 %v10197_v36, %v10196_v47  ;;  %5707 = vmatpush3.bf16.msra.mxu1 %v8807_v20  ;;  %2806 = vmatpush1.bf16.msra.mxu0 %v8809_v33  ;;  %v2768_v14 = vadd.f32 %v2756_v38, %v2648_v50  ;;  %v4738_v56 = vunpack.c.l.bf16 %v8801_v46  ;;  %v10199_v4 = vunpack.c.l.bf16 %v8577_v48  ;;  %v10205_v36 = vld [vmem:[#allocation26_spill] sm:$0xff] }
 0x156   : > { %2807 = vmatprep.subr.bf16.mxu0 %v8812_v18  ;;  %5708 = vmatprep.subr.bf16.mxu1 %v10056_v34  ;;  %v10200_v60 = vunpack.c.l.bf16 %v8207_v26  ;;  %v8846_v15 = vpack.i.bf16 %v4639_v23, %v4635_v3  ;;  %v4632_v42 = vunpack.c.h.bf16 %v4621_v8  ;;  %v4627_v17 = vunpack.c.l.bf16 %v8790_v39  ;;  %v5492_v39 = vld [vmem:[%s9873_s2 + $0x8] sm:$0x3] }
 0x157   : > { %v6311_v58 = vunpack.i.l.bf16 %v8763_v22  ;;  %6619 = vrot.lane.b32.xlu1 %v10201_v16, %s6824_s18  ;;  %6614 = vrot.lane.b32.xlu0 %v10202_v0, %s6824_s18  ;;  %v2782_v48 = vpack.c.bf16 %v2773_v54, %v2770_v49  ;;  %v2780_v6 = vpack.c.bf16 %v2771_v31, %v2768_v14  ;;  %v4631_v26 = vunpack.c.l.bf16 %v4621_v8  ;;  %v8866_v2 = vpop.permute.xlu0 %6334  ;;  %v10209_v0 = vld [vmem:[#allocation23_spill] sm:$0xff] }
 0x158   : > { %v8842_v41 = vpack.i.bf16 %v10200_v60, %v10199_v4  ;;  %v6307_v59 = vunpack.i.h.bf16 %v8765_v32  ;;  %v10204_v5 = vunpack.c.l.bf16 %v10203_v45  ;;  %v4741_v23 = vunpack.c.h.bf16 %v8831_v44  ;;  %v8864_v55 = vpop.permute.xlu1 %6339 }
 0x159   : > { %v4742_v53 = vunpack.c.l.bf16 %v8834_v35  ;;  %v3053_v22 = vsel %vm3050_vm6, %v6311_v58, %v6312_v7  ;;  %v6306_v25 = vunpack.i.l.bf16 %v8765_v32  ;;  %v6322_v38 = vunpack.i.h.bf16 %v8783_v11  ;;  %5709 = vmatpush3.bf16.msra.mxu1 %v2782_v48  ;;  %2808 = vmatpush1.bf16.msra.mxu0 %v2780_v6 }
 0x15a   : > { %v8857_v3 = vpack.i.bf16 %v10204_v5, %v4628_v9  ;;  %v8871_v19 = vpack.i.bf16 %v4738_v56, %v4737_v10  ;;  %v6321_v50 = vunpack.i.l.bf16 %v8783_v11  ;;  %v6317_v63 = vunpack.i.h.bf16 %v8785_v21  ;;  %2901 = vmatprep.subr.bf16.mxu0 %v2784_v62  ;;  %5714 = vmatprep.subr.bf16.mxu1 %v10056_v34  ;;  %v10206_v11 = vld [vmem:[#allocation11_spill] sm:$0xff]  ;;  %v10207_v9 = vld [vmem:[#allocation18_spill] sm:$0xff] }
 0x15b   : > { %v6316_v32 = vunpack.i.l.bf16 %v8785_v21  ;;  %v6332_v54 = vunpack.i.h.bf16 %v8825_v28  ;;  %v6331_v31 = vunpack.i.l.bf16 %v8825_v28  ;;  %v6327_v8 = vunpack.i.h.bf16 %v8827_v24  ;;  %6629 = vrot.lane.b32.xlu1 %v10205_v36, %s6824_s18  ;;  %6624 = vrot.lane.b32.xlu0 %v10206_v11, %s6824_s18  ;;  %v6345_v4 = vpop.permute.xlu0 %6344  ;;  %v10214_v36 = vld [vmem:[#allocation21_spill] sm:$0xff] }
 0x15c   : > { %v6326_v47 = vunpack.i.l.bf16 %v8827_v24  ;;  %v10208_v10 = vunpack.c.l.bf16 %v10207_v9  ;;  %v3052_v62 = vsel %vm3050_vm6, %v6307_v59, %v6311_v58  ;;  %5711 = vmatmul.mubr.msk.bf16.vlgmr.msra.gmra.mxu1 %vm602_vm1, %v5492_v39  ;;  %5493 = vmatmul.mubr.msk.bf16.vlgmr.msra.gmra.mxu0 %vm602_vm1, %v5492_v39  ;;  %v8892_v7 = vpack.i.bf16 %v4631_v26, %v4627_v17  ;;  %v6350_v56 = vpop.permute.xlu1 %6349  ;;  %v10210_v26 = vld [vmem:[#allocation27_spill] sm:$0xff] }
 0x15d   : > { %v8894_v28 = vpack.i.bf16 %v4742_v53, %v4741_v23  ;;  %v8897_v24 = vmul.f32 %v3053_v22, %v10184_v40  ;;  %v3051_v49 = vsel %vm3050_vm6, %v6306_v25, %v6307_v59  ;;  %v3056_v14 = vsel %vm3050_vm6, %v6321_v50, %v6322_v38  ;;  %5715 = vmatpush3.bf16.msra.mxu1 %v8807_v20  ;;  %v10212_v53 = vld [vmem:[#allocation3_spill] sm:$0xff] }
 0x15e   : > { %v8887_v21 = vpack.i.bf16 %v10208_v10, %v4632_v42  ;;  %2902 = vmatpush1.bf16.msra.mxu0 %v8809_v33  ;;  %v3055_v60 = vsel %vm3050_vm6, %v6317_v63, %v6321_v50  ;;  %v3054_v42 = vsel %vm3050_vm6, %v6316_v32, %v6317_v63  ;;  %v3059_v17 = vsel %vm3050_vm6, %v6331_v31, %v6332_v54  ;;  %v5495_v50 = vld [vmem:[%s9874_s3 + $0x8] sm:$0x3] }
 0x15f   : > { %2903 = vmatprep.subr.bf16.mxu0 %v8812_v18  ;;  %5716 = vmatprep.subr.bf16.mxu1 %v10056_v34  ;;  %v3058_v58 = vsel %vm3050_vm6, %v6327_v8, %v6331_v31  ;;  %v3057_v16 = vsel %vm3050_vm6, %v6326_v47, %v6327_v8  ;;  %v6342_v20 = vunpack.i.h.bf16 %v8864_v55  ;;  %v6341_v33 = vunpack.i.l.bf16 %v8864_v55  ;;  %v6355_v39 = vpop.permute.xlu0 %6354  ;;  %v10213_v47 = vld [vmem:[#allocation38_spill] sm:$0xff] }
 0x160   : > { %6639 = vrot.lane.b32.xlu1 %v10209_v0, %s6824_s18  ;;  %6634 = vrot.lane.b32.xlu0 %v10210_v26, %s6824_s18  ;;  %v6337_v59 = vunpack.i.h.bf16 %v8866_v2  ;;  %v6336_v18 = vunpack.i.l.bf16 %v8866_v2  ;;  %v6352_v45 = vunpack.i.h.bf16 %v6350_v56  ;;  %v6351_v5 = vunpack.i.l.bf16 %v6350_v56  ;;  %v6360_v2 = vpop.permute.xlu1 %6359 }
 0x161   : > { %v10211_v23 = vmov 0   ;;  %5718 = vmatprep.mubr.msk.bf16.mxu1 %vm6817_vm0, %v10056_v34  ;;  %v8922_v22 = vmul.f32 %v3052_v62, %v10212_v53  ;;  %v8925_v25 = vmul.f32 %v3051_v49, %v7041_v61  ;;  %v8928_v38 = vmul.f32 %v3056_v14, %v10184_v40  ;;  %5717 = vmatpush3.bf16.msra.mxu1 %v2782_v48 }
 0x162   : > { %2921 = vmatprep.mubr.bf16.mxu0 %v10211_v23  ;;  %v6347_v55 = vunpack.i.h.bf16 %v6345_v4  ;;  %2904 = vmatpush1.bf16.msra.mxu0 %v2780_v6  ;;  %v8934_v63 = vmul.f32 %v3055_v60, %v10212_v53  ;;  %v8937_v32 = vmul.f32 %v3054_v42, %v7041_v61  ;;  %v8940_v54 = vmul.f32 %v3059_v17, %v10184_v40 }
 0x163   : > { %v6346_v31 = vunpack.i.l.bf16 %v6345_v4  ;;  %5722 = vmatprep.subr.bf16.mxu1 %v10056_v34  ;;  %v8944_v48 = vmul.f32 %v3058_v58, %v10212_v53  ;;  %v3081_v6 = vmul.f32 %v3057_v16, %v7041_v61  ;;  %v3062_v8 = vsel %vm3050_vm6, %v6341_v33, %v6342_v20  ;;  %v6365_v60 = vpop.permute.xlu0 %6364 }
 0x164   : > { %6649 = vrot.lane.b32.xlu1 %v10213_v47, %s6824_s18  ;;  %6644 = vrot.lane.b32.xlu0 %v10214_v36, %s6824_s18  ;;  %v3061_v11 = vsel %vm3050_vm6, %v6337_v59, %v6341_v33  ;;  %v3060_v9 = vsel %vm3050_vm6, %v6336_v18, %v6337_v59  ;;  %v3161_v10 = vsel %vm3050_vm6, %v6351_v5, %v6352_v45  ;;  %v6361_v49 = vunpack.i.l.bf16 %v6360_v2  ;;  %v8958_v4 = vpop.permute.xlu1 %6369  ;;  %v10215_v18 = vld [vmem:[#allocation33_spill] sm:$0xff] }
 0x165   : > { %5496 = vmatmul.mubr.msk.bf16.vlgmr.msra.gmra.mxu0 %vm602_vm1, %v5495_v50  ;;  %5719 = vmatmul.mubr.msk.bf16.vlgmr.msra.gmra.mxu1 %vm602_vm1, %v5495_v50  ;;  %v3160_v62 = vsel %vm3050_vm6, %v6347_v55, %v6351_v5  ;;  %v6357_v14 = vunpack.i.h.bf16 %v6355_v39  ;;  %v6356_v56 = vunpack.i.l.bf16 %v6355_v39  ;;  %v3159_v42 = vsel %vm3050_vm6, %v6346_v31, %v6347_v55  ;;  %v10216_v45 = vld [vmem:[#allocation25_spill] sm:$0xff]  ;;  %v10217_v31 = vld [vmem:[#allocation6_spill] sm:$0xff] }
 0x166   : > { %3372 = vmatprep.mubr.bf16.mxu0 %v10211_v23  ;;  %5726 = vmatprep.mubr.msk.bf16.mxu1 %vm6817_vm0, %v10056_v34  ;;  %v9981_v17 = vunpack.i.l.bf16 %v8958_v4  ;;  %v6367_v58 = vunpack.i.h.bf16 %v6365_v60  ;;  %v6366_v16 = vunpack.i.l.bf16 %v6365_v60  ;;  %v8966_v20 = vmul.f32 %v3062_v8, %v10184_v40 }
 0x167   : > { %v3085_v33 = vmul.f32 %v3061_v11, %v10212_v53  ;;  %v3084_v26 = vmul.f32 %v3060_v9, %v7041_v61  ;;  %v6362_v59 = vunpack.i.h.bf16 %v6360_v2  ;;  %v8975_v5 = vmul.f32 %v3161_v10, %v10191_v57 }
 0x168   : > { %6659 = vrot.lane.b32.xlu1 %v10215_v18, %s6824_s18  ;;  %6654 = vrot.lane.b32.xlu0 %v10216_v45, %s6824_s18  ;;  %v3184_v55 = vmul.f32 %v3160_v62, %v10042_v12  ;;  %v3166_v39 = vsel %vm3050_vm6, %v6367_v58, %v9981_v17  ;;  %v3165_v50 = vsel %vm3050_vm6, %v6366_v16, %v6367_v58  ;;  %v6372_v9 = vunpack.i.h.bf16 %v8958_v4  ;;  %v8986_v60 = vpop.permute.xlu1 %6379  ;;  %v6375_v10 = vpop.permute.xlu0 %6374 }
 0x169   : > { %v3183_v8 = vmul.f32 %v3159_v42, %v10217_v31  ;;  %v3163_v2 = vsel %vm3050_vm6, %v6357_v14, %v6361_v49  ;;  %v3162_v11 = vsel %vm3050_vm6, %v6356_v56, %v6357_v14  ;;  %v9983_v18 = vunpack.i.h.bf16 %v8986_v60  ;;  %v10218_v14 = vld [vmem:[#allocation29_spill] sm:$0xff] }
 0x16a   : > { %v6381_v62 = vunpack.i.l.bf16 %v8986_v60  ;;  %v6377_v45 = vunpack.i.h.bf16 %v6375_v10  ;;  %v6376_v40 = vunpack.i.l.bf16 %v6375_v10  ;;  %v3164_v17 = vsel %vm3050_vm6, %v6361_v49, %v6362_v59  ;;  %v10219_v56 = vld [vmem:[#allocation17_spill] sm:$0xff] }
 0x16b   : > { %v3190_v58 = vmul.f32 %v3166_v39, %v10042_v12  ;;  %v3189_v42 = vmul.f32 %v3165_v50, %v10217_v31  ;;  %v3187_v16 = vmul.f32 %v3163_v2, %v10042_v12  ;;  %v3186_v59 = vmul.f32 %v3162_v11, %v10217_v31 }
 0x16c   : > { %6669 = vrot.lane.b32.xlu1 %v10218_v14, %s6825_s23  ;;  %6664 = vrot.lane.b32.xlu0 %v10219_v56, %s6825_s23  ;;  %v3286_v36 = vsel %vm3050_vm6, %v6381_v62, %v9983_v18  ;;  %v3168_v10 = vsel %vm3050_vm6, %v6377_v45, %v6372_v9  ;;  %v3169_v49 = vsel %vm3050_vm6, %v6372_v9, %v6376_v40  ;;  %v6390_v47 = vpop.permute.xlu1 %6389  ;;  %v9007_v56 = vpop.permute.xlu0 %6384  ;;  %v10220_v9 = vld [vmem:[#allocation19_spill] sm:$0xff] }
 0x16d   : > { %v3310_v39 = vmul.f32 %v3286_v36, %v7097_v52  ;;  %v3192_v50 = vmul.f32 %v3168_v10, %v10217_v31  ;;  %v3193_v14 = vmul.f32 %v3169_v49, %v10042_v12  ;;  %v6392_v2 = vunpack.i.h.bf16 %v6390_v47 }
 0x16e   : > { %v6391_v35 = vunpack.i.l.bf16 %v6390_v47  ;;  %v6387_v0 = vunpack.i.h.bf16 %v9007_v56  ;;  %v6386_v18 = vunpack.i.l.bf16 %v9007_v56  ;;  %v3201_v45 = vadd.f32 %v3189_v42, %v3081_v6  ;;  %v10224_v56 = vld [vmem:[#allocation28_spill] sm:$0xff] }
 0x16f   : > { %v3204_v46 = vadd.f32 %v3192_v50, %v3084_v26  ;;  %v3202_v36 = vadd.f32 %v3190_v58, %v8944_v48  ;;  %v3205_v49 = vadd.f32 %v3193_v14, %v3085_v33  ;;  %v3195_v14 = vadd.f32 %v3183_v8, %v8925_v25 }
 0x170   : > { %6679 = vrot.lane.b32.xlu1 %v10220_v9, %s6825_s23  ;;  %6674 = vrot.lane.b32.xlu0 %v8818_v27, %s6825_s23  ;;  %v3285_v11 = vsel %vm3050_vm6, %v6391_v35, %v6381_v62  ;;  %v3288_v10 = vsel %vm3050_vm6, %v6392_v2, %v6386_v18  ;;  %v3289_v47 = vsel %vm3050_vm6, %v6386_v18, %v6387_v0  ;;  %v6400_v50 = vpop.permute.xlu1 %6399  ;;  %v6395_v9 = vpop.permute.xlu0 %6394  ;;  %v4736_v18 = vunpack.c.l.bf16 %v8793_v43 }
 0x171   : > { %v3309_v6 = vmul.f32 %v3285_v11, %v7085_v1  ;;  %v3312_v26 = vmul.f32 %v3288_v10, %v7085_v1  ;;  %v3313_v42 = vmul.f32 %v3289_v47, %v7097_v52  ;;  %v3322_v27 = vadd.f32 %v3310_v39, %v3202_v36 }
 0x172   : > { %v6402_v61 = vunpack.i.h.bf16 %v6400_v50  ;;  %v6401_v48 = vunpack.i.l.bf16 %v6400_v50  ;;  %v6397_v58 = vunpack.i.h.bf16 %v6395_v9  ;;  %v6396_v35 = vunpack.i.l.bf16 %v6395_v9 }
 0x173   : > { %v3321_v62 = vadd.f32 %v3309_v6, %v3201_v45  ;;  %v3324_v2 = vadd.f32 %v3312_v26, %v3204_v46  ;;  %v3325_v33 = vadd.f32 %v3313_v42, %v3205_v49  ;;  %v3188_v11 = vmul.f32 %v3164_v17, %v10191_v57 }
 0x174   : > { %6689 = vrot.lane.b32.xlu1 %v8842_v41, %s6825_s23  ;;  %6684 = vrot.lane.b32.xlu0 %v8846_v15, %s6825_s23  ;;  %v10221_v39 = vunpack.i.l.bf16 %v8958_v4  ;;  %v3196_v45 = vadd.f32 %v3184_v55, %v8922_v22  ;;  %v3198_v46 = vadd.f32 %v3186_v59, %v8937_v32  ;;  %v3280_v41 = vsel %vm3050_vm6, %v6401_v48, %v6402_v61  ;;  %v6410_v15 = vpop.permute.xlu1 %6409  ;;  %v6405_v47 = vpop.permute.xlu0 %6404 }
 0x175   : > { %v3170_v10 = vsel %vm3050_vm6, %v6376_v40, %v6397_v58  ;;  %v9038_v49 = vpack.c.bf16 %v3325_v33, %v3322_v27  ;;  %v6412_v6 = vunpack.i.h.bf16 %v6410_v15  ;;  %v6411_v25 = vunpack.i.l.bf16 %v6410_v15 }
 0x176   : > { %v3167_v36 = vsel %vm3050_vm6, %v10221_v39, %v6396_v35  ;;  %v6407_v8 = vunpack.i.h.bf16 %v6405_v47  ;;  %v6406_v17 = vunpack.i.l.bf16 %v6405_v47  ;;  %v9045_v22 = vpack.c.bf16 %v3324_v2, %v3321_v62  ;;  %v10222_v39 = vld [vmem:[#allocation22_spill] sm:$0xff] }
 0x177   : > { %v3191_v4 = vmul.f32 %v3167_v36, %v10191_v57  ;;  %v3199_v40 = vadd.f32 %v3187_v16, %v8934_v63  ;;  %v4740_v32 = vunpack.c.l.bf16 %v8831_v44  ;;  %v3304_v55 = vmul.f32 %v3280_v41, %v7097_v52  ;;  %3352 = vmatprep.subr.bf16.mxu0 %v9038_v49  ;;  %v9066_v41 = vld [vmem:[%s6890_s8 + $0x88] sm:$0xff] }
 0x178   : > { %6699 = vrot.lane.b32.xlu1 %v8486_v13, %s6825_s23  ;;  %6694 = vrot.lane.b32.xlu0 %v8498_v30, %s6825_s23  ;;  %v3279_v59 = vsel %vm3050_vm6, %v6411_v25, %v6401_v48  ;;  %v3282_v26 = vsel %vm3050_vm6, %v6412_v6, %v6406_v17  ;;  %v3283_v42 = vsel %vm3050_vm6, %v6406_v17, %v6407_v8  ;;  %v6420_v16 = vpop.permute.xlu1 %6419  ;;  %v6415_v9 = vpop.permute.xlu0 %6414  ;;  %v4638_v36 = vunpack.c.h.bf16 %v10222_v39 }
 0x179   : > { %v3194_v13 = vmul.f32 %v3170_v10, %v10191_v57  ;;  %v3303_v30 = vmul.f32 %v3279_v59, %v7085_v1  ;;  %v3306_v50 = vmul.f32 %v3282_v26, %v7085_v1  ;;  %v3307_v63 = vmul.f32 %v3283_v42, %v7097_v52  ;;  %3353 = vmatpush1.bf16.msra.mxu0 %v9045_v22 }
 0x17a   : > { %v6422_v27 = vunpack.i.h.bf16 %v6420_v16  ;;  %v6421_v48 = vunpack.i.l.bf16 %v6420_v16  ;;  %v6417_v58 = vunpack.i.h.bf16 %v6415_v9  ;;  %v6416_v35 = vunpack.i.l.bf16 %v6415_v9 }
 0x17b   : > { %v3203_v62 = vadd.f32 %v3191_v4, %v8940_v54  ;;  %v3315_v2 = vadd.f32 %v3303_v30, %v3195_v14  ;;  %v3318_v33 = vadd.f32 %v3306_v50, %v3198_v46  ;;  %v10223_v15 = vunpack.i.h.bf16 %v8986_v60  ;;  %v9105_v30 = vld [vmem:[%s6890_s8 + $0x98] sm:$0xff] }
 0x17c   : > { %6709 = vrot.lane.b32.xlu1 %v8857_v3, %s6825_s23  ;;  %6704 = vrot.lane.b32.xlu0 %v8506_v51, %s6825_s23  ;;  %v3281_v10 = vsel %vm3050_vm6, %v6402_v61, %v6421_v48  ;;  %v3290_v54 = vsel %vm3050_vm6, %v6387_v0, %v6417_v58  ;;  %v3319_v14 = vadd.f32 %v3307_v63, %v3199_v40  ;;  %v9079_v25 = vpop.permute.xlu1 %6429  ;;  %v9081_v61 = vpop.permute.xlu0 %6424  ;;  %v4642_v4 = vunpack.c.h.bf16 %v10224_v56 }
 0x17d   : > { %v3287_v47 = vsel %vm3050_vm6, %v10223_v15, %v6416_v35  ;;  %v3206_v3 = vadd.f32 %v3194_v13, %v8966_v20  ;;  %v3284_v46 = vsel %vm3050_vm6, %v6407_v8, %v6422_v27  ;;  %v3314_v6 = vmul.f32 %v3290_v54, %v7072_v37  ;;  %v5514_v27 = vld [vmem:[%s9873_s2 + $0xa] sm:$0x3] }
 0x17e   : > { %v3311_v51 = vmul.f32 %v3287_v47, %v7072_v37  ;;  %v3197_v60 = vadd.f32 %v8975_v5, %v8897_v24  ;;  %v3316_v17 = vadd.f32 %v3304_v55, %v3196_v45  ;;  %v4858_v0 = vunpack.c.l.bf16 %v9066_v41 }
 0x17f   : > { %v3200_v20 = vadd.f32 %v3188_v11, %v8928_v38  ;;  %v3305_v8 = vmul.f32 %v3281_v10, %v7072_v37  ;;  %v3326_v59 = vadd.f32 %v3314_v6, %v3206_v3  ;;  %v3308_v26 = vmul.f32 %v3284_v46, %v7072_v37 }
 0x180   : > { %v3323_v40 = vadd.f32 %v3311_v51, %v3203_v62  ;;  %6719 = vrot.lane.b32.xlu1 %v8871_v19, %s6825_s23  ;;  %v6432_v42 = vunpack.i.h.bf16 %v9079_v25  ;;  %6714 = vrot.lane.b32.xlu0 %v8887_v21, %s6825_s23  ;;  %v3328_v24 = vpack.c.bf16 %v3319_v14, %v3316_v17  ;;  %v3327_v5 = vpack.c.bf16 %v3318_v33, %v3315_v2  ;;  %v9098_v55 = vpop.permute.xlu1 %6439  ;;  %v9100_v13 = vpop.permute.xlu0 %6434  ;;  %v10225_v33 = vld [vmem:[#allocation24_spill] sm:$0xff] }
 0x181   : > { %v6431_v45 = vunpack.i.l.bf16 %v9079_v25  ;;  %v6427_v38 = vunpack.i.h.bf16 %v9081_v61  ;;  %v6426_v11 = vunpack.i.l.bf16 %v9081_v61  ;;  %v6442_v50 = vunpack.i.h.bf16 %v9098_v55  ;;  %v10229_v17 = vld [vmem:[#allocation8_spill] sm:$0xff] }
 0x182   : > { %v9102_v19 = vpack.c.bf16 %v3326_v59, %v3323_v40  ;;  %3354 = vmatprep.subr.bf16.mxu0 %v3328_v24  ;;  %v6441_v21 = vunpack.i.l.bf16 %v9098_v55  ;;  %v6437_v63 = vunpack.i.h.bf16 %v9100_v13  ;;  %v6436_v16 = vunpack.i.l.bf16 %v9100_v13 }
 0x183   : > { %v3317_v9 = vadd.f32 %v3305_v8, %v3197_v60  ;;  %3355 = vmatpush1.bf16.msra.mxu0 %v3327_v5  ;;  %v6738_v48 = vpack.i.bf16 %v4740_v32, %v4736_v18  ;;  %v4747_v58 = vunpack.c.h.bf16 %v8596_v29  ;;  %v3320_v35 = vadd.f32 %v3308_v26, %v3200_v20 }
 0x184   : > { %6729 = vrot.lane.b32.xlu1 %v8892_v7, %s6825_s23  ;;  %v3716_v62 = vsel %vm3597_vm7, %v6441_v21, %v6442_v50  ;;  %v3713_v7 = vsel %vm3597_vm7, %v6436_v16, %v6437_v63  ;;  %3448 = vmatprep.subr.bf16.mxu0 %v9038_v49  ;;  %v4862_v43 = vunpack.c.l.bf16 %v9105_v30  ;;  %v3608_v29 = vsel %vm3597_vm7, %v6431_v45, %v6432_v42  ;;  %v6450_v18 = vpop.permute.xlu1 %6449  ;;  %v6445_v32 = vpop.permute.xlu0 %6444 }
 0x185   : > { %6724 = vrot.lane.b32.xlu0 %v8894_v28, %s6825_s23  ;;  %v3605_v44 = vsel %vm3597_vm7, %v6426_v11, %v6427_v38  ;;  %5723 = vmatpush3.bf16.msra.mxu1 %v9102_v19  ;;  %v6733_v2 = vpack.i.bf16 %v4642_v4, %v4638_v36  ;;  %v10226_v49 = vunpack.c.h.bf16 %v10225_v33  ;;  %v6452_v28 = vunpack.i.h.bf16 %v6450_v18  ;;  %v10227_v36 = vld [vmem:[#allocation34_spill] sm:$0xff] }
 0x186   : > { %5515 = vmatmul.mubr.msk.bf16.vlgmr.msra.gmra.mxu0 %vm602_vm1, %v5514_v27  ;;  %v6451_v10 = vunpack.i.l.bf16 %v6450_v18  ;;  %v6447_v15 = vunpack.i.h.bf16 %v6445_v32  ;;  %v6446_v47 = vunpack.i.l.bf16 %v6445_v32  ;;  %5724 = vmatprep.subr.bf16.mxu1 %v10056_v34  ;;  %v3740_v54 = vmul.f32 %v3716_v62, %v10042_v12 }
 0x187   : > { %v6748_v39 = vpack.i.bf16 %v4858_v0, %v10226_v49  ;;  %v3737_v14 = vmul.f32 %v3713_v7, %v10042_v12  ;;  %3449 = vmatpush1.bf16.msra.mxu0 %v9045_v22  ;;  %v10228_v3 = vunpack.c.h.bf16 %v10227_v36  ;;  %v3632_v51 = vmul.f32 %v3608_v29, %v10212_v53  ;;  %3468 = vmatprep.mubr.bf16.mxu0 %v10211_v23 }
 0x188   : > { %6739 = vrot.lane.b32.xlu1 %v6738_v48, %s6825_s23  ;;  %v3712_v6 = vsel %vm3597_vm7, %v6451_v10, %v6436_v16  ;;  %3450 = vmatprep.subr.bf16.mxu0 %v3328_v24  ;;  %v3329_v60 = vpack.c.bf16 %v3320_v35, %v3317_v9  ;;  %v10230_v56 = vunpack.c.h.bf16 %v10229_v17  ;;  %v3629_v0 = vmul.f32 %v3605_v44, %v10212_v53  ;;  %v9157_v40 = vpop.permute.xlu1 %6459  ;;  %v9159_v59 = vpop.permute.xlu0 %6454  ;;  %v5517_v48 = vld [vmem:[%s9874_s3 + $0xa] sm:$0x3]  ;;  %v10231_v35 = vld [vmem:[#allocation2_spill] sm:$0xff] }
 0x189   : > { %v6743_v46 = vpack.i.bf16 %v10228_v3, %v4747_v58  ;;  %v3715_v20 = vsel %vm3597_vm7, %v6452_v28, %v6441_v21  ;;  %v3607_v22 = vsel %vm3597_vm7, %v6447_v15, %v6431_v45  ;;  %v3604_v8 = vsel %vm3597_vm7, %v6446_v47, %v6426_v11  ;;  %6734 = vrot.lane.b32.xlu0 %v6733_v2, %s6825_s23  ;;  %v10232_v15 = vld [vmem:[#allocation9_spill] sm:$0xff] }
 0x18a   : > { %v6753_v4 = vpack.i.bf16 %v4862_v43, %v10230_v56  ;;  %5725 = vmatpush3.bf16.msra.mxu1 %v3329_v60  ;;  %v6462_v26 = vunpack.i.h.bf16 %v9157_v40  ;;  %v6461_v24 = vunpack.i.l.bf16 %v9157_v40  ;;  %v6457_v16 = vunpack.i.h.bf16 %v9159_v59 }
 0x18b   : > { %v6456_v9 = vunpack.i.l.bf16 %v9159_v59  ;;  %v3736_v45 = vmul.f32 %v3712_v6, %v10217_v31  ;;  %3451 = vmatpush1.bf16.msra.mxu0 %v3327_v5  ;;  %5730 = vmatprep.subr.bf16.mxu1 %v10056_v34  ;;  %v3749_v11 = vadd.f32 %v3737_v14, %v3629_v0  ;;  %v3752_v21 = vadd.f32 %v3740_v54, %v3632_v51 }
 0x18c   : > { %v3739_v58 = vmul.f32 %v3715_v20, %v10217_v31  ;;  %v3631_v62 = vmul.f32 %v3607_v22, %v10231_v35  ;;  %v3836_v7 = vsel %vm3597_vm7, %v6461_v24, %v6462_v26  ;;  %6749 = vrot.lane.b32.xlu1 %v6748_v39, %s6825_s23  ;;  %v3628_v43 = vmul.f32 %v3604_v8, %v10231_v35  ;;  %v9185_v18 = vpop.permute.xlu1 %6469  ;;  %v6465_v32 = vpop.permute.xlu0 %6464 }
 0x18d   : > { %v3833_v5 = vsel %vm3597_vm7, %v6456_v9, %v6457_v16  ;;  %v3860_v29 = vmul.f32 %v3836_v7, %v7097_v52  ;;  %6744 = vrot.lane.b32.xlu0 %v6743_v46, %s6825_s23  ;;  %5727 = vmatmul.mubr.msk.bf16.vlgmr.msra.gmra.mxu1 %vm602_vm1, %v5514_v27  ;;  %v6467_v2 = vunpack.i.h.bf16 %v6465_v32  ;;  %v6466_v33 = vunpack.i.l.bf16 %v6465_v32 }
 0x18e   : > { %v3857_v44 = vmul.f32 %v3833_v5, %v7097_v52  ;;  %5731 = vmatpush3.bf16.msra.mxu1 %v9102_v19  ;;  %v4859_v49 = vunpack.c.h.bf16 %v9066_v41  ;;  %v4863_v39 = vunpack.c.h.bf16 %v9105_v30  ;;  %5518 = vmatmul.mubr.msk.bf16.vlgmr.msra.gmra.mxu0 %vm602_vm1, %v5517_v48  ;;  %v4739_v47 = vunpack.c.h.bf16 %v10232_v15  ;;  %v10233_v41 = vld [vmem:[#allocation23_spill] sm:$0xff]  ;;  %v10234_v30 = vld [vmem:[#allocation30_spill] sm:$0xff] }
 0x18f   : > { %5732 = vmatprep.subr.bf16.mxu1 %v10056_v34  ;;  %v3872_v10 = vadd.f32 %v3860_v29, %v3752_v21  ;;  %5734 = vmatprep.mubr.msk.bf16.mxu1 %vm6817_vm0, %v10056_v34  ;;  %v3751_v27 = vadd.f32 %v3739_v58, %v3631_v62  ;;  %v3835_v19 = vsel %vm3597_vm7, %v6467_v2, %v6461_v24  ;;  %v4743_v14 = vunpack.c.h.bf16 %v10234_v30  ;;  %v9214_v24 = vpop.f32.mrf.mxu0  ;;  %v10236_v21 = vld [vmem:[#allocation21_spill] sm:$0xff] }
 0x190   : > { %v3869_v28 = vadd.f32 %v3857_v44, %v3749_v11  ;;  %v3832_v54 = vsel %vm3597_vm7, %v6466_v33, %v6456_v9  ;;  %6759 = vrot.lane.b32.xlu1 %v10233_v41, %s6825_s23  ;;  %3919 = vmatprep.mubr.bf16.mxu0 %v10211_v23  ;;  %v3748_v36 = vadd.f32 %v3736_v45, %v3628_v43  ;;  %v9204_v51 = vpop.permute.xlu1 %6479  ;;  %v9206_v6 = vpop.permute.xlu0 %6474  ;;  %v6472_v0 = vunpack.i.h.bf16 %v9185_v18  ;;  %v10235_v11 = vld [vmem:[#allocation38_spill] sm:$0xff] }
 0x191   : > { %v3859_v3 = vmul.f32 %v3835_v19, %v7085_v1  ;;  %v3856_v46 = vmul.f32 %v3832_v54, %v7085_v1  ;;  %6754 = vrot.lane.b32.xlu0 %v6753_v4, %s6825_s23  ;;  %v6778_v56 = vpack.i.bf16 %v4863_v39, %v4859_v49  ;;  %v6471_v20 = vunpack.i.l.bf16 %v9185_v18  ;;  %v9233_v44 = vpop.f32.mrf.mxu0 }
 0x192   : > { %v9208_v17 = vpack.c.bf16 %v3872_v10, %v3869_v28  ;;  %5733 = vmatpush3.bf16.msra.mxu1 %v3329_v60  ;;  %v6482_v4 = vunpack.i.h.bf16 %v9204_v51  ;;  %v6481_v9 = vunpack.i.l.bf16 %v9204_v51  ;;  %v6477_v45 = vunpack.i.h.bf16 %v9206_v6 }
 0x193   : > { %v3868_v22 = vadd.f32 %v3856_v46, %v3748_v36  ;;  %v3871_v8 = vadd.f32 %v3859_v3, %v3751_v27  ;;  %5738 = vmatprep.subr.bf16.mxu1 %v10056_v34  ;;  %v6476_v60 = vunpack.i.l.bf16 %v9206_v6  ;;  %v6773_v7 = vpack.i.bf16 %v4743_v14, %v4739_v47  ;;  %v644_v39 = vpop.f32.mrf.mxu0 }
 0x194   : > { %3899 = vmatprep.subr.bf16.mxu0 %v9208_v17  ;;  %6769 = vrot.lane.b32.xlu1 %v10235_v11, %s6825_s23  ;;  %v6490_v58 = vpop.permute.xlu1 %6489  ;;  %v9224_v62 = vpop.permute.xlu0 %6484  ;;  %v3599_v32 = vsel %vm3597_vm7, %v6471_v20, %v6472_v0  ;;  %v3707_v2 = vsel %vm3597_vm7, %v6481_v9, %v6482_v4 }
 0x195   : > { %6764 = vrot.lane.b32.xlu0 %v10236_v21, %s6825_s23  ;;  %v9226_v5 = vpack.c.bf16 %v3871_v8, %v3868_v22  ;;  %5735 = vmatmul.mubr.msk.bf16.vlgmr.msra.gmra.mxu1 %vm602_vm1, %v5517_v48  ;;  %v6487_v43 = vunpack.i.h.bf16 %v9224_v62  ;;  %v6486_v29 = vunpack.i.l.bf16 %v9224_v62  ;;  %v3602_v48 = vsel %vm3597_vm7, %v6476_v60, %v6477_v45  ;;  %v645_v41 = vpop.f32.mrf.mxu0  ;;  %v696_v62 = vld [vmem:[%s9303_s15 + $0x8] sm:$0xf] }
 0x196   : > { %5742 = vmatprep.mubr.msk.bf16.mxu1 %vm6817_vm0, %v10056_v34  ;;  %v6492_v33 = vunpack.i.h.bf16 %v6490_v58  ;;  %v6491_v49 = vunpack.i.l.bf16 %v6490_v58  ;;  %v3623_v30 = vmul.f32 %v3599_v32, %v10212_v53  ;;  %v3731_v14 = vmul.f32 %v3707_v2, %v10042_v12 }
 0x197   : > { %3900 = vmatpush1.bf16.msra.mxu0 %v9226_v5  ;;  %v3710_v28 = vsel %vm3597_vm7, %v6486_v29, %v6487_v43  ;;  %v3626_v36 = vmul.f32 %v3602_v48, %v10212_v53  ;;  %v9257_v8 = vpop.f32.mrf.mxu0 }
 0x198   : > { %6779 = vrot.lane.b32.xlu1 %v6778_v56, %s6825_s23  ;;  %v6500_v10 = vpop.permute.xlu1 %6499  ;;  %v6495_v15 = vpop.permute.xlu0 %6494  ;;  %v3598_v3 = vsel %vm3597_vm7, %v6491_v49, %v6471_v20  ;;  %v3601_v46 = vsel %vm3597_vm7, %v6492_v33, %v6476_v60  ;;  %v3734_v56 = vmul.f32 %v3710_v28, %v10042_v12 }
 0x199   : > { %6774 = vrot.lane.b32.xlu0 %v6773_v7, %s6825_s23  ;;  %v6502_v47 = vunpack.i.h.bf16 %v6500_v10  ;;  %v6501_v27 = vunpack.i.l.bf16 %v6500_v10  ;;  %v6497_v19 = vunpack.i.h.bf16 %v6495_v15  ;;  %v6496_v54 = vunpack.i.l.bf16 %v6495_v15 }
 0x19a   : > { %v3622_v33 = vmul.f32 %v3598_v3, %v10231_v35  ;;  %v3625_v25 = vmul.f32 %v3601_v46, %v10231_v35  ;;  %v3746_v39 = vadd.f32 %v3734_v56, %v3626_v36  ;;  %v5195_v36 = vld [vmem:[%s9875_s4] sm:$0xf] }
 0x19b   : > { %v3706_v22 = vsel %vm3597_vm7, %v6501_v27, %v6481_v9  ;;  %v3709_v11 = vsel %vm3597_vm7, %v6502_v47, %v6486_v29  ;;  %v3609_v58 = vsel %vm3597_vm7, %v6432_v42, %v6497_v19  ;;  %v3606_v20 = vsel %vm3597_vm7, %v6427_v38, %v6496_v54  ;;  %v9271_v29 = vpop.f32.mrf.mxu0  ;;  %v10237_v47 = vld [vmem:[#allocation4_spill] sm:$0xff]  ;;  %v5214_v3 = vld [vmem:[%s9876_s5] sm:$0xf] }
 0x19c   : > { %v3730_v21 = vmul.f32 %v3706_v22, %v10217_v31  ;;  %v9267_v7 = vpop.permute.xlu1 %6509  ;;  %v6505_v60 = vpop.permute.xlu0 %6504  ;;  %v3743_v42 = vadd.f32 %v3731_v14, %v3623_v30  ;;  %v3733_v10 = vmul.f32 %v3709_v11, %v10217_v31  ;;  %v3633_v27 = vmul.f32 %v3609_v58, %v10237_v47  ;;  %5217 = vperm.xlu1 %6784, %v5214_v3  }
 0x19d   : > { %v6512_v32 = vunpack.i.h.bf16 %v9267_v7  ;;  %v6511_v9 = vunpack.i.l.bf16 %v9267_v7  ;;  %v6507_v2 = vunpack.i.h.bf16 %v6505_v60  ;;  %v6506_v48 = vunpack.i.l.bf16 %v6505_v60  ;;  %v739_v28 = vpop.f32.mrf.mxu0  ;;  %5198 = vperm.xlu0 %6783, %v5195_v36  }
 0x19e   : > { %v3742_v15 = vadd.f32 %v3730_v21, %v3622_v33  ;;  %v3630_v19 = vmul.f32 %v3606_v20, %v10237_v47  ;;  %v3745_v33 = vadd.f32 %v3733_v10, %v3625_v25 }
 0x19f   : > { %v3827_v61 = vsel %vm3597_vm7, %v6511_v9, %v6512_v32  ;;  %v3717_v38 = vsel %vm3597_vm7, %v6442_v50, %v6507_v2  ;;  %v3714_v49 = vsel %vm3597_vm7, %v6437_v63, %v6506_v48  ;;  %v9297_v63 = vpop.f32.mrf.mxu1  ;;  %v740_v14 = vpop.f32.mrf.mxu0 }
 0x1a0   : > { %v6520_v54 = vpop.permute.xlu1 %6519  ;;  %v9287_v41 = vpop.permute.xlu0 %6514  ;;  %v3851_v46 = vmul.f32 %v3827_v61, %v7097_v52  ;;  %v3741_v56 = vmul.f32 %v3717_v38, %v10191_v57  ;;  %v3738_v22 = vmul.f32 %v3714_v49, %v10191_v57 }
 0x1a1   : > { %v6522_v55 = vunpack.i.h.bf16 %v6520_v54  ;;  %v6521_v30 = vunpack.i.l.bf16 %v6520_v54  ;;  %v6517_v50 = vunpack.i.h.bf16 %v9287_v41  ;;  %v6516_v13 = vunpack.i.l.bf16 %v9287_v41  ;;  %v5648_v60 = vpop.f32.mrf.mxu1  ;;  %v9327_v48 = vpop.f32.mrf.mxu0 }
 0x1a2   : > { %v3750_v60 = vadd.f32 %v3738_v22, %v3630_v19  ;;  %v3753_v25 = vadd.f32 %v3741_v56, %v3633_v27 }
 0x1a3   : > { %v3826_v21 = vsel %vm3597_vm7, %v6521_v30, %v6511_v9  ;;  %v3829_v58 = vsel %vm3597_vm7, %v6522_v55, %v6516_v13  ;;  %v3830_v20 = vsel %vm3597_vm7, %v6516_v13, %v6517_v50  ;;  %v684_v14 = vpop.f32.mrf.mxu1  ;;  %v9332_v36 = vpop.f32.mrf.mxu0 }
 0x1a4   : > { %v3850_v61 = vmul.f32 %v3826_v21, %v7085_v1  ;;  %v3853_v38 = vmul.f32 %v3829_v58, %v7085_v1  ;;  %v3854_v9 = vmul.f32 %v3830_v20, %v7097_v52  ;;  %v3863_v58 = vadd.f32 %v3851_v46, %v3743_v42 }
 0x1a5   : > { %v6530_v49 = vpop.permute.xlu1 %6529  ;;  %v6525_v28 = vpop.permute.xlu0 %6524 }
 0x1a6   : > { %v6532_v54 = vunpack.i.h.bf16 %v6530_v49  ;;  %v6531_v55 = vunpack.i.l.bf16 %v6530_v49  ;;  %v6527_v30 = vunpack.i.h.bf16 %v6525_v28  ;;  %v6526_v13 = vunpack.i.l.bf16 %v6525_v28  ;;  %v5649_v20 = vpop.f32.mrf.mxu1  ;;  %v1190_v49 = vpop.f32.mrf.mxu0 }
 0x1a7   : > { %v3862_v2 = vadd.f32 %v3850_v61, %v3742_v15  ;;  %v3865_v11 = vadd.f32 %v3853_v38, %v3745_v33  ;;  %v3866_v3 = vadd.f32 %v3854_v9, %v3746_v39  ;;  %v600_v38 = vld [vmem:[%s9295_s11 + $0x8] sm:$0xf] }
 0x1a8   : > { %v3837_v10 = vsel %vm3597_vm7, %v6462_v26, %v6527_v30  ;;  %v3834_v21 = vsel %vm3597_vm7, %v6457_v16, %v6526_v13  ;;  %v3600_v28 = vsel %vm3597_vm7, %v6472_v0, %v6531_v55  ;;  %v3603_v39 = vsel %vm3597_vm7, %v6477_v45, %v6532_v54  ;;  %v776_v46 = vpop.f32.mrf.mxu1  ;;  %v1191_v56 = vpop.f32.mrf.mxu0  ;;  %v9377_v30 = vld [vmem:[%s9873_s2 + $0xc] sm:$0x3] }
 0x1a9   : > { %v3861_v15 = vmul.f32 %v3837_v10, %v7072_v37  ;;  %v3858_v40 = vmul.f32 %v3834_v21, %v7072_v37  ;;  %v6540_v26 = vpop.permute.xlu1 %6539  ;;  %v6535_v59 = vpop.permute.xlu0 %6534  ;;  %v3875_v0 = vpack.c.bf16 %v3866_v3, %v3863_v58  ;;  %v9348_v6 = vpack.c.bf16 %v3865_v11, %v3862_v2 }
 0x1aa   : > { %v6542_v27 = vunpack.i.h.bf16 %v6540_v26  ;;  %v6541_v16 = vunpack.i.l.bf16 %v6540_v26  ;;  %v6537_v42 = vunpack.i.h.bf16 %v6535_v59  ;;  %v6536_v19 = vunpack.i.l.bf16 %v6535_v59  ;;  %v5656_v9 = vpop.f32.mrf.mxu1  ;;  %v1282_v54 = vpop.f32.mrf.mxu0 }
 0x1ab   : > { %v3870_v18 = vadd.f32 %v3858_v40, %v3750_v60  ;;  %v3873_v22 = vadd.f32 %v3861_v15, %v3753_v25  ;;  %v3624_v55 = vmul.f32 %v3600_v28, %v10237_v47  ;;  %v3627_v11 = vmul.f32 %v3603_v39, %v10237_v47  ;;  %3901 = vmatprep.subr.bf16.mxu0 %v3875_v0 }
 0x1ac   : > { %v3828_v45 = vsel %vm3597_vm7, %v6512_v32, %v6541_v16  ;;  %v3708_v33 = vsel %vm3597_vm7, %v6482_v4, %v6536_v19  ;;  %v3711_v61 = vsel %vm3597_vm7, %v6487_v43, %v6537_v42  ;;  %v3831_v43 = vsel %vm3597_vm7, %v6517_v50, %v6542_v27  ;;  %3902 = vmatpush1.bf16.msra.mxu0 %v9348_v6  ;;  %v779_v13 = vpop.f32.mrf.mxu1  ;;  %v1284_v14 = vpop.f32.mrf.mxu0 }
 0x1ad   : > { %v3732_v7 = vmul.f32 %v3708_v33, %v10191_v57  ;;  %v3735_v32 = vmul.f32 %v3711_v61, %v10191_v57  ;;  %v9364_v51 = vpop.permute.xlu1 %6549  ;;  %v9366_v4 = vpop.permute.xlu0 %6544  ;;  %v3852_v2 = vmul.f32 %v3828_v45, %v7072_v37  ;;  %3995 = vmatprep.subr.bf16.mxu0 %v9208_v17  ;;  %v9380_v25 = vpack.c.bf16 %v3873_v22, %v3870_v18 }
 0x1ae   : > { %v692_v41 = vadd.f32 %v9297_v63, %v600_v38  ;;  %v6547_v50 = vunpack.i.h.bf16 %v9366_v4  ;;  %v6546_v10 = vunpack.i.l.bf16 %v9366_v4  ;;  %v787_v21 = vadd.f32 %v776_v46, %v696_v62  ;;  %v5657_v20 = vpop.f32.mrf.mxu1  ;;  %v1286_v49 = vpop.f32.mrf.mxu0 }
 0x1af   : > { %v3744_v60 = vadd.f32 %v3732_v7, %v3624_v55  ;;  %v3747_v3 = vadd.f32 %v3735_v32, %v3627_v11  ;;  %v1235_v58 = vcombine.low %v9327_v48, %v9332_v36  ;;  %v3855_v28 = vmul.f32 %v3831_v43, %v7072_v37  ;;  %5739 = vmatpush3.bf16.msra.mxu1 %v9380_v25  ;;  %v9433_v32 = vld [vmem:[%s9874_s3 + $0xc] sm:$0x3] }
 0x1b0   : > { %v6552_v17 = vunpack.i.h.bf16 %v9364_v51  ;;  %v6551_v39 = vunpack.i.l.bf16 %v9364_v51  ;;  %5537 = vmatmul.mubr.msk.bf16.vlgmr.msra.gmra.mxu0 %vm602_vm1, %v9377_v30  ;;  %694 = vst [vmem:[%s9295_s11 + $0x8] sm:$0xf] %v692_v41  ;;  %5740 = vmatprep.subr.bf16.mxu1 %v10056_v34  ;;  %789 = vst [vmem:[%s9303_s15 + $0x8] sm:$0xf] %v787_v21  ;;  %v1227_v27 = vpop.f32.mrf.mxu1  ;;  %v1287_v16 = vpop.f32.mrf.mxu0  ;;  %v1331_v46 = vcombine.low %v1282_v54, %v1284_v14 }
 0x1b1   : > { %v9393_v63 = vpop.permute.xlu1 %6559  ;;  %v9395_v15 = vpop.permute.xlu0 %6554  ;;  %v3864_v40 = vadd.f32 %v3852_v2, %v3744_v60  ;;  %3996 = vmatpush1.bf16.msra.mxu0 %v9226_v5  ;;  %v3867_v42 = vadd.f32 %v3855_v28, %v3747_v3  ;;  %4015 = vmatprep.mubr.bf16.mxu0 %v10211_v23  ;;  %v10238_v5 = vcombine.low %v9214_v24, %v9233_v44 }
 0x1b2   : > { %v6562_v48 = vunpack.i.h.bf16 %v9393_v63  ;;  %v6561_v36 = vunpack.i.l.bf16 %v9393_v63  ;;  %v6557_v26 = vunpack.i.h.bf16 %v9395_v15  ;;  %v6556_v59 = vunpack.i.l.bf16 %v9395_v15  ;;  %3997 = vmatprep.subr.bf16.mxu0 %v3875_v0  ;;  %v5664_v0 = vpop.f32.mrf.mxu1 }
 0x1b3   : > { %v9409_v19 = vadd.f32 %v1235_v58, %v10238_v5  ;;  %v4152_v56 = vsel %vm4144_vm8, %v6546_v10, %v6547_v50  ;;  %v4155_v24 = vsel %vm4144_vm8, %v6551_v39, %v6552_v17  ;;  %v3876_v61 = vpack.c.bf16 %v3867_v42, %v3864_v40 }
 0x1b4   : > { %v4263_v18 = vsel %vm4144_vm8, %v6561_v36, %v6562_v48  ;;  %v4260_v22 = vsel %vm4144_vm8, %v6556_v59, %v6557_v26  ;;  %v10239_v38 = vcombine.low %v9257_v8, %v9271_v29  ;;  %v1230_v62 = vpop.f32.mrf.mxu1  ;;  %v4176_v43 = vmul.f32 %v4152_v56, %v10212_v53 }
 0x1b5   : > { %v4284_v44 = vmul.f32 %v4260_v22, %v10042_v12  ;;  %v6570_v45 = vpop.permute.xlu1 %6569  ;;  %v6565_v33 = vpop.permute.xlu0 %6564  ;;  %3998 = vmatpush1.bf16.msra.mxu0 %v9348_v6  ;;  %v4287_v2 = vmul.f32 %v4263_v18, %v10042_v12  ;;  %5741 = vmatpush3.bf16.msra.mxu1 %v3876_v61  ;;  %v4179_v8 = vmul.f32 %v4155_v24, %v10212_v53 }
 0x1b6   : > { %v9427_v9 = vadd.f32 %v1331_v46, %v10239_v38  ;;  %v6572_v54 = vunpack.i.h.bf16 %v6570_v45  ;;  %v6571_v55 = vunpack.i.l.bf16 %v6570_v45  ;;  %v6567_v11 = vunpack.i.h.bf16 %v6565_v33  ;;  %5746 = vmatprep.subr.bf16.mxu1 %v10056_v34  ;;  %v5665_v13 = vpop.f32.mrf.mxu1 }
 0x1b7   : > { %v6566_v7 = vunpack.i.l.bf16 %v6565_v33  ;;  %v1146_v6 = vld [vmem:[%s9295_s11 + $0x8] sm:$0xf]  ;;  %v4296_v58 = vadd.f32 %v4284_v44, %v4176_v43 }
 0x1b8   : > { %v4262_v29 = vsel %vm4144_vm8, %v6572_v54, %v6561_v36  ;;  %v4259_v14 = vsel %vm4144_vm8, %v6571_v55, %v6556_v59  ;;  %v4154_v60 = vsel %vm4144_vm8, %v6567_v11, %v6551_v39  ;;  %5540 = vmatmul.mubr.msk.bf16.vlgmr.msra.gmra.mxu0 %vm602_vm1, %v9433_v32  ;;  %v1242_v20 = vld [vmem:[%s9303_s15 + $0x8] sm:$0xf]  ;;  %5743 = vmatmul.mubr.msk.bf16.vlgmr.msra.gmra.mxu1 %vm602_vm1, %v9377_v30 }
 0x1b9   : > { %v4151_v3 = vsel %vm4144_vm8, %v6566_v7, %v6546_v10  ;;  %v9444_v41 = vpop.permute.xlu1 %6579  ;;  %v9446_v21 = vpop.permute.xlu0 %6574  ;;  %4466 = vmatprep.mubr.bf16.mxu0 %v10211_v23  ;;  %v4286_v39 = vmul.f32 %v4262_v29, %v10217_v31  ;;  %5747 = vmatpush3.bf16.msra.mxu1 %v9380_v25  ;;  %v4299_v59 = vadd.f32 %v4287_v2, %v4179_v8 }
 0x1ba   : > { %v6582_v49 = vunpack.i.h.bf16 %v9444_v41  ;;  %v6581_v28 = vunpack.i.l.bf16 %v9444_v41  ;;  %v6577_v40 = vunpack.i.h.bf16 %v9446_v21  ;;  %v6576_v36 = vunpack.i.l.bf16 %v9446_v21  ;;  %v1323_v10 = vpop.f32.mrf.mxu1  ;;  %5750 = vmatprep.mubr.msk.bf16.mxu1 %vm6817_vm0, %v10056_v34  ;;  %5748 = vmatprep.subr.bf16.mxu1 %v10056_v34  ;;  %v1733_v56 = vpop.f32.mrf.mxu0 }
 0x1bb   : > { %v1238_v16 = vadd.f32 %v1227_v27, %v1146_v6  ;;  %v4178_v42 = vmul.f32 %v4154_v60, %v10231_v35  ;;  %v1334_v25 = vadd.f32 %v1323_v10, %v1242_v20  ;;  %v4283_v18 = vmul.f32 %v4259_v14, %v10217_v31 }
 0x1bc   : > { %v4383_v30 = vsel %vm4144_vm8, %v6581_v28, %v6582_v49  ;;  %v4380_v5 = vsel %vm4144_vm8, %v6576_v36, %v6577_v40  ;;  %v5672_v46 = vpop.f32.mrf.mxu1  ;;  %v4175_v27 = vmul.f32 %v4151_v3, %v10231_v35  ;;  %v1735_v54 = vpop.f32.mrf.mxu0 }
 0x1bd   : > { %v4407_v22 = vmul.f32 %v4383_v30, %v7097_v52  ;;  %v4404_v0 = vmul.f32 %v4380_v5, %v7097_v52  ;;  %v9474_v24 = vpop.permute.xlu1 %6589  ;;  %v6585_v44 = vpop.permute.xlu0 %6584  ;;  %1240 = vst [vmem:[%s9295_s11 + $0x8] sm:$0xf] %v1238_v16  ;;  %1336 = vst [vmem:[%s9303_s15 + $0x8] sm:$0xf] %v1334_v25  ;;  %5749 = vmatpush3.bf16.msra.mxu1 %v3876_v61  ;;  %v1782_v7 = vcombine.low %v1733_v56, %v1735_v54 }
 0x1be   : > { %v6587_v45 = vunpack.i.h.bf16 %v6585_v44  ;;  %v6586_v33 = vunpack.i.l.bf16 %v6585_v44  ;;  %v1326_v38 = vpop.f32.mrf.mxu1  ;;  %v4298_v62 = vadd.f32 %v4286_v39, %v4178_v42  ;;  %5754 = vmatprep.subr.bf16.mxu1 %v10056_v34  ;;  %v1737_v29 = vpop.f32.mrf.mxu0  ;;  %v4295_v6 = vadd.f32 %v4283_v18, %v4175_v27 }
 0x1bf   : > { %v4416_v55 = vadd.f32 %v4404_v0, %v4296_v58  ;;  %v4419_v11 = vadd.f32 %v4407_v22, %v4299_v59  ;;  %v6592_v58 = vunpack.i.h.bf16 %v9474_v24  ;;  %v9497_v59 = vadd.f32 %v1782_v7, %v9409_v19 }
 0x1c0   : > { %v4382_v43 = vsel %vm4144_vm8, %v6587_v45, %v6581_v28  ;;  %v4379_v2 = vsel %vm4144_vm8, %v6586_v33, %v6576_v36  ;;  %v5673_v8 = vpop.f32.mrf.mxu1  ;;  %5751 = vmatmul.mubr.msk.bf16.vlgmr.msra.gmra.mxu1 %vm602_vm1, %v9433_v32  ;;  %v1738_v20 = vpop.f32.mrf.mxu0  ;;  %v6591_v36 = vunpack.i.l.bf16 %v9474_v24 }
 0x1c1   : > { %v4406_v13 = vmul.f32 %v4382_v43, %v7085_v1  ;;  %v4403_v14 = vmul.f32 %v4379_v2, %v7085_v1  ;;  %v9483_v60 = vpop.permute.xlu1 %6599  ;;  %v9485_v61 = vpop.permute.xlu0 %6594  ;;  %v9487_v3 = vpack.c.bf16 %v4419_v11, %v4416_v55  ;;  %5758 = vmatprep.mubr.msk.bf16.mxu1 %vm6817_vm0, %v10056_v34 }
 0x1c2   : > { %v1774_v28 = vpop.f32.mrf.mxu1  ;;  %v6602_v16 = vunpack.i.h.bf16 %v9483_v60  ;;  %v6601_v42 = vunpack.i.l.bf16 %v9483_v60  ;;  %v4146_v44 = vsel %vm4144_vm8, %v6591_v36, %v6592_v58  ;;  %v6597_v38 = vunpack.i.h.bf16 %v9485_v61  ;;  %v5558_v60 = vld [vmem:[%s9873_s2 + $0xe] sm:$0x3] }
 0x1c3   : > { %v4415_v10 = vadd.f32 %v4403_v14, %v4295_v6  ;;  %v4418_v39 = vadd.f32 %v4406_v13, %v4298_v62  ;;  %4446 = vmatprep.subr.bf16.mxu0 %v9487_v3  ;;  %v1829_v5 = vpop.f32.mrf.mxu0  ;;  %v6596_v54 = vunpack.i.l.bf16 %v9485_v61 }
 0x1c4   : > { %v1693_v32 = vld [vmem:[%s9295_s11 + $0x8] sm:$0xf]  ;;  %v5680_v30 = vpop.f32.mrf.mxu1  ;;  %v4254_v33 = vsel %vm4144_vm8, %v6601_v42, %v6602_v16 }
 0x1c5   : > { %v6610_v25 = vpop.permute.xlu1 %6609  ;;  %v9502_v46 = vpop.permute.xlu0 %6604  ;;  %v9504_v56 = vpack.c.bf16 %v4418_v39, %v4415_v10  ;;  %v1785_v18 = vadd.f32 %v1774_v28, %v1693_v32  ;;  %v1789_v62 = vld [vmem:[%s9303_s15 + $0x8] sm:$0xf]  ;;  %v4170_v39 = vmul.f32 %v4146_v44, %v10212_v53  ;;  %v4278_v32 = vmul.f32 %v4254_v33, %v10042_v12 }
 0x1c6   : > { %v6607_v27 = vunpack.i.h.bf16 %v9502_v46  ;;  %v6606_v19 = vunpack.i.l.bf16 %v9502_v46  ;;  %v1777_v22 = vpop.f32.mrf.mxu1  ;;  %v1831_v0 = vpop.f32.mrf.mxu0  ;;  %v6611_v55 = vunpack.i.l.bf16 %v6610_v25  ;;  %v6612_v43 = vunpack.i.h.bf16 %v6610_v25 }
 0x1c7   : > { %4447 = vmatpush1.bf16.msra.mxu0 %v9504_v56  ;;  %1787 = vst [vmem:[%s9295_s11 + $0x8] sm:$0xf] %v1785_v18  ;;  %v1878_v45 = vcombine.low %v1829_v5, %v1831_v0  ;;  %v4290_v51 = vadd.f32 %v4278_v32, %v4170_v39 }
 0x1c8   : > { %v5681_v11 = vpop.f32.mrf.mxu1  ;;  %v1833_v7 = vpop.f32.mrf.mxu0  ;;  %v4257_v6 = vsel %vm4144_vm8, %v6606_v19, %v6607_v27  ;;  %v4145_v5 = vsel %vm4144_vm8, %v6611_v55, %v6591_v36  ;;  %v4148_v0 = vsel %vm4144_vm8, %v6612_v43, %v6596_v54 }
 0x1c9   : > { %v6620_v2 = vpop.permute.xlu1 %6619  ;;  %v6615_v8 = vpop.permute.xlu0 %6614  ;;  %v9520_v29 = vadd.f32 %v1878_v45, %v9427_v9  ;;  %v4149_v9 = vsel %vm4144_vm8, %v6596_v54, %v6597_v38  ;;  %v4281_v45 = vmul.f32 %v4257_v6, %v10042_v12  ;;  %v4169_v43 = vmul.f32 %v4145_v5, %v10231_v35 }
 0x1ca   : > { %v6622_v13 = vunpack.i.h.bf16 %v6620_v2  ;;  %v6621_v14 = vunpack.i.l.bf16 %v6620_v2  ;;  %v6617_v20 = vunpack.i.h.bf16 %v6615_v8  ;;  %v1834_v28 = vpop.f32.mrf.mxu0  ;;  %v1870_v10 = vpop.f32.mrf.mxu1  ;;  %v6616_v18 = vunpack.i.l.bf16 %v6615_v8 }
 0x1cb   : > { %v1881_v30 = vadd.f32 %v1870_v10, %v1789_v62  ;;  %v4173_v54 = vmul.f32 %v4149_v9, %v10212_v53 }
 0x1cc   : > { %v4253_v25 = vsel %vm4144_vm8, %v6621_v14, %v6601_v42  ;;  %v5688_v22 = vpop.f32.mrf.mxu1  ;;  %v4256_v11 = vsel %vm4144_vm8, %v6622_v13, %v6606_v19  ;;  %v4156_v44 = vsel %vm4144_vm8, %v6552_v17, %v6617_v20  ;;  %v4172_v17 = vmul.f32 %v4148_v0, %v10231_v35 }
 0x1cd   : > { %v9538_v33 = vpop.permute.xlu1 %6629  ;;  %v6625_v7 = vpop.permute.xlu0 %6624  ;;  %1883 = vst [vmem:[%s9303_s15 + $0x8] sm:$0xf] %v1881_v30  ;;  %v4277_v19 = vmul.f32 %v4253_v25, %v10217_v31  ;;  %v4153_v8 = vsel %vm4144_vm8, %v6547_v50, %v6616_v18  ;;  %v4280_v20 = vmul.f32 %v4256_v11, %v10217_v31  ;;  %v4180_v28 = vmul.f32 %v4156_v44, %v10237_v47 }
 0x1ce   : > { %v6632_v36 = vunpack.i.h.bf16 %v9538_v33  ;;  %v6631_v42 = vunpack.i.l.bf16 %v9538_v33  ;;  %v6627_v55 = vunpack.i.h.bf16 %v6625_v7  ;;  %v6626_v62 = vunpack.i.l.bf16 %v6625_v7  ;;  %v1873_v2 = vpop.f32.mrf.mxu1 }
 0x1cf   : > { %v4293_v50 = vadd.f32 %v4281_v45, %v4173_v54  ;;  %v4289_v25 = vadd.f32 %v4277_v19, %v4169_v43  ;;  %v4177_v15 = vmul.f32 %v4153_v8, %v10237_v47  ;;  %v4292_v45 = vadd.f32 %v4280_v20, %v4172_v17 }
 0x1d0   : > { %v4374_v6 = vsel %vm4144_vm8, %v6631_v42, %v6632_v36  ;;  %v4261_v13 = vsel %vm4144_vm8, %v6557_v26, %v6626_v62  ;;  %v5689_v14 = vpop.f32.mrf.mxu1  ;;  %v4264_v10 = vsel %vm4144_vm8, %v6562_v48, %v6627_v55 }
 0x1d1   : > { %v4398_v26 = vmul.f32 %v4374_v6, %v7097_v52  ;;  %v4285_v18 = vmul.f32 %v4261_v13, %v10191_v57  ;;  %v4288_v22 = vmul.f32 %v4264_v10, %v10191_v57 }
 0x1d2   : > { %v6640_v4 = vpop.permute.xlu1 %6639  ;;  %v6635_v39 = vpop.permute.xlu0 %6634 }
 0x1d3   : > { %v6642_v32 = vunpack.i.h.bf16 %v6640_v4  ;;  %v6641_v30 = vunpack.i.l.bf16 %v6640_v4  ;;  %v6637_v9 = vunpack.i.h.bf16 %v6635_v39  ;;  %v6636_v5 = vunpack.i.l.bf16 %v6635_v39 }
 0x1d4   : > { %v4297_v8 = vadd.f32 %v4285_v18, %v4177_v15  ;;  %v4300_v14 = vadd.f32 %v4288_v22, %v4180_v28  ;;  %v4410_v10 = vadd.f32 %v4398_v26, %v4290_v51 }
 0x1d5   : > { %v4373_v63 = vsel %vm4144_vm8, %v6641_v30, %v6631_v42  ;;  %v4376_v48 = vsel %vm4144_vm8, %v6642_v32, %v6636_v5  ;;  %v4377_v0 = vsel %vm4144_vm8, %v6636_v5, %v6637_v9 }
 0x1d6   : > { %v4397_v11 = vmul.f32 %v4373_v63, %v7085_v1  ;;  %v4400_v44 = vmul.f32 %v4376_v48, %v7085_v1  ;;  %v4401_v7 = vmul.f32 %v4377_v0, %v7097_v52  ;;  %v6650_v55 = vpop.permute.xlu1 %6649  ;;  %v6645_v62 = vpop.permute.xlu0 %6644 }
 0x1d7   : > { %v6652_v2 = vunpack.i.h.bf16 %v6650_v55  ;;  %v6651_v54 = vunpack.i.l.bf16 %v6650_v55  ;;  %v6647_v43 = vunpack.i.h.bf16 %v6645_v62  ;;  %v6646_v19 = vunpack.i.l.bf16 %v6645_v62 }
 0x1d8   : > { %v4409_v6 = vadd.f32 %v4397_v11, %v4289_v25  ;;  %v4412_v42 = vadd.f32 %v4400_v44, %v4292_v45  ;;  %v4413_v13 = vadd.f32 %v4401_v7, %v4293_v50 }
 0x1d9   : > { %v4384_v17 = vsel %vm4144_vm8, %v6582_v49, %v6647_v43  ;;  %v4381_v20 = vsel %vm4144_vm8, %v6577_v40, %v6646_v19  ;;  %v4147_v4 = vsel %vm4144_vm8, %v6592_v58, %v6651_v54  ;;  %v4150_v39 = vsel %vm4144_vm8, %v6597_v38, %v6652_v2 }
 0x1da   : > { %v4408_v50 = vmul.f32 %v4384_v17, %v7072_v37  ;;  %v4405_v28 = vmul.f32 %v4381_v20, %v7072_v37  ;;  %v6660_v41 = vpop.permute.xlu1 %6659  ;;  %v6655_v32 = vpop.permute.xlu0 %6654  ;;  %v4422_v25 = vpack.c.bf16 %v4413_v13, %v4410_v10  ;;  %v4421_v24 = vpack.c.bf16 %v4412_v42, %v4409_v6 }
 0x1db   : > { %v6662_v49 = vunpack.i.h.bf16 %v6660_v41  ;;  %v6661_v30 = vunpack.i.l.bf16 %v6660_v41  ;;  %v6657_v21 = vunpack.i.h.bf16 %v6655_v32  ;;  %v6656_v5 = vunpack.i.l.bf16 %v6655_v32 }
 0x1dc   : > { %v4417_v40 = vadd.f32 %v4405_v28, %v4297_v8  ;;  %v4420_v51 = vadd.f32 %v4408_v50, %v4300_v14  ;;  %v4171_v58 = vmul.f32 %v4147_v4, %v10237_v47  ;;  %v4174_v26 = vmul.f32 %v4150_v39, %v10237_v47  ;;  %4448 = vmatprep.subr.bf16.mxu0 %v4422_v25  ;;  %v5561_v50 = vld [vmem:[%s9874_s3 + $0xe] sm:$0x3] }
 0x1dd   : > { %v4375_v61 = vsel %vm4144_vm8, %v6632_v36, %v6661_v30  ;;  %v4255_v38 = vsel %vm4144_vm8, %v6602_v16, %v6656_v5  ;;  %v4258_v15 = vsel %vm4144_vm8, %v6607_v27, %v6657_v21  ;;  %v4378_v18 = vsel %vm4144_vm8, %v6637_v9, %v6662_v49  ;;  %4449 = vmatpush1.bf16.msra.mxu0 %v4421_v24 }
 0x1de   : > { %v4279_v22 = vmul.f32 %v4255_v38, %v10191_v57  ;;  %v4282_v63 = vmul.f32 %v4258_v15, %v10191_v57  ;;  %v9599_v33 = vpop.permute.xlu1 %6669  ;;  %v9601_v36 = vpop.permute.xlu0 %6664  ;;  %v4399_v16 = vmul.f32 %v4375_v61, %v7072_v37  ;;  %4542 = vmatprep.subr.bf16.mxu0 %v9487_v3  ;;  %v4426_v9 = vpack.c.bf16 %v4420_v51, %v4417_v40  ;;  %v2240_v15 = vld [vmem:[%s9295_s11 + $0x8] sm:$0xf] }
 0x1df   : > { %v4402_v48 = vmul.f32 %v4378_v18, %v7072_v37  ;;  %v6672_v0 = vunpack.i.h.bf16 %v9599_v33  ;;  %v6671_v45 = vunpack.i.l.bf16 %v9599_v33  ;;  %v6667_v11 = vunpack.i.h.bf16 %v9601_v36 }
 0x1e0   : > { %v4291_v46 = vadd.f32 %v4279_v22, %v4171_v58  ;;  %v4294_v27 = vadd.f32 %v4282_v63, %v4174_v26  ;;  %v6666_v44 = vunpack.i.l.bf16 %v9601_v36  ;;  %5559 = vmatmul.mubr.msk.bf16.vlgmr.msra.gmra.mxu0 %vm602_vm1, %v5558_v60  ;;  %5755 = vmatpush3.bf16.msra.mxu1 %v4426_v9 }
 0x1e1   : > { %4543 = vmatpush1.bf16.msra.mxu0 %v9504_v56  ;;  %5756 = vmatprep.subr.bf16.mxu1 %v10056_v34  ;;  %v4702_v6 = vsel %vm4691_vm9, %v6671_v45, %v6672_v0 }
 0x1e2   : > { %v9614_v7 = vpop.permute.xlu1 %6679  ;;  %v9616_v55 = vpop.permute.xlu0 %6674  ;;  %v4411_v3 = vadd.f32 %v4399_v16, %v4291_v46  ;;  %4544 = vmatprep.subr.bf16.mxu0 %v4422_v25  ;;  %v4414_v19 = vadd.f32 %v4402_v48, %v4294_v27  ;;  %4562 = vmatprep.mubr.bf16.mxu0 %v10211_v23  ;;  %v4699_v42 = vsel %vm4691_vm9, %v6666_v44, %v6667_v11 }
 0x1e3   : > { %v6682_v62 = vunpack.i.h.bf16 %v9614_v7  ;;  %v6681_v2 = vunpack.i.l.bf16 %v9614_v7  ;;  %v6677_v54 = vunpack.i.h.bf16 %v9616_v55  ;;  %v6676_v43 = vunpack.i.l.bf16 %v9616_v55 }
 0x1e4   : > { %v4423_v17 = vpack.c.bf16 %v4414_v19, %v4411_v3  ;;  %v4726_v32 = vmul.f32 %v4702_v6, %v10212_v53  ;;  %v4723_v30 = vmul.f32 %v4699_v42, %v10212_v53 }
 0x1e5   : > { %v4810_v8 = vsel %vm4691_vm9, %v6681_v2, %v6682_v62  ;;  %v4807_v56 = vsel %vm4691_vm9, %v6676_v43, %v6677_v54  ;;  %4545 = vmatpush1.bf16.msra.mxu0 %v4421_v24 }
 0x1e6   : > { %v6690_v13 = vpop.permute.xlu1 %6689  ;;  %v6685_v14 = vpop.permute.xlu0 %6684  ;;  %v4834_v28 = vmul.f32 %v4810_v8, %v10042_v12  ;;  %v4831_v41 = vmul.f32 %v4807_v56, %v10042_v12  ;;  %5757 = vmatpush3.bf16.msra.mxu1 %v4423_v17 }
 0x1e7   : > { %v6692_v20 = vunpack.i.h.bf16 %v6690_v13  ;;  %v6691_v10 = vunpack.i.l.bf16 %v6690_v13  ;;  %v6687_v4 = vunpack.i.h.bf16 %v6685_v14  ;;  %v6686_v39 = vunpack.i.l.bf16 %v6685_v14  ;;  %5762 = vmatprep.subr.bf16.mxu1 %v10056_v34 }
 0x1e8   : > { %5562 = vmatmul.mubr.msk.bf16.vlgmr.msra.gmra.mxu0 %vm602_vm1, %v5561_v50  ;;  %v4843_v18 = vadd.f32 %v4831_v41, %v4723_v30  ;;  %v4846_v22 = vadd.f32 %v4834_v28, %v4726_v32 }
 0x1e9   : > { %v4806_v49 = vsel %vm4691_vm9, %v6691_v10, %v6676_v43  ;;  %v4809_v21 = vsel %vm4691_vm9, %v6692_v20, %v6681_v2  ;;  %v4701_v5 = vsel %vm4691_vm9, %v6687_v4, %v6671_v45  ;;  %v4698_v40 = vsel %vm4691_vm9, %v6686_v39, %v6666_v44  ;;  %5759 = vmatmul.mubr.msk.bf16.vlgmr.msra.gmra.mxu1 %vm602_vm1, %v5558_v60 }
 0x1ea   : > { %v9650_v51 = vpop.permute.xlu1 %6699  ;;  %v9652_v25 = vpop.permute.xlu0 %6694  ;;  %5013 = vmatprep.mubr.bf16.mxu0 %v10211_v23  ;;  %v4830_v26 = vmul.f32 %v4806_v49, %v10217_v31  ;;  %5763 = vmatpush3.bf16.msra.mxu1 %v4426_v9  ;;  %v4833_v63 = vmul.f32 %v4809_v21, %v10217_v31  ;;  %v4725_v60 = vmul.f32 %v4701_v5, %v10231_v35 }
 0x1eb   : > { %v6702_v24 = vunpack.i.h.bf16 %v9650_v51  ;;  %v6701_v58 = vunpack.i.l.bf16 %v9650_v51  ;;  %v6697_v61 = vunpack.i.h.bf16 %v9652_v25  ;;  %v6696_v38 = vunpack.i.l.bf16 %v9652_v25  ;;  %5766 = vmatprep.mubr.msk.bf16.mxu1 %vm6817_vm0, %v10056_v34  ;;  %5764 = vmatprep.subr.bf16.mxu1 %v10056_v34  ;;  %v2280_v27 = vpop.f32.mrf.mxu0  ;;  %v2321_v9 = vpop.f32.mrf.mxu1 }
 0x1ec   : > { %v4722_v48 = vmul.f32 %v4698_v40, %v10231_v35  ;;  %v2332_v43 = vadd.f32 %v2321_v9, %v2240_v15  ;;  %v4845_v20 = vadd.f32 %v4833_v63, %v4725_v60 }
 0x1ed   : > { %v4930_v16 = vsel %vm4691_vm9, %v6701_v58, %v6702_v24  ;;  %v4927_v46 = vsel %vm4691_vm9, %v6696_v38, %v6697_v61  ;;  %v2282_v56 = vpop.f32.mrf.mxu0  ;;  %v5696_v6 = vpop.f32.mrf.mxu1 }
 0x1ee   : > { %v4954_v45 = vmul.f32 %v4930_v16, %v7097_v52  ;;  %v4951_v44 = vmul.f32 %v4927_v46, %v7097_v52  ;;  %v9676_v3 = vpop.permute.xlu1 %6709  ;;  %v6705_v2 = vpop.permute.xlu0 %6704  ;;  %5765 = vmatpush3.bf16.msra.mxu1 %v4423_v17  ;;  %v2329_v14 = vcombine.low %v2280_v27, %v2282_v56  ;;  %2334 = vst [vmem:[%s9295_s11 + $0x8] sm:$0xf] %v2332_v43 }
 0x1ef   : > { %v6707_v19 = vunpack.i.h.bf16 %v6705_v2  ;;  %v6706_v8 = vunpack.i.l.bf16 %v6705_v2  ;;  %5770 = vmatprep.subr.bf16.mxu1 %v10056_v34  ;;  %v2284_v39 = vpop.f32.mrf.mxu0  ;;  %v2324_v28 = vpop.f32.mrf.mxu1  ;;  %v4842_v41 = vadd.f32 %v4830_v26, %v4722_v48  ;;  %v2336_v26 = vld [vmem:[%s9303_s15 + $0x8] sm:$0xf]  ;;  %v6712_v9 = vunpack.i.h.bf16 %v9676_v3 }
 0x1f0   : > { %v4963_v42 = vadd.f32 %v4951_v44, %v4843_v18  ;;  %v4966_v13 = vadd.f32 %v4954_v45, %v4846_v22  ;;  %v9692_v5 = vadd.f32 %v2329_v14, %v9497_v59  ;;  %v6711_v48 = vunpack.i.l.bf16 %v9676_v3 }
 0x1f1   : > { %v4929_v10 = vsel %vm4691_vm9, %v6707_v19, %v6701_v58  ;;  %v4926_v4 = vsel %vm4691_vm9, %v6706_v8, %v6696_v38  ;;  %5767 = vmatmul.mubr.msk.bf16.vlgmr.msra.gmra.mxu1 %vm602_vm1, %v5561_v50  ;;  %v2285_v40 = vpop.f32.mrf.mxu0  ;;  %v5697_v15 = vpop.f32.mrf.mxu1 }
 0x1f2   : > { %v4953_v32 = vmul.f32 %v4929_v10, %v7085_v1  ;;  %v4950_v49 = vmul.f32 %v4926_v4, %v7085_v1  ;;  %v9684_v17 = vpop.permute.xlu1 %6719  ;;  %v9686_v30 = vpack.c.bf16 %v4966_v13, %v4963_v42  ;;  %v9689_v21 = vpop.permute.xlu0 %6714  ;;  %5774 = vmatprep.mubr.msk.bf16.mxu1 %vm6817_vm0, %v10056_v34 }
 0x1f3   : > { %v6722_v60 = vunpack.i.h.bf16 %v9684_v17  ;;  %v6721_v59 = vunpack.i.l.bf16 %v9684_v17  ;;  %v6717_v2 = vunpack.i.h.bf16 %v9689_v21  ;;  %v6716_v43 = vunpack.i.l.bf16 %v9689_v21 }
 0x1f4   : > { %v4962_v58 = vadd.f32 %v4950_v49, %v4842_v41  ;;  %v4965_v38 = vadd.f32 %v4953_v32, %v4845_v20  ;;  %4993 = vmatprep.subr.bf16.mxu0 %v9686_v30  ;;  %v2417_v50 = vpop.f32.mrf.mxu1  ;;  %v4693_v49 = vsel %vm4691_vm9, %v6711_v48, %v6712_v9 }
 0x1f5   : > { %v2376_v18 = vpop.f32.mrf.mxu0  ;;  %v2428_v27 = vadd.f32 %v2417_v50, %v2336_v26  ;;  %v4801_v20 = vsel %vm4691_vm9, %v6721_v59, %v6722_v60 }
 0x1f6   : > { %v6730_v22 = vpop.permute.xlu1 %6729  ;;  %v9698_v63 = vpack.c.bf16 %v4965_v38, %v4962_v58  ;;  %v5704_v44 = vpop.f32.mrf.mxu1  ;;  %v4825_v38 = vmul.f32 %v4801_v20, %v10042_v12 }
 0x1f7   : > { %v9702_v16 = vpop.permute.xlu0 %6724  ;;  %v2378_v46 = vpop.f32.mrf.mxu0  ;;  %2430 = vst [vmem:[%s9303_s15 + $0x8] sm:$0xf] %v2428_v27  ;;  %v6731_v6 = vunpack.i.l.bf16 %v6730_v22  ;;  %v6732_v10 = vunpack.i.h.bf16 %v6730_v22  ;;  %v4717_v27 = vmul.f32 %v4693_v49, %v10212_v53 }
 0x1f8   : > { %4994 = vmatpush1.bf16.msra.mxu0 %v9698_v63  ;;  %v2425_v45 = vcombine.low %v2376_v18, %v2378_v46  ;;  %v6727_v19 = vunpack.i.h.bf16 %v9702_v16  ;;  %v6726_v8 = vunpack.i.l.bf16 %v9702_v16  ;;  %v2420_v14 = vpop.f32.mrf.mxu1 }
 0x1f9   : > { %v2380_v56 = vpop.f32.mrf.mxu0  ;;  %v4692_v15 = vsel %vm4691_vm9, %v6731_v6, %v6711_v48  ;;  %v4695_v26 = vsel %vm4691_vm9, %v6732_v10, %v6716_v43  ;;  %v4837_v10 = vadd.f32 %v4825_v38, %v4717_v27 }
 0x1fa   : > { %v6740_v42 = vpop.permute.xlu1 %6739  ;;  %v9713_v13 = vadd.f32 %v2425_v45, %v9520_v29  ;;  %v5705_v32 = vpop.f32.mrf.mxu1  ;;  %v4696_v29 = vsel %vm4691_vm9, %v6716_v43, %v6717_v2  ;;  %v4804_v40 = vsel %vm4691_vm9, %v6726_v8, %v6727_v19  ;;  %v4719_v14 = vmul.f32 %v4695_v26, %v10231_v35 }
 0x1fb   : > { %v6742_v4 = vunpack.i.h.bf16 %v6740_v42  ;;  %v6741_v39 = vunpack.i.l.bf16 %v6740_v42  ;;  %v2381_v28 = vpop.f32.mrf.mxu0  ;;  %v6735_v41 = vpop.permute.xlu0 %6734  ;;  %v4720_v45 = vmul.f32 %v4696_v29, %v10212_v53  ;;  %v4828_v44 = vmul.f32 %v4804_v40, %v10042_v12 }
 0x1fc   : > { %v6737_v22 = vunpack.i.h.bf16 %v6735_v41  ;;  %v6736_v50 = vunpack.i.l.bf16 %v6735_v41 }
 0x1fd   : > { %v4800_v58 = vsel %vm4691_vm9, %v6741_v39, %v6721_v59  ;;  %v4803_v18 = vsel %vm4691_vm9, %v6742_v4, %v6726_v8  ;;  %v4716_v8 = vmul.f32 %v4692_v15, %v10231_v35  ;;  %v4840_v41 = vadd.f32 %v4828_v44, %v4720_v45 }
 0x1fe   : > { %v9732_v46 = vpop.permute.xlu1 %6749  ;;  %v4824_v59 = vmul.f32 %v4800_v58, %v10217_v31  ;;  %v4827_v20 = vmul.f32 %v4803_v18, %v10217_v31  ;;  %v4703_v12 = vsel %vm4691_vm9, %v6672_v0, %v6737_v22  ;;  %v4700_v53 = vsel %vm4691_vm9, %v6667_v11, %v6736_v50 }
 0x1ff   : > { %v6745_v56 = vpop.permute.xlu0 %6744  ;;  %v6752_v42 = vunpack.i.h.bf16 %v9732_v46  ;;  %v6751_v48 = vunpack.i.l.bf16 %v9732_v46  ;;  %v4724_v55 = vmul.f32 %v4700_v53, %v10237_v47  ;;  %v5580_v46 = vld [vmem:[%s9873_s2 + $0x10] sm:$0x3] }
 0x200   : > { %v6747_v43 = vunpack.i.h.bf16 %v6745_v56  ;;  %v6746_v6 = vunpack.i.l.bf16 %v6745_v56  ;;  %v4836_v28 = vadd.f32 %v4824_v59, %v4716_v8  ;;  %v4839_v49 = vadd.f32 %v4827_v20, %v4719_v14 }
 0x201   : > { %v4921_v31 = vsel %vm4691_vm9, %v6751_v48, %v6752_v42 }
 0x202   : > { %v4811_v4 = vsel %vm4691_vm9, %v6682_v62, %v6747_v43  ;;  %v4808_v39 = vsel %vm4691_vm9, %v6677_v54, %v6746_v6  ;;  %v6760_v35 = vpop.permute.xlu1 %6759  ;;  %v4727_v62 = vmul.f32 %v4703_v12, %v10237_v47  ;;  %v4945_v29 = vmul.f32 %v4921_v31, %v7097_v52 }
 0x203   : > { %v6762_v33 = vunpack.i.h.bf16 %v6760_v35  ;;  %v6755_v0 = vpop.permute.xlu0 %6754  ;;  %v4832_v36 = vmul.f32 %v4808_v39, %v10191_v57  ;;  %v6761_v11 = vunpack.i.l.bf16 %v6760_v35  ;;  %v4835_v54 = vmul.f32 %v4811_v4, %v10191_v57 }
 0x204   : > { %v6757_v32 = vunpack.i.h.bf16 %v6755_v0  ;;  %v6756_v7 = vunpack.i.l.bf16 %v6755_v0  ;;  %v4957_v12 = vadd.f32 %v4945_v29, %v4837_v10 }
 0x205   : > { %v4920_v40 = vsel %vm4691_vm9, %v6761_v11, %v6751_v48  ;;  %v4844_v45 = vadd.f32 %v4832_v36, %v4724_v55  ;;  %v4847_v43 = vadd.f32 %v4835_v54, %v4727_v62 }
 0x206   : > { %v4923_v58 = vsel %vm4691_vm9, %v6762_v33, %v6756_v7  ;;  %v4924_v38 = vsel %vm4691_vm9, %v6756_v7, %v6757_v32  ;;  %v6770_v15 = vpop.permute.xlu1 %6769  ;;  %v4944_v26 = vmul.f32 %v4920_v40, %v7085_v1 }
 0x207   : > { %v4947_v18 = vmul.f32 %v4923_v58, %v7085_v1  ;;  %v4948_v22 = vmul.f32 %v4924_v38, %v7097_v52  ;;  %v6772_v50 = vunpack.i.h.bf16 %v6770_v15  ;;  %v6765_v27 = vpop.permute.xlu0 %6764  ;;  %v6771_v44 = vunpack.i.l.bf16 %v6770_v15  ;;  %v2883_v15 = vld [vmem:[%s9303_s15 + $0x8] sm:$0xf] }
 0x208   : > { %v6767_v59 = vunpack.i.h.bf16 %v6765_v27  ;;  %v6766_v56 = vunpack.i.l.bf16 %v6765_v27  ;;  %v4956_v6 = vadd.f32 %v4944_v26, %v4836_v28 }
 0x209   : > { %v4959_v48 = vadd.f32 %v4947_v18, %v4839_v49  ;;  %v4960_v8 = vadd.f32 %v4948_v22, %v4840_v41  ;;  %v4697_v14 = vsel %vm4691_vm9, %v6717_v2, %v6772_v50  ;;  %v4694_v53 = vsel %vm4691_vm9, %v6712_v9, %v6771_v44 }
 0x20a   : > { %v4931_v1 = vsel %vm4691_vm9, %v6702_v24, %v6767_v59  ;;  %v4928_v52 = vsel %vm4691_vm9, %v6697_v61, %v6766_v56  ;;  %v6780_v20 = vpop.permute.xlu1 %6779  ;;  %v4721_v25 = vmul.f32 %v4697_v14, %v10237_v47  ;;  %v4718_v41 = vmul.f32 %v4694_v53, %v10237_v47 }
 0x20b   : > { %v4955_v4 = vmul.f32 %v4931_v1, %v7072_v37  ;;  %v4952_v21 = vmul.f32 %v4928_v52, %v7072_v37  ;;  %v6782_v39 = vunpack.i.h.bf16 %v6780_v20  ;;  %v6775_v2 = vpop.permute.xlu0 %6774  ;;  %v6781_v35 = vunpack.i.l.bf16 %v6780_v20 }
 0x20c   : > { %v6777_v51 = vunpack.i.h.bf16 %v6775_v2  ;;  %v6776_v28 = vunpack.i.l.bf16 %v6775_v2  ;;  %v4969_v24 = vpack.c.bf16 %v4960_v8, %v4957_v12  ;;  %v4968_v33 = vpack.c.bf16 %v4959_v48, %v4956_v6 }
 0x20d   : > { %v4964_v31 = vadd.f32 %v4952_v21, %v4844_v45  ;;  %v4967_v61 = vadd.f32 %v4955_v4, %v4847_v43  ;;  %v4922_v3 = vsel %vm4691_vm9, %v6752_v42, %v6781_v35  ;;  %v4925_v9 = vsel %vm4691_vm9, %v6757_v32, %v6782_v39 }
 0x20e   : > { %v4802_v10 = vsel %vm4691_vm9, %v6722_v60, %v6776_v28  ;;  %v4805_v0 = vsel %vm4691_vm9, %v6727_v19, %v6777_v51  ;;  %4995 = vmatprep.subr.bf16.mxu0 %v4969_v24  ;;  %v4946_v17 = vmul.f32 %v4922_v3, %v7072_v37  ;;  %v4949_v60 = vmul.f32 %v4925_v9, %v7072_v37  ;;  %v5583_v37 = vld [vmem:[%s9874_s3 + $0x10] sm:$0x3] }
 0x20f   : > { %v4826_v36 = vmul.f32 %v4802_v10, %v10191_v57  ;;  %v4829_v11 = vmul.f32 %v4805_v0, %v10191_v57  ;;  %4996 = vmatpush1.bf16.msra.mxu0 %v4968_v33  ;;  %v4973_v42 = vpack.c.bf16 %v4967_v61, %v4964_v31 }
 0x210   : > { %5089 = vmatprep.subr.bf16.mxu0 %v9686_v30 }
 0x211   : > { %v4838_v16 = vadd.f32 %v4826_v36, %v4718_v41  ;;  %v4841_v19 = vadd.f32 %v4829_v11, %v4721_v25  ;;  %5771 = vmatpush3.bf16.msra.mxu1 %v4973_v42 }
 0x212   : > { %5581 = vmatmul.mubr.msk.bf16.vlgmr.msra.gmra.mxu0 %vm602_vm1, %v5580_v46  ;;  %5772 = vmatprep.subr.bf16.mxu1 %v10056_v34 }
 0x213   : > { %5090 = vmatpush1.bf16.msra.mxu0 %v9698_v63  ;;  %v4958_v57 = vadd.f32 %v4946_v17, %v4838_v16  ;;  %v4961_v47 = vadd.f32 %v4949_v60, %v4841_v19  ;;  %5109 = vmatprep.mubr.bf16.mxu0 %v10211_v23  ;;  %v2787_v63 = vld [vmem:[%s9295_s11 + $0x8] sm:$0xf] }
 0x214   : > { %5091 = vmatprep.subr.bf16.mxu0 %v4969_v24 }
 0x215   : > { %v4970_v30 = vpack.c.bf16 %v4961_v47, %v4958_v57 }
 0x217   : > { %5092 = vmatpush1.bf16.msra.mxu0 %v4968_v33  ;;  %5773 = vmatpush3.bf16.msra.mxu1 %v4970_v30 }
 0x218   : > { %5778 = vmatprep.subr.bf16.mxu1 %v10056_v34 }
 0x21a   : > { %5584 = vmatmul.mubr.msk.bf16.vlgmr.msra.gmra.mxu0 %vm602_vm1, %v5583_v37  ;;  %5775 = vmatmul.mubr.msk.bf16.vlgmr.msra.gmra.mxu1 %vm602_vm1, %v5580_v46 }
 0x21b   : > { %5779 = vmatpush3.bf16.msra.mxu1 %v4973_v42  ;;  %5782 = vmatprep.mubr.msk.bf16.mxu1 %vm6817_vm0, %v10056_v34 }
 0x21c   : > { %5780 = vmatprep.subr.bf16.mxu1 %v10056_v34  ;;  %v2827_v23 = vpop.f32.mrf.mxu0  ;;  %v2868_v32 = vpop.f32.mrf.mxu1 }
 0x21d   : > { %v2879_v7 = vadd.f32 %v2868_v32, %v2787_v63 }
 0x21e   : > { %v2829_v49 = vpop.f32.mrf.mxu0  ;;  %v5712_v62 = vpop.f32.mrf.mxu1 }
 0x21f   : > { %5781 = vmatpush3.bf16.msra.mxu1 %v4970_v30  ;;  %v2876_v55 = vcombine.low %v2827_v23, %v2829_v49  ;;  %2881 = vst [vmem:[%s9295_s11 + $0x8] sm:$0xf] %v2879_v7 }
 0x220   : > { %v2831_v54 = vpop.f32.mrf.mxu0  ;;  %v2871_v29 = vpop.f32.mrf.mxu1 }
 0x221   : > { %v2878_v40 = vadd.f32 %v2876_v55, %v9692_v5 }
 0x222   : > { %5783 = vmatmul.mubr.msk.bf16.vlgmr.msra.gmra.mxu1 %vm602_vm1, %v5583_v37  ;;  %v2832_v58 = vpop.f32.mrf.mxu0  ;;  %v5713_v38 = vpop.f32.mrf.mxu1 }
 0x225   : > { %v2923_v26 = vpop.f32.mrf.mxu0  ;;  %v2964_v34 = vpop.f32.mrf.mxu1 }
 0x226   : > { %v2975_v18 = vadd.f32 %v2964_v34, %v2883_v15  ;;  %v3334_v1 = vld [vmem:[%s9295_s11 + $0x8] sm:$0xf] }
 0x227   : > { %v2925_v22 = vpop.f32.mrf.mxu0  ;;  %v5720_v50 = vpop.f32.mrf.mxu1 }
 0x228   : > { %v2972_v27 = vcombine.low %v2923_v26, %v2925_v22  ;;  %2977 = vst [vmem:[%s9303_s15 + $0x8] sm:$0xf] %v2975_v18 }
 0x229   : > { %v2927_v45 = vpop.f32.mrf.mxu0  ;;  %v2967_v44 = vpop.f32.mrf.mxu1 }
 0x22a   : > { %v2974_v59 = vadd.f32 %v2972_v27, %v9713_v13 }
 0x22b   : > { %v2928_v56 = vpop.f32.mrf.mxu0  ;;  %v5721_v5 = vpop.f32.mrf.mxu1 }
 0x22f   : > { %v3430_v28 = vld [vmem:[%s9303_s15 + $0x8] sm:$0xf] }
 0x246   : > { %v3374_v43 = vpop.f32.mrf.mxu0 }
 0x248   : > { %v3376_v6 = vpop.f32.mrf.mxu0 }
 0x249   : > { %v3423_v48 = vcombine.low %v3374_v43, %v3376_v6  ;;  %v6789_v43 = vld [vmem:[%s6959_s13] sm:$0x77] }
 0x24a   : > { %v3378_v8 = vpop.f32.mrf.mxu0  ;;  %v5169_v6 = vcombine.high %v6789_v43, %v6789_v43 }
 0x24b   : > { %v3425_v14 = vadd.f32 %v3423_v48, %v2878_v40 }
 0x24c   : > { %v3379_v52 = vpop.f32.mrf.mxu0 }
 0x24d   : > { %v3415_v20 = vpop.f32.mrf.mxu1  ;;  %v5179_v52 = vsel %vm5171_vm10, %v5169_v6, 0.0 }
 0x24e   : > { %v3426_v12 = vadd.f32 %v3415_v20, %v3334_v1  ;;  %v3470_v53 = vpop.f32.mrf.mxu0  ;;  %v5172_v1 = vsel %vm5171_vm10, %v6789_v43, 0.0 }
 0x24f   : > { %v5728_v4 = vpop.f32.mrf.mxu1 }
 0x250   : > { %3428 = vst [vmem:[%s9295_s11 + $0x8] sm:$0xf] %v3426_v12  ;;  %v3472_v21 = vpop.f32.mrf.mxu0  ;;  %v5173_v12 = vrot.slane %v5172_v1, 4 }
 0x251   : > { %v3418_v39 = vpop.f32.mrf.mxu1  ;;  %v3519_v2 = vcombine.low %v3470_v53, %v3472_v21  ;;  %v5180_v53 = vrot.slane %v5179_v52, 4 }
 0x252   : > { %v3474_v13 = vpop.f32.mrf.mxu0  ;;  %v5174_v4 = vadd.f32 %v5173_v12, %v5172_v1 }
 0x253   : > { %v3521_v35 = vadd.f32 %v3519_v2, %v2974_v59  ;;  %v5729_v51 = vpop.f32.mrf.mxu1  ;;  %v5181_v21 = vadd.f32 %v5180_v53, %v5179_v52 }
 0x254   : > { %v3475_v24 = vpop.f32.mrf.mxu0  ;;  %v5175_v39 = vrot.slane %v5174_v4, 2  ;;  %v6790_v51 = vld [vmem:[%s6959_s13 + $0x8] sm:$0x7] }
 0x255   : > { %v3511_v25 = vpop.f32.mrf.mxu1  ;;  %v5182_v2 = vrot.slane %v5181_v21, 2 }
 0x256   : > { %v3522_v31 = vadd.f32 %v3511_v25, %v3430_v28  ;;  %v5176_v13 = vadd.f32 %v5175_v39, %v5174_v4  ;;  %v5186_v28 = vsel %vm5171_vm10, %v6790_v51, 0.0 }
 0x257   : > { %v5736_v61 = vpop.f32.mrf.mxu1  ;;  %v3881_v46 = vld [vmem:[%s9295_s11 + $0x8] sm:$0xf] }
 0x258   : > { %3524 = vst [vmem:[%s9303_s15 + $0x8] sm:$0xf] %v3522_v31  ;;  %v5177_v24 = vrot.slane %v5176_v13, 1  ;;  %v5187_v31 = vrot.slane %v5186_v28, 4 }
 0x259   : > { %v3514_v33 = vpop.f32.mrf.mxu1 }
 0x25a   : > { %v5178_v61 = vadd.f32 %v5177_v24, %v5176_v13 }
 0x25b   : > { %v5737_v3 = vpop.f32.mrf.mxu1 }
 0x25c   : > { %v5188_v3 = vadd.f32 %v5187_v31, %v5186_v28 }
 0x25f   : > { %v3977_v32 = vld [vmem:[%s9303_s15 + $0x8] sm:$0xf] }
 0x270   : > { %v3921_v9 = vpop.f32.mrf.mxu0 }
 0x272   : > { %v3923_v10 = vpop.f32.mrf.mxu0 }
 0x273   : > { %v3970_v0 = vcombine.low %v3921_v9, %v3923_v10  ;;  %v5199_v9 = vpop.permute.xlu0 %5198 }
 0x274   : > { %v3925_v41 = vpop.f32.mrf.mxu0 }
 0x275   : > { %v9827_v36 = vadd.f32 %v3970_v0, %v3425_v14  ;;  %v5189_v0 = vrot.slane %v5188_v3, 2  ;;  %v5201_v41 = vmul.f32 %v5199_v9, %v5178_v61 }
 0x276   : > { %v3926_v11 = vpop.f32.mrf.mxu0 }
 0x278   : > { %v4017_v42 = vpop.f32.mrf.mxu0  ;;  %v3962_v17 = vpop.f32.mrf.mxu1 }
 0x279   : > { %v3973_v60 = vadd.f32 %v3962_v17, %v3881_v46 }
 0x27a   : > { %v4019_v16 = vpop.f32.mrf.mxu0  ;;  %v5744_v19 = vpop.f32.mrf.mxu1 }
 0x27b   : > { %v4066_v57 = vcombine.low %v4017_v42, %v4019_v16  ;;  %3975 = vst [vmem:[%s9295_s11 + $0x8] sm:$0xf] %v3973_v60  ;;  %v5190_v16 = vadd.f32 %v5189_v0, %v5188_v3 }
 0x27c   : > { %v4021_v47 = vpop.f32.mrf.mxu0  ;;  %v3965_v30 = vpop.f32.mrf.mxu1 }
 0x27d   : > { %v9831_v37 = vadd.f32 %v4066_v57, %v3521_v35  ;;  %v5183_v35 = vadd.f32 %v5182_v2, %v5181_v21  ;;  %v5218_v57 = vpop.permute.xlu1 %5217 }
 0x27e   : > { %v4022_v63 = vpop.f32.mrf.mxu0  ;;  %v5745_v23 = vpop.f32.mrf.mxu1 }
 0x27f   : > { %v5184_v25 = vrot.slane %v5183_v35, 1  ;;  %v5220_v23 = vmul.f32 %v5218_v57, %v5178_v61 }
 0x280   : > { %v4058_v7 = vpop.f32.mrf.mxu1 }
 0x281   : > { %v4069_v49 = vadd.f32 %v4058_v7, %v3977_v32  ;;  %v5185_v33 = vadd.f32 %v5184_v25, %v5183_v35  ;;  %v5191_v7 = vrot.slane %v5190_v16, 1 }
 0x282   : > { %v5752_v62 = vpop.f32.mrf.mxu1  ;;  %v4428_v26 = vld [vmem:[%s9295_s11 + $0x8] sm:$0xf] }
 0x283   : > { %4071 = vst [vmem:[%s9303_s15 + $0x8] sm:$0xf] %v4069_v49  ;;  %v5202_v11 = vmul.f32 %v5199_v9, %v5185_v33  ;;  %v5221_v62 = vmul.f32 %v5218_v57, %v5185_v33 }
 0x284   : > { %v4061_v55 = vpop.f32.mrf.mxu1 }
 0x285   : > { %v5206_v19 = vcombine.low %v5201_v41, %v5202_v11 }
 0x286   : > { %v5753_v54 = vpop.f32.mrf.mxu1 }
 0x28a   : > { %v4524_v56 = vld [vmem:[%s9303_s15 + $0x8] sm:$0xf] }
 0x2a0   : > { %v4468_v29 = vpop.f32.mrf.mxu0 }
 0x2a2   : > { %v4470_v40 = vpop.f32.mrf.mxu0 }
 0x2a3   : > { %v4517_v10 = vcombine.low %v4468_v29, %v4470_v40 }
 0x2a4   : > { %v4472_v58 = vpop.f32.mrf.mxu0 }
 0x2a5   : > { %v4519_v17 = vadd.f32 %v4517_v10, %v9827_v36 }
 0x2a6   : > { %v4473_v38 = vpop.f32.mrf.mxu0 }
 0x2a8   : > { %v9835_v15 = vpop.f32.mrf.mxu0 }
 0x2a9   : > { %v4509_v34 = vpop.f32.mrf.mxu1 }
 0x2aa   : > { %v4520_v18 = vadd.f32 %v4509_v34, %v4428_v26  ;;  %v9838_v22 = vpop.f32.mrf.mxu0  ;;  %v5192_v26 = vadd.f32 %v5191_v7, %v5190_v16 }
 0x2ab   : > { %v5760_v50 = vpop.f32.mrf.mxu1  ;;  %v4613_v32 = vcombine.low %v9835_v15, %v9838_v22  ;;  %v5225_v15 = vcombine.low %v5220_v23, %v5221_v62 }
 0x2ac   : > { %4522 = vst [vmem:[%s9295_s11 + $0x8] sm:$0xf] %v4520_v18  ;;  %v4568_v27 = vpop.f32.mrf.mxu0  ;;  %v5222_v1 = vmul.f32 %v5218_v57, %v5192_v26 }
 0x2ad   : > { %v4512_v45 = vpop.f32.mrf.mxu1  ;;  %v4615_v38 = vadd.f32 %v4613_v32, %v9831_v37 }
 0x2ae   : > { %v4569_v44 = vpop.f32.mrf.mxu0 }
 0x2af   : > { %v5761_v59 = vpop.f32.mrf.mxu1  ;;  %v5203_v44 = vmul.f32 %v5199_v9, %v5192_v26 }
 0x2b1   : > { %v4605_v5 = vpop.f32.mrf.mxu1 }
 0x2b2   : > { %v4616_v48 = vadd.f32 %v4605_v5, %v4524_v56 }
 0x2b3   : > { %v5768_v8 = vpop.f32.mrf.mxu1  ;;  %v4975_v54 = vld [vmem:[%s9295_s11 + $0x8] sm:$0xf] }
 0x2b4   : > { %4618 = vst [vmem:[%s9303_s15 + $0x8] sm:$0xf] %v4616_v48 }
 0x2b5   : > { %v4608_v14 = vpop.f32.mrf.mxu1 }
 0x2b7   : > { %v5769_v20 = vpop.f32.mrf.mxu1 }
 0x2bb   : > { %v5071_v56 = vld [vmem:[%s9303_s15 + $0x8] sm:$0xf] }
 0x2d2   : > { %v5015_v46 = vpop.f32.mrf.mxu0 }
 0x2d4   : > { %v5017_v42 = vpop.f32.mrf.mxu0 }
 0x2d5   : > { %v5064_v60 = vcombine.low %v5015_v46, %v5017_v42 }
 0x2d6   : > { %v5019_v47 = vpop.f32.mrf.mxu0 }
 0x2d7   : > { %v5066_v30 = vadd.f32 %v5064_v60, %v4519_v17 }
 0x2d8   : > { %v5020_v63 = vpop.f32.mrf.mxu0 }
 0x2d9   : > { %v5208_v49 = vadd.f32 %v5206_v19, %v5066_v30 }
 0x2da   : > { %v5111_v55 = vpop.f32.mrf.mxu0  ;;  %v5056_v29 = vpop.f32.mrf.mxu1 }
 0x2db   : > { %v5067_v36 = vadd.f32 %v5056_v29, %v4975_v54  ;;  %5210 = vst [vmem:[%s9295_s11] sm:$0xff] %v5208_v49 }
 0x2dc   : > { %v5113_v40 = vpop.f32.mrf.mxu0  ;;  %v5776_v58 = vpop.f32.mrf.mxu1 }
 0x2dd   : > { %5069 = vst [vmem:[%s9295_s11 + $0x8] sm:$0xf] %v5067_v36  ;;  %v5160_v34 = vcombine.low %v5111_v55, %v5113_v40 }
 0x2de   : > { %v5115_v18 = vpop.f32.mrf.mxu0  ;;  %v5059_v22 = vpop.f32.mrf.mxu1 }
 0x2df   : > { %v5162_v50 = vadd.f32 %v5160_v34, %v4615_v38 }
 0x2e0   : > { %v5116_v27 = vpop.f32.mrf.mxu0  ;;  %v5777_v45 = vpop.f32.mrf.mxu1 }
 0x2e1   : > { %v5227_v59 = vadd.f32 %v5225_v15, %v5162_v50 }
 0x2e2   : > { %v5152_v5 = vpop.f32.mrf.mxu1 }
 0x2e3   : > { %v5163_v43 = vadd.f32 %v5152_v5, %v5071_v56  ;;  %5229 = vst [vmem:[%s9303_s15] sm:$0xff] %v5227_v59 }
 0x2e4   : > { %v5194_v37 = vld [vmem:[%s9295_s11 + $0x8] sm:$0xf]  ;;  %v5784_v6 = vpop.f32.mrf.mxu1 }
 0x2e5   : > { %v5209_v48 = vadd.f32 %v5203_v44, %v5194_v37  ;;  %5165 = vst [vmem:[%s9303_s15 + $0x8] sm:$0xf] %v5163_v43 }
 0x2e6   : > { %v5155_v8 = vpop.f32.mrf.mxu1 }
 0x2e7   : > { %5211 = vst [vmem:[%s9295_s11 + $0x8] sm:$0xf] %v5209_v48 }
 0x2e8   : > { %v5785_v14 = vpop.f32.mrf.mxu1 }
 0x2ec   : > { %v5213_v52 = vld [vmem:[%s9303_s15 + $0x8] sm:$0xf] }
 0x2ed   : > { %v5228_v20 = vadd.f32 %v5222_v1, %v5213_v52 }
 0x2ef   : > { %5230 = vst [vmem:[%s9303_s15 + $0x8] sm:$0xf] %v5228_v20 }
 0x2f0 PF: > { %s18_s26 = sadd.s32 1, %s6813_s26   ;;  %s10240_s24 = smov %s6809_s25 }
 0x2f1   : > { %p15_p5 = scmp.ge.s32.totalorder %s18_s26, 4   ;;  %s10241_s25 = smov %s10243_s27 }
 0x2f3   :  { %17 = sbr.rel (!%p15_p5) target bundleno = 2 (0x2), region = 121 }

</bundles_post_ra>
